<compile_context>
chip_gen: v6e
topology: v6e:2x2x1
jax: 0.10.0
libtpu: 0.0.40
codegen_flags: <defaults>
</compile_context>

<pallas_src>
import numpy as np
import jax
import jax.numpy as jnp
from jax.experimental import pallas as pl
from jax.experimental.pallas import tpu as pltpu

EMB_DIM = 32
MEM_DIM = 32
COV_DIM = MEM_DIM              # cov_dim == mem_dim (conv consumes sim_output)
WINDOW_SIZES = (1, 2, 3)
WINDOW_LARGE = 3
NUM_WORDS = 100
NUM_WINDOWS = len(WINDOW_SIZES)

# ---------------- fixed shape buckets (one compile serves every fitting example) -------
LA_MAX = 64                    # padded total answer tokens per example
LQ_MAX = 32                    # padded question tokens
LT_PAD = LA_MAX + LQ_MAX       # 96 rows fed through embedding + projection
NA_PAD = 8                     # padded number of candidate answers
NEG = -1e30                    # additive mask value (exp() underflows to exactly 0)

# ---------------- per-example aux tile layout (f32, 32 lanes wide) ---------------------
AUX_COLS = 32
AUX_COL_IDS = AUX_COLS - 1     # token ids (answers rows 0:la, question rows LA_MAX:+lq)
AUX_ROW_QMASK = LT_PAD         # additive question mask row (attention softmax)
AUX_ROW_AMASK = LT_PAD + 1     # additive answer-validity mask row (final log_softmax)
AUX_ROWS = LT_PAD + 8          # 104 (multiple of 8)
# rows 0:LA_MAX, col wi*NA_PAD+k : additive DMax mask for window wi / answer k

# ---------------- packed parameter slab layout (f32, 128 lanes wide) -------------------
VOCAB_PAD = 104                               # NUM_WORDS rounded up to a multiple of 8
ROW_EMB = 0                                   # emb table (100, 32)          rows   0:100
ROW_W12 = VOCAB_PAD                           # fused proj weight (32, 64)   rows 104:136
ROW_CONV = ROW_W12 + EMB_DIM                  # fused conv weight (96, 96)   rows 136:232
                                              # conv-module linear1 (96, 32) cols 96:128
ROW_BIAS = ROW_CONV + NUM_WINDOWS * MEM_DIM   # bias tile                    rows 232:240
SLAB_ROWS = ROW_BIAS + 8                      # 240 rows (multiple of 8)
SLAB_COLS = 128
OUT_LANES = 128


def _comp_agg_kernel(aux_ref, slab_ref, out_ref):
    f32 = jnp.float32
    M = MEM_DIM
    m3 = NUM_WINDOWS * MEM_DIM

    # ---- weights: static views into the grid-resident packed slab (1 DMA total) ----
    emb_tbl = slab_ref[ROW_EMB:ROW_EMB + VOCAB_PAD, 0:EMB_DIM]            # (Vp, E)
    w12 = slab_ref[ROW_W12:ROW_W12 + EMB_DIM, 0:2 * M]                    # (E, 2M)
    conv_blk = slab_ref[ROW_CONV:ROW_CONV + m3, :]                        # (3M, 128)
    wconv = conv_blk[:, 0:m3]                                             # (3M, 3M)
    wl = conv_blk[:, m3:m3 + M]                                           # (3M, M)
    bias_blk = slab_ref[ROW_BIAS:ROW_BIAS + 8, :]                         # (8, 128)
    b12 = bias_blk[0:1, 0:2 * M]                                          # (1, 2M)
    bconv = bias_blk[1:2, 0:m3]                                           # (1, 3M)
    bl = bias_blk[2:3, 0:M]                                               # (1, M)
    wsm_row = bias_blk[3:4, 0:M]                                          # (1, M)

    # ---- per-example aux tile: token ids column + additive masks ----
    aux = aux_ref[0, :, :]                                                # (AUX_ROWS, 32)
    ids = aux[0:LT_PAD, AUX_COL_IDS:AUX_COL_IDS + 1].astype(jnp.int32)    # (Lt, 1)
    dmaskT = aux[0:LA_MAX, :]                                             # (La, 32)
    qmask = aux[AUX_ROW_QMASK:AUX_ROW_QMASK + 1, 0:LQ_MAX]                # (1, Lq)
    amask = aux[AUX_ROW_AMASK:AUX_ROW_AMASK + 1, 0:NA_PAD]                # (1, NA)

    # ---- embedding lookup as one-hot matmul (answers ++ question) ----
    vocab_iota = jax.lax.broadcasted_iota(jnp.int32, (LT_PAD, VOCAB_PAD), 1)
    onehot = (vocab_iota == ids).astype(f32)                              # (Lt, Vp)
    x = jnp.dot(onehot, emb_tbl, preferred_element_type=f32)              # (Lt, E)
    # TODO(synk): nn.Dropout is identity here (deterministic / eval semantics).

    # ---- fused projection: sigmoid(xW1+b1) * tanh(xW2+b2) with one matmul ----
    h = jnp.dot(x, w12, preferred_element_type=f32) + b12                 # (Lt, 2M)
    p = jax.nn.sigmoid(h[:, 0:M]) * jnp.tanh(h[:, M:2 * M])
    pa = p[0:LA_MAX, :]                                                   # (La, M)
    pq = p[LA_MAX:LT_PAD, :]                                              # (Lq, M)

    # ---- attention in (La, Lq) layout; padded question lanes masked to -inf ----
    att = jax.lax.dot_general(pa, pq, (((1,), (1,)), ((), ())),
                              preferred_element_type=f32) + qmask         # (La, Lq)
    att = att - jnp.max(att, axis=1, keepdims=True)
    e = jnp.exp(att)
    alpha = e / jnp.sum(e, axis=1, keepdims=True)                         # exact softmax
    yl = jnp.dot(alpha, pq, preferred_element_type=f32)                   # (La, M)

    # ---- sim (comp_type == 'mul') ----
    sim = pa * yl                                                         # (La, M)

    # ---- all three temporal convolutions as ONE matmul over the shifted stack ----
    # Wrapped tail rows (and padded rows >= la) are never pooled: the wrapper asserts
    # every DMax segment ends at or before row la - ws + 1.
    stack = jnp.concatenate(
        [sim, jnp.roll(sim, -1, axis=0), jnp.roll(sim, -2, axis=0)], axis=1)  # (La, 3M)
    conv = jnp.maximum(
        jnp.dot(stack, wconv, preferred_element_type=f32) + bconv, 0.0)   # (La, 3M)

    # ---- DMax: additive-mask segment maxima (lengths fully dynamic, no recompiles) ----
    conv_w = [conv[:, wi * M:(wi + 1) * M] for wi in range(NUM_WINDOWS)]  # hoisted: 3 slices
    rows = []
    for k in range(NA_PAD):
        feats = []
        for wi in range(NUM_WINDOWS):
            col = dmaskT[:, wi * NA_PAD + k: wi * NA_PAD + k + 1]         # (La, 1) 0 / -1e30
            feats.append(jnp.max(conv_w[wi] + col, axis=0, keepdims=True))  # (1, M)
        rows.append(jnp.concatenate(feats, axis=1))                       # (1, 3M)
    concat = jnp.concatenate(rows, axis=0)                                # (NA, 3M)

    feat = jnp.tanh(jnp.dot(concat, wl, preferred_element_type=f32) + bl)  # (NA, M)

    # ---- soft module: Linear(M,1) (bias cancels in log_softmax) ----
    scores = jax.lax.dot_general(wsm_row, feat, (((1,), (1,)), ((), ())),
                                 preferred_element_type=f32) + amask      # (1, NA)
    mx = jnp.max(scores, axis=1, keepdims=True)
    lse = mx + jnp.log(jnp.sum(jnp.exp(scores - mx), axis=1, keepdims=True))
    logp = scores - lse                                                   # (1, NA)

    # ---- lane-dense output tile ----
    row = jnp.concatenate(
        [logp, jnp.full((1, OUT_LANES - NA_PAD), NEG, f32)], axis=1)      # (1, 128)
    out_ref[0, :, :] = jnp.broadcast_to(row, (8, OUT_LANES))


def _build_forward(batch):
    return pl.pallas_call(
        _comp_agg_kernel,
        out_shape=jax.ShapeDtypeStruct((batch, 8, OUT_LANES), jnp.float32),
        grid=(batch,),
        in_specs=[
            pl.BlockSpec((1, AUX_ROWS, AUX_COLS), lambda b: (b, 0, 0)),   # per-example aux
            pl.BlockSpec((SLAB_ROWS, SLAB_COLS), lambda b: (0, 0)),       # resident weights
        ],
        out_specs=pl.BlockSpec((1, 8, OUT_LANES), lambda b: (b, 0, 0)),
        compiler_params=pltpu.CompilerParams(
            dimension_semantics=("parallel",)),                           # megacore on v7x
    )


def init_params(key):
    ks = jax.random.split(key, 16)
    uni = lambda k, shape, s: jax.random.uniform(k, shape, jnp.float32, -s, s)
    emb = jax.random.normal(ks[0], (NUM_WORDS, EMB_DIM), jnp.float32) * 0.1
    s_proj = 1.0 / (EMB_DIM ** 0.5)
    w1 = uni(ks[1], (EMB_DIM, MEM_DIM), s_proj)
    b1 = uni(ks[2], (1, MEM_DIM), s_proj)
    w2 = uni(ks[3], (EMB_DIM, MEM_DIM), s_proj)
    b2 = uni(ks[4], (1, MEM_DIM), s_proj)
    wc, bc = [], []
    for i, ws in enumerate(WINDOW_SIZES):
        s = 1.0 / ((COV_DIM * ws) ** 0.5)
        # wc[j, c, o] corresponds to torch Conv1d weight[o, c, j]
        wc.append(uni(ks[5 + i], (ws, COV_DIM, MEM_DIM), s))
        bc.append(uni(ks[8 + i], (1, MEM_DIM), s))
    s_l = 1.0 / ((NUM_WINDOWS * MEM_DIM) ** 0.5)
    wl = uni(ks[11], (NUM_WINDOWS * MEM_DIM, MEM_DIM), s_l)
    bl = uni(ks[12], (1, MEM_DIM), s_l)
    s_s = 1.0 / (MEM_DIM ** 0.5)
    wsm = uni(ks[13], (MEM_DIM, 1), s_s)
    bsm = uni(ks[14], (1, 1), s_s)
    return dict(emb=emb, w1=w1, b1=b1, w2=w2, b2=b2,
                wc=wc, bc=bc, wl=wl, bl=bl, wsm=wsm, bsm=bsm)


def pack_params(params):
    """Pack all parameters into one contiguous (SLAB_ROWS, 128) f32 VMEM slab."""
    slab = jnp.zeros((SLAB_ROWS, SLAB_COLS), jnp.float32)
    slab = slab.at[ROW_EMB:ROW_EMB + NUM_WORDS, 0:EMB_DIM].set(params["emb"])
    w12 = jnp.concatenate([params["w1"], params["w2"]], axis=1)
    slab = slab.at[ROW_W12:ROW_W12 + EMB_DIM, 0:2 * MEM_DIM].set(w12)
    # Fused conv weight: row block j = tap j, column block i = window i (zero if j >= ws_i).
    m3 = NUM_WINDOWS * MEM_DIM
    wconv = jnp.zeros((m3, m3), jnp.float32)
    for i, ws in enumerate(WINDOW_SIZES):
        for j in range(ws):
            wconv = wconv.at[j * COV_DIM:(j + 1) * COV_DIM,
                             i * MEM_DIM:(i + 1) * MEM_DIM].set(params["wc"][i][j])
    slab = slab.at[ROW_CONV:ROW_CONV + m3, 0:m3].set(wconv)
    slab = slab.at[ROW_CONV:ROW_CONV + m3, m3:m3 + MEM_DIM].set(params["wl"])
    b12 = jnp.concatenate([params["b1"], params["b2"]], axis=1)
    slab = slab.at[ROW_BIAS, 0:2 * MEM_DIM].set(b12[0])
    bconv = jnp.concatenate(params["bc"], axis=1)
    slab = slab.at[ROW_BIAS + 1, 0:m3].set(bconv[0])
    slab = slab.at[ROW_BIAS + 2, 0:MEM_DIM].set(params["bl"][0])
    slab = slab.at[ROW_BIAS + 3, 0:MEM_DIM].set(params["wsm"][:, 0])
    # NOTE: bsm intentionally omitted — a uniform scalar cancels in log_softmax.
    return slab


def comp_agg_forward_batch(packed_slab, examples):
    """examples: list of (question_ids, [answer_ids, ...]).  Returns list of log-probs."""
    batch = len(examples)
    aux = np.zeros((batch, AUX_ROWS, AUX_COLS), np.float32)
    num_answers = []
    for b, (q_ids, a_list) in enumerate(examples):
        q = np.asarray(q_ids, np.int32)
        fixed, lengths = [], []
        for a in a_list:
            a = np.asarray(a, np.int32)
            if a.shape[0] < WINDOW_LARGE:   # forward() preamble: too-short answers -> zeros
                a = np.zeros((WINDOW_LARGE,), np.int32)
            fixed.append(a)
            lengths.append(int(a.shape[0]))
        na, la, lq = len(fixed), int(sum(lengths)), int(q.shape[0])
        assert 1 <= na <= NA_PAD and la <= LA_MAX and 1 <= lq <= LQ_MAX

        # token ids, stored as exact small-int floats in the last lane of the aux tile
        aux[b, 0:la, AUX_COL_IDS] = np.concatenate(fixed).astype(np.float32)
        aux[b, LA_MAX:LA_MAX + lq, AUX_COL_IDS] = q.astype(np.float32)

        # additive DMax segment masks (0 inside answer k's window-wi segment, NEG outside).
        # Padded answer slots keep an all-zero column (finite; removed by the answer mask).
        for wi, ws in enumerate(WINDOW_SIZES):
            start = 0
            for k, length in enumerate(lengths):
                seg = length - ws + 1
                # pooled rows must never reach the wrapped / padded tail of the conv output
                assert seg >= 1 and start + seg <= la - ws + 1
                aux[b, 0:LA_MAX, wi * NA_PAD + k] = NEG
                aux[b, start:start + seg, wi * NA_PAD + k] = 0.0
                start += seg

        # additive question mask (attention) and answer-validity mask (final log_softmax)
        aux[b, AUX_ROW_QMASK, 0:LQ_MAX] = NEG
        aux[b, AUX_ROW_QMASK, 0:lq] = 0.0
        aux[b, AUX_ROW_AMASK, 0:NA_PAD] = NEG
        aux[b, AUX_ROW_AMASK, 0:na] = 0.0
        num_answers.append(na)

    out = _build_forward(batch)(jnp.asarray(aux), packed_slab)
    return [out[b, 0, :n] for b, n in enumerate(num_answers)]


def comp_agg_forward(packed_slab, data_q_ids, data_as_ids_list):
    """Single-example interface matching compAggWikiqa.forward(data_q, data_as)."""
    return comp_agg_forward_batch(packed_slab, [(data_q_ids, data_as_ids_list)])[0]


def comp_agg_reference(params, data_q_ids, data_as_ids_list):
    """Pure-JAX transliteration of the PyTorch forward (for correctness check)."""
    fixed, lengths = [], []
    for a in data_as_ids_list:
        a = jnp.asarray(a, jnp.int32)
        if a.shape[0] < WINDOW_LARGE:
            a = jnp.zeros((WINDOW_LARGE,), jnp.int32)
        fixed.append(a)
        lengths.append(int(a.shape[0]))
    ids_a = jnp.concatenate(fixed, axis=0)
    a_emb = params["emb"][ids_a]
    q_emb = params["emb"][jnp.asarray(data_q_ids, jnp.int32)]

    def proj(x):
        i = jax.nn.sigmoid(x @ params["w1"] + params["b1"])
        u = jnp.tanh(x @ params["w2"] + params["b2"])
        return i * u

    pa, pq = proj(a_emb), proj(q_emb)
    m_r = pq @ pa.T
    alpha = jax.nn.softmax(m_r.T, axis=1)
    yl = alpha @ pq
    sim = pa * yl
    la = sim.shape[0]
    pools = []
    for ws, wc, bc in zip(WINDOW_SIZES, params["wc"], params["bc"]):
        l_out = la - ws + 1
        acc = jnp.zeros((l_out, MEM_DIM), jnp.float32)
        for j in range(ws):
            acc = acc + sim[j:j + l_out] @ wc[j]
        conv = jnp.maximum(acc + bc, 0.0)
        start, rows = 0, []
        for length in lengths:
            seg = length - ws + 1
            rows.append(jnp.max(conv[start:start + seg], axis=0, keepdims=True))
            start += seg
        pools.append(jnp.concatenate(rows, axis=0))
    concat = jnp.concatenate(pools, axis=1)
    feat = jnp.tanh(concat @ params["wl"] + params["bl"])
    scores = (feat @ params["wsm"] + params["bsm"]).reshape(-1)
    return jax.nn.log_softmax(scores)


if __name__ == "__main__":
    key = jax.random.PRNGKey(0)
    pkey, dkey = jax.random.split(key)
    params = init_params(pkey)
    packed = pack_params(params)

    rng = jax.random.split(dkey, 16)

    def rint(k, n):
        return jax.random.randint(k, (n,), 0, NUM_WORDS, dtype=jnp.int32)

    # Small batch of (question, candidate-answer-set) examples with varying question
    # lengths, answer counts and lengths; one answer is shorter than window_large to
    # exercise the zero-fill branch of forward().
    examples = [
        (rint(rng[0], 8),  [rint(rng[1], 8), rint(rng[2], 6), rint(rng[3], 10),
                            rint(rng[4], 8)]),
        (rint(rng[5], 12), [rint(rng[6], 5), rint(rng[7], 7), rint(rng[8], 9)]),
        (rint(rng[9], 5),  [rint(rng[10], 2), rint(rng[11], 4), rint(rng[12], 6),
                            rint(rng[13], 7), rint(rng[14], 5)]),
        (rint(rng[15], 16), [rint(rng[1], 10), rint(rng[2], 12), rint(rng[3], 11),
                             rint(rng[4], 9), rint(rng[6], 8), rint(rng[7], 6)]),
    ]

    outs = comp_agg_forward_batch(packed, examples)
    outs = [jax.block_until_ready(o) for o in outs]

    for (q, answers), got in zip(examples, outs):
        ref = jax.block_until_ready(comp_agg_reference(params, q, answers))
        assert got.shape == (len(answers),)
        total_prob = float(jnp.sum(jnp.exp(got)))
        assert abs(total_prob - 1.0) < 1e-3, total_prob
        assert jnp.allclose(got, ref, atol=5e-2, rtol=5e-2), (got, ref)

    # single-example interface (module's forward signature) reuses the same kernel
    single = jax.block_until_ready(
        comp_agg_forward(packed, examples[0][0], examples[0][1]))
    assert jnp.allclose(single, outs[0], atol=1e-5, rtol=1e-5)

    print("KERNEL_OK")
</pallas_src>

<mosaic_0001>
module attributes {stable_mosaic.version = 11 : i64} {
  func.func @_comp_agg_kernel(%arg0: i32, %arg1: memref<1x104x32xf32, #tpu.memory_space<vmem>>, %arg2: memref<240x128xf32, #tpu.memory_space<vmem>>, %arg3: memref<1x8x128xf32, #tpu.memory_space<vmem>>) attributes {dimension_semantics = [#tpu.dimension_semantics<parallel>], iteration_bounds = array<i64: 4>, scalar_prefetch = 0 : i64, scratch_operands = 0 : i64, tpu.core_type = #tpu.core_type<tc>, window_params = [{transform_indices = @transform_0, window_bounds = array<i64: 1, 104, 32>}, {pipeline_mode = #tpu.pipeline_mode<synchronous>, transform_indices = @transform_1, window_bounds = array<i64: 240, 128>}, {transform_indices = @transform_2, window_bounds = array<i64: 1, 8, 128>}]} {
    %c0 = arith.constant 0 : index
    %c0_0 = arith.constant 0 : index
    %0 = vector.load %arg2[%c0, %c0_0] : memref<240x128xf32, #tpu.memory_space<vmem>>, vector<104x32xf32>
    %c104 = arith.constant 104 : index
    %c0_1 = arith.constant 0 : index
    %1 = vector.load %arg2[%c104, %c0_1] : memref<240x128xf32, #tpu.memory_space<vmem>>, vector<32x64xf32>
    %c136 = arith.constant 136 : index
    %c0_2 = arith.constant 0 : index
    %2 = vector.load %arg2[%c136, %c0_2] : memref<240x128xf32, #tpu.memory_space<vmem>>, vector<96x128xf32>
    %3 = vector.extract_strided_slice %2 {offsets = [0, 0], sizes = [96, 96], strides = [1, 1]} : vector<96x128xf32> to vector<96x96xf32>
    %4 = vector.extract_strided_slice %2 {offsets = [0, 96], sizes = [96, 32], strides = [1, 1]} : vector<96x128xf32> to vector<96x32xf32>
    %c232 = arith.constant 232 : index
    %c0_3 = arith.constant 0 : index
    %5 = vector.load %arg2[%c232, %c0_3] : memref<240x128xf32, #tpu.memory_space<vmem>>, vector<8x128xf32>
    %6 = vector.extract_strided_slice %5 {offsets = [0, 0], sizes = [1, 64], strides = [1, 1]} : vector<8x128xf32> to vector<1x64xf32>
    %7 = vector.extract_strided_slice %5 {offsets = [1, 0], sizes = [1, 96], strides = [1, 1]} : vector<8x128xf32> to vector<1x96xf32>
    %8 = vector.extract_strided_slice %5 {offsets = [2, 0], sizes = [1, 32], strides = [1, 1]} : vector<8x128xf32> to vector<1x32xf32>
    %9 = vector.extract_strided_slice %5 {offsets = [3, 0], sizes = [1, 32], strides = [1, 1]} : vector<8x128xf32> to vector<1x32xf32>
    %c0_4 = arith.constant 0 : index
    %c0_5 = arith.constant 0 : index
    %c0_6 = arith.constant 0 : index
    %10 = vector.load %arg1[%c0_4, %c0_5, %c0_6] : memref<1x104x32xf32, #tpu.memory_space<vmem>>, vector<1x104x32xf32>
    %11 = vector.shape_cast %10 : vector<1x104x32xf32> to vector<104x32xf32>
    %12 = vector.extract_strided_slice %11 {offsets = [0, 31], sizes = [96, 1], strides = [1, 1]} : vector<104x32xf32> to vector<96x1xf32>
    %13 = arith.fptosi %12 : vector<96x1xf32> to vector<96x1xi32>
    %14 = vector.extract_strided_slice %11 {offsets = [0, 0], sizes = [64, 32], strides = [1, 1]} : vector<104x32xf32> to vector<64x32xf32>
    %15 = vector.extract_strided_slice %11 {offsets = [96, 0], sizes = [1, 32], strides = [1, 1]} : vector<104x32xf32> to vector<1x32xf32>
    %16 = vector.extract_strided_slice %11 {offsets = [97, 0], sizes = [1, 8], strides = [1, 1]} : vector<104x32xf32> to vector<1x8xf32>
    %17 = tpu.iota {dimensions = array<i32: 1>} : vector<96x104xi32>
    %18 = vector.broadcast %13 : vector<96x1xi32> to vector<96x104xi32>
    %19 = arith.cmpi eq, %17, %18 : vector<96x104xi32>
    %20 = arith.extui %19 : vector<96x104xi1> to vector<96x104xi32>
    %21 = arith.sitofp %20 : vector<96x104xi32> to vector<96x104xf32>
    %cst = arith.constant dense<0.000000e+00> : vector<96x32xf32>
    %22 = tpu.matmul %21, %0, %cst {dimension_numbers = #tpu.dot_dimension_numbers<[1], [0], [0], [1], [0, 0, 1, 1], [], []>} : vector<96x104xf32>, vector<104x32xf32>, vector<96x32xf32> -> vector<96x32xf32>
    %cst_7 = arith.constant dense<0.000000e+00> : vector<96x64xf32>
    %23 = tpu.matmul %22, %1, %cst_7 {dimension_numbers = #tpu.dot_dimension_numbers<[1], [0], [0], [1], [0, 0, 1, 1], [], []>} : vector<96x32xf32>, vector<32x64xf32>, vector<96x64xf32> -> vector<96x64xf32>
    %24 = vector.broadcast %6 : vector<1x64xf32> to vector<96x64xf32>
    %25 = arith.addf %23, %24 : vector<96x64xf32>
    %26 = vector.extract_strided_slice %25 {offsets = [0, 0], sizes = [96, 32], strides = [1, 1]} : vector<96x64xf32> to vector<96x32xf32>
    %27 = arith.negf %26 : vector<96x32xf32>
    %28 = math.exp %27 : vector<96x32xf32>
    %cst_8 = arith.constant 1.000000e+00 : f32
    %29 = vector.broadcast %cst_8 : f32 to vector<96x32xf32>
    %30 = arith.addf %29, %28 : vector<96x32xf32>
    %31 = arith.divf %29, %30 : vector<96x32xf32>
    %32 = vector.extract_strided_slice %25 {offsets = [0, 32], sizes = [96, 32], strides = [1, 1]} : vector<96x64xf32> to vector<96x32xf32>
    %33 = math.tanh %32 : vector<96x32xf32>
    %34 = arith.mulf %31, %33 : vector<96x32xf32>
    %35 = vector.extract_strided_slice %34 {offsets = [0, 0], sizes = [64, 32], strides = [1, 1]} : vector<96x32xf32> to vector<64x32xf32>
    %36 = vector.extract_strided_slice %34 {offsets = [64, 0], sizes = [32, 32], strides = [1, 1]} : vector<96x32xf32> to vector<32x32xf32>
    %cst_9 = arith.constant dense<0.000000e+00> : vector<64x32xf32>
    %37 = tpu.matmul %35, %36, %cst_9 {dimension_numbers = #tpu.dot_dimension_numbers<[1], [1], [0], [0], [0, 0, 1, 0], [], []>} : vector<64x32xf32>, vector<32x32xf32>, vector<64x32xf32> -> vector<64x32xf32>
    %38 = vector.broadcast %15 : vector<1x32xf32> to vector<64x32xf32>
    %39 = arith.addf %37, %38 : vector<64x32xf32>
    %cst_10 = arith.constant dense<0xFF800000> : vector<64xf32>
    %40 = vector.multi_reduction <maximumf>, %39, %cst_10 [1] : vector<64x32xf32> to vector<64xf32>
    %41 = vector.shape_cast %40 : vector<64xf32> to vector<64x1xf32>
    %42 = vector.broadcast %41 : vector<64x1xf32> to vector<64x32xf32>
    %43 = arith.subf %39, %42 : vector<64x32xf32>
    %44 = math.exp %43 : vector<64x32xf32>
    %cst_11 = arith.constant dense<0.000000e+00> : vector<64xf32>
    %45 = vector.multi_reduction <add>, %44, %cst_11 [1] : vector<64x32xf32> to vector<64xf32>
    %46 = vector.shape_cast %45 : vector<64xf32> to vector<64x1xf32>
    %47 = vector.broadcast %46 : vector<64x1xf32> to vector<64x32xf32>
    %48 = arith.divf %44, %47 : vector<64x32xf32>
    %cst_12 = arith.constant dense<0.000000e+00> : vector<64x32xf32>
    %49 = tpu.matmul %48, %36, %cst_12 {dimension_numbers = #tpu.dot_dimension_numbers<[1], [0], [0], [1], [0, 0, 1, 1], [], []>} : vector<64x32xf32>, vector<32x32xf32>, vector<64x32xf32> -> vector<64x32xf32>
    %50 = arith.mulf %35, %49 : vector<64x32xf32>
    %51 = vector.extract_strided_slice %50 {offsets = [1, 0], sizes = [63, 32], strides = [1, 1]} : vector<64x32xf32> to vector<63x32xf32>
    %52 = vector.extract_strided_slice %50 {offsets = [0, 0], sizes = [1, 32], strides = [1, 1]} : vector<64x32xf32> to vector<1x32xf32>
    %53 = tpu.concatenate %51, %52 in 0 : vector<63x32xf32>, vector<1x32xf32> -> vector<64x32xf32>
    %54 = vector.extract_strided_slice %50 {offsets = [2, 0], sizes = [62, 32], strides = [1, 1]} : vector<64x32xf32> to vector<62x32xf32>
    %55 = vector.extract_strided_slice %50 {offsets = [0, 0], sizes = [2, 32], strides = [1, 1]} : vector<64x32xf32> to vector<2x32xf32>
    %56 = tpu.concatenate %54, %55 in 0 : vector<62x32xf32>, vector<2x32xf32> -> vector<64x32xf32>
    %57 = tpu.concatenate %50, %53, %56 in 1 : vector<64x32xf32>, vector<64x32xf32>, vector<64x32xf32> -> vector<64x96xf32>
    %cst_13 = arith.constant dense<0.000000e+00> : vector<64x96xf32>
    %58 = tpu.matmul %57, %3, %cst_13 {dimension_numbers = #tpu.dot_dimension_numbers<[1], [0], [0], [1], [0, 0, 1, 1], [], []>} : vector<64x96xf32>, vector<96x96xf32>, vector<64x96xf32> -> vector<64x96xf32>
    %59 = vector.broadcast %7 : vector<1x96xf32> to vector<64x96xf32>
    %60 = arith.addf %58, %59 : vector<64x96xf32>
    %cst_14 = arith.constant 0.000000e+00 : f32
    %61 = vector.broadcast %cst_14 : f32 to vector<64x96xf32>
    %62 = arith.maximumf %60, %61 : vector<64x96xf32>
    %63 = vector.extract_strided_slice %62 {offsets = [0, 0], sizes = [64, 32], strides = [1, 1]} : vector<64x96xf32> to vector<64x32xf32>
    %64 = vector.extract_strided_slice %62 {offsets = [0, 32], sizes = [64, 32], strides = [1, 1]} : vector<64x96xf32> to vector<64x32xf32>
    %65 = vector.extract_strided_slice %62 {offsets = [0, 64], sizes = [64, 32], strides = [1, 1]} : vector<64x96xf32> to vector<64x32xf32>
    %66 = vector.extract_strided_slice %14 {offsets = [0, 0], sizes = [64, 1], strides = [1, 1]} : vector<64x32xf32> to vector<64x1xf32>
    %67 = vector.broadcast %66 : vector<64x1xf32> to vector<64x32xf32>
    %68 = arith.addf %63, %67 : vector<64x32xf32>
    %cst_15 = arith.constant dense<0xFF800000> : vector<32xf32>
    %69 = vector.multi_reduction <maximumf>, %68, %cst_15 [0] : vector<64x32xf32> to vector<32xf32>
    %70 = vector.shape_cast %69 : vector<32xf32> to vector<1x32xf32>
    %71 = vector.extract_strided_slice %14 {offsets = [0, 8], sizes = [64, 1], strides = [1, 1]} : vector<64x32xf32> to vector<64x1xf32>
    %72 = vector.broadcast %71 : vector<64x1xf32> to vector<64x32xf32>
    %73 = arith.addf %64, %72 : vector<64x32xf32>
    %cst_16 = arith.constant dense<0xFF800000> : vector<32xf32>
    %74 = vector.multi_reduction <maximumf>, %73, %cst_16 [0] : vector<64x32xf32> to vector<32xf32>
    %75 = vector.shape_cast %74 : vector<32xf32> to vector<1x32xf32>
    %76 = vector.extract_strided_slice %14 {offsets = [0, 16], sizes = [64, 1], strides = [1, 1]} : vector<64x32xf32> to vector<64x1xf32>
    %77 = vector.broadcast %76 : vector<64x1xf32> to vector<64x32xf32>
    %78 = arith.addf %65, %77 : vector<64x32xf32>
    %cst_17 = arith.constant dense<0xFF800000> : vector<32xf32>
    %79 = vector.multi_reduction <maximumf>, %78, %cst_17 [0] : vector<64x32xf32> to vector<32xf32>
    %80 = vector.shape_cast %79 : vector<32xf32> to vector<1x32xf32>
    %81 = tpu.concatenate %70, %75, %80 in 1 : vector<1x32xf32>, vector<1x32xf32>, vector<1x32xf32> -> vector<1x96xf32>
    %82 = vector.extract_strided_slice %14 {offsets = [0, 1], sizes = [64, 1], strides = [1, 1]} : vector<64x32xf32> to vector<64x1xf32>
    %83 = vector.broadcast %82 : vector<64x1xf32> to vector<64x32xf32>
    %84 = arith.addf %63, %83 : vector<64x32xf32>
    %cst_18 = arith.constant dense<0xFF800000> : vector<32xf32>
    %85 = vector.multi_reduction <maximumf>, %84, %cst_18 [0] : vector<64x32xf32> to vector<32xf32>
    %86 = vector.shape_cast %85 : vector<32xf32> to vector<1x32xf32>
    %87 = vector.extract_strided_slice %14 {offsets = [0, 9], sizes = [64, 1], strides = [1, 1]} : vector<64x32xf32> to vector<64x1xf32>
    %88 = vector.broadcast %87 : vector<64x1xf32> to vector<64x32xf32>
    %89 = arith.addf %64, %88 : vector<64x32xf32>
    %cst_19 = arith.constant dense<0xFF800000> : vector<32xf32>
    %90 = vector.multi_reduction <maximumf>, %89, %cst_19 [0] : vector<64x32xf32> to vector<32xf32>
    %91 = vector.shape_cast %90 : vector<32xf32> to vector<1x32xf32>
    %92 = vector.extract_strided_slice %14 {offsets = [0, 17], sizes = [64, 1], strides = [1, 1]} : vector<64x32xf32> to vector<64x1xf32>
    %93 = vector.broadcast %92 : vector<64x1xf32> to vector<64x32xf32>
    %94 = arith.addf %65, %93 : vector<64x32xf32>
    %cst_20 = arith.constant dense<0xFF800000> : vector<32xf32>
    %95 = vector.multi_reduction <maximumf>, %94, %cst_20 [0] : vector<64x32xf32> to vector<32xf32>
    %96 = vector.shape_cast %95 : vector<32xf32> to vector<1x32xf32>
    %97 = tpu.concatenate %86, %91, %96 in 1 : vector<1x32xf32>, vector<1x32xf32>, vector<1x32xf32> -> vector<1x96xf32>
    %98 = vector.extract_strided_slice %14 {offsets = [0, 2], sizes = [64, 1], strides = [1, 1]} : vector<64x32xf32> to vector<64x1xf32>
    %99 = vector.broadcast %98 : vector<64x1xf32> to vector<64x32xf32>
    %100 = arith.addf %63, %99 : vector<64x32xf32>
    %cst_21 = arith.constant dense<0xFF800000> : vector<32xf32>
    %101 = vector.multi_reduction <maximumf>, %100, %cst_21 [0] : vector<64x32xf32> to vector<32xf32>
    %102 = vector.shape_cast %101 : vector<32xf32> to vector<1x32xf32>
    %103 = vector.extract_strided_slice %14 {offsets = [0, 10], sizes = [64, 1], strides = [1, 1]} : vector<64x32xf32> to vector<64x1xf32>
    %104 = vector.broadcast %103 : vector<64x1xf32> to vector<64x32xf32>
    %105 = arith.addf %64, %104 : vector<64x32xf32>
    %cst_22 = arith.constant dense<0xFF800000> : vector<32xf32>
    %106 = vector.multi_reduction <maximumf>, %105, %cst_22 [0] : vector<64x32xf32> to vector<32xf32>
    %107 = vector.shape_cast %106 : vector<32xf32> to vector<1x32xf32>
    %108 = vector.extract_strided_slice %14 {offsets = [0, 18], sizes = [64, 1], strides = [1, 1]} : vector<64x32xf32> to vector<64x1xf32>
    %109 = vector.broadcast %108 : vector<64x1xf32> to vector<64x32xf32>
    %110 = arith.addf %65, %109 : vector<64x32xf32>
    %cst_23 = arith.constant dense<0xFF800000> : vector<32xf32>
    %111 = vector.multi_reduction <maximumf>, %110, %cst_23 [0] : vector<64x32xf32> to vector<32xf32>
    %112 = vector.shape_cast %111 : vector<32xf32> to vector<1x32xf32>
    %113 = tpu.concatenate %102, %107, %112 in 1 : vector<1x32xf32>, vector<1x32xf32>, vector<1x32xf32> -> vector<1x96xf32>
    %114 = vector.extract_strided_slice %14 {offsets = [0, 3], sizes = [64, 1], strides = [1, 1]} : vector<64x32xf32> to vector<64x1xf32>
    %115 = vector.broadcast %114 : vector<64x1xf32> to vector<64x32xf32>
    %116 = arith.addf %63, %115 : vector<64x32xf32>
    %cst_24 = arith.constant dense<0xFF800000> : vector<32xf32>
    %117 = vector.multi_reduction <maximumf>, %116, %cst_24 [0] : vector<64x32xf32> to vector<32xf32>
    %118 = vector.shape_cast %117 : vector<32xf32> to vector<1x32xf32>
    %119 = vector.extract_strided_slice %14 {offsets = [0, 11], sizes = [64, 1], strides = [1, 1]} : vector<64x32xf32> to vector<64x1xf32>
    %120 = vector.broadcast %119 : vector<64x1xf32> to vector<64x32xf32>
    %121 = arith.addf %64, %120 : vector<64x32xf32>
    %cst_25 = arith.constant dense<0xFF800000> : vector<32xf32>
    %122 = vector.multi_reduction <maximumf>, %121, %cst_25 [0] : vector<64x32xf32> to vector<32xf32>
    %123 = vector.shape_cast %122 : vector<32xf32> to vector<1x32xf32>
    %124 = vector.extract_strided_slice %14 {offsets = [0, 19], sizes = [64, 1], strides = [1, 1]} : vector<64x32xf32> to vector<64x1xf32>
    %125 = vector.broadcast %124 : vector<64x1xf32> to vector<64x32xf32>
    %126 = arith.addf %65, %125 : vector<64x32xf32>
    %cst_26 = arith.constant dense<0xFF800000> : vector<32xf32>
    %127 = vector.multi_reduction <maximumf>, %126, %cst_26 [0] : vector<64x32xf32> to vector<32xf32>
    %128 = vector.shape_cast %127 : vector<32xf32> to vector<1x32xf32>
    %129 = tpu.concatenate %118, %123, %128 in 1 : vector<1x32xf32>, vector<1x32xf32>, vector<1x32xf32> -> vector<1x96xf32>
    %130 = vector.extract_strided_slice %14 {offsets = [0, 4], sizes = [64, 1], strides = [1, 1]} : vector<64x32xf32> to vector<64x1xf32>
    %131 = vector.broadcast %130 : vector<64x1xf32> to vector<64x32xf32>
    %132 = arith.addf %63, %131 : vector<64x32xf32>
    %cst_27 = arith.constant dense<0xFF800000> : vector<32xf32>
    %133 = vector.multi_reduction <maximumf>, %132, %cst_27 [0] : vector<64x32xf32> to vector<32xf32>
    %134 = vector.shape_cast %133 : vector<32xf32> to vector<1x32xf32>
    %135 = vector.extract_strided_slice %14 {offsets = [0, 12], sizes = [64, 1], strides = [1, 1]} : vector<64x32xf32> to vector<64x1xf32>
    %136 = vector.broadcast %135 : vector<64x1xf32> to vector<64x32xf32>
    %137 = arith.addf %64, %136 : vector<64x32xf32>
    %cst_28 = arith.constant dense<0xFF800000> : vector<32xf32>
    %138 = vector.multi_reduction <maximumf>, %137, %cst_28 [0] : vector<64x32xf32> to vector<32xf32>
    %139 = vector.shape_cast %138 : vector<32xf32> to vector<1x32xf32>
    %140 = vector.extract_strided_slice %14 {offsets = [0, 20], sizes = [64, 1], strides = [1, 1]} : vector<64x32xf32> to vector<64x1xf32>
    %141 = vector.broadcast %140 : vector<64x1xf32> to vector<64x32xf32>
    %142 = arith.addf %65, %141 : vector<64x32xf32>
    %cst_29 = arith.constant dense<0xFF800000> : vector<32xf32>
    %143 = vector.multi_reduction <maximumf>, %142, %cst_29 [0] : vector<64x32xf32> to vector<32xf32>
    %144 = vector.shape_cast %143 : vector<32xf32> to vector<1x32xf32>
    %145 = tpu.concatenate %134, %139, %144 in 1 : vector<1x32xf32>, vector<1x32xf32>, vector<1x32xf32> -> vector<1x96xf32>
    %146 = vector.extract_strided_slice %14 {offsets = [0, 5], sizes = [64, 1], strides = [1, 1]} : vector<64x32xf32> to vector<64x1xf32>
    %147 = vector.broadcast %146 : vector<64x1xf32> to vector<64x32xf32>
    %148 = arith.addf %63, %147 : vector<64x32xf32>
    %cst_30 = arith.constant dense<0xFF800000> : vector<32xf32>
    %149 = vector.multi_reduction <maximumf>, %148, %cst_30 [0] : vector<64x32xf32> to vector<32xf32>
    %150 = vector.shape_cast %149 : vector<32xf32> to vector<1x32xf32>
    %151 = vector.extract_strided_slice %14 {offsets = [0, 13], sizes = [64, 1], strides = [1, 1]} : vector<64x32xf32> to vector<64x1xf32>
    %152 = vector.broadcast %151 : vector<64x1xf32> to vector<64x32xf32>
    %153 = arith.addf %64, %152 : vector<64x32xf32>
    %cst_31 = arith.constant dense<0xFF800000> : vector<32xf32>
    %154 = vector.multi_reduction <maximumf>, %153, %cst_31 [0] : vector<64x32xf32> to vector<32xf32>
    %155 = vector.shape_cast %154 : vector<32xf32> to vector<1x32xf32>
    %156 = vector.extract_strided_slice %14 {offsets = [0, 21], sizes = [64, 1], strides = [1, 1]} : vector<64x32xf32> to vector<64x1xf32>
    %157 = vector.broadcast %156 : vector<64x1xf32> to vector<64x32xf32>
    %158 = arith.addf %65, %157 : vector<64x32xf32>
    %cst_32 = arith.constant dense<0xFF800000> : vector<32xf32>
    %159 = vector.multi_reduction <maximumf>, %158, %cst_32 [0] : vector<64x32xf32> to vector<32xf32>
    %160 = vector.shape_cast %159 : vector<32xf32> to vector<1x32xf32>
    %161 = tpu.concatenate %150, %155, %160 in 1 : vector<1x32xf32>, vector<1x32xf32>, vector<1x32xf32> -> vector<1x96xf32>
    %162 = vector.extract_strided_slice %14 {offsets = [0, 6], sizes = [64, 1], strides = [1, 1]} : vector<64x32xf32> to vector<64x1xf32>
    %163 = vector.broadcast %162 : vector<64x1xf32> to vector<64x32xf32>
    %164 = arith.addf %63, %163 : vector<64x32xf32>
    %cst_33 = arith.constant dense<0xFF800000> : vector<32xf32>
    %165 = vector.multi_reduction <maximumf>, %164, %cst_33 [0] : vector<64x32xf32> to vector<32xf32>
    %166 = vector.shape_cast %165 : vector<32xf32> to vector<1x32xf32>
    %167 = vector.extract_strided_slice %14 {offsets = [0, 14], sizes = [64, 1], strides = [1, 1]} : vector<64x32xf32> to vector<64x1xf32>
    %168 = vector.broadcast %167 : vector<64x1xf32> to vector<64x32xf32>
    %169 = arith.addf %64, %168 : vector<64x32xf32>
    %cst_34 = arith.constant dense<0xFF800000> : vector<32xf32>
    %170 = vector.multi_reduction <maximumf>, %169, %cst_34 [0] : vector<64x32xf32> to vector<32xf32>
    %171 = vector.shape_cast %170 : vector<32xf32> to vector<1x32xf32>
    %172 = vector.extract_strided_slice %14 {offsets = [0, 22], sizes = [64, 1], strides = [1, 1]} : vector<64x32xf32> to vector<64x1xf32>
    %173 = vector.broadcast %172 : vector<64x1xf32> to vector<64x32xf32>
    %174 = arith.addf %65, %173 : vector<64x32xf32>
    %cst_35 = arith.constant dense<0xFF800000> : vector<32xf32>
    %175 = vector.multi_reduction <maximumf>, %174, %cst_35 [0] : vector<64x32xf32> to vector<32xf32>
    %176 = vector.shape_cast %175 : vector<32xf32> to vector<1x32xf32>
    %177 = tpu.concatenate %166, %171, %176 in 1 : vector<1x32xf32>, vector<1x32xf32>, vector<1x32xf32> -> vector<1x96xf32>
    %178 = vector.extract_strided_slice %14 {offsets = [0, 7], sizes = [64, 1], strides = [1, 1]} : vector<64x32xf32> to vector<64x1xf32>
    %179 = vector.broadcast %178 : vector<64x1xf32> to vector<64x32xf32>
    %180 = arith.addf %63, %179 : vector<64x32xf32>
    %cst_36 = arith.constant dense<0xFF800000> : vector<32xf32>
    %181 = vector.multi_reduction <maximumf>, %180, %cst_36 [0] : vector<64x32xf32> to vector<32xf32>
    %182 = vector.shape_cast %181 : vector<32xf32> to vector<1x32xf32>
    %183 = vector.extract_strided_slice %14 {offsets = [0, 15], sizes = [64, 1], strides = [1, 1]} : vector<64x32xf32> to vector<64x1xf32>
    %184 = vector.broadcast %183 : vector<64x1xf32> to vector<64x32xf32>
    %185 = arith.addf %64, %184 : vector<64x32xf32>
    %cst_37 = arith.constant dense<0xFF800000> : vector<32xf32>
    %186 = vector.multi_reduction <maximumf>, %185, %cst_37 [0] : vector<64x32xf32> to vector<32xf32>
    %187 = vector.shape_cast %186 : vector<32xf32> to vector<1x32xf32>
    %188 = vector.extract_strided_slice %14 {offsets = [0, 23], sizes = [64, 1], strides = [1, 1]} : vector<64x32xf32> to vector<64x1xf32>
    %189 = vector.broadcast %188 : vector<64x1xf32> to vector<64x32xf32>
    %190 = arith.addf %65, %189 : vector<64x32xf32>
    %cst_38 = arith.constant dense<0xFF800000> : vector<32xf32>
    %191 = vector.multi_reduction <maximumf>, %190, %cst_38 [0] : vector<64x32xf32> to vector<32xf32>
    %192 = vector.shape_cast %191 : vector<32xf32> to vector<1x32xf32>
    %193 = tpu.concatenate %182, %187, %192 in 1 : vector<1x32xf32>, vector<1x32xf32>, vector<1x32xf32> -> vector<1x96xf32>
    %194 = tpu.concatenate %81, %97, %113, %129, %145, %161, %177, %193 in 0 : vector<1x96xf32>, vector<1x96xf32>, vector<1x96xf32>, vector<1x96xf32>, vector<1x96xf32>, vector<1x96xf32>, vector<1x96xf32>, vector<1x96xf32> -> vector<8x96xf32>
    %cst_39 = arith.constant dense<0.000000e+00> : vector<8x32xf32>
    %195 = tpu.matmul %194, %4, %cst_39 {dimension_numbers = #tpu.dot_dimension_numbers<[1], [0], [0], [1], [0, 0, 1, 1], [], []>} : vector<8x96xf32>, vector<96x32xf32>, vector<8x32xf32> -> vector<8x32xf32>
    %196 = vector.broadcast %8 : vector<1x32xf32> to vector<8x32xf32>
    %197 = arith.addf %195, %196 : vector<8x32xf32>
    %198 = math.tanh %197 : vector<8x32xf32>
    %cst_40 = arith.constant dense<0.000000e+00> : vector<1x8xf32>
    %199 = tpu.matmul %9, %198, %cst_40 {dimension_numbers = #tpu.dot_dimension_numbers<[1], [1], [0], [0], [0, 0, 1, 0], [], []>} : vector<1x32xf32>, vector<8x32xf32>, vector<1x8xf32> -> vector<1x8xf32>
    %200 = arith.addf %199, %16 : vector<1x8xf32>
    %cst_41 = arith.constant dense<0xFF800000> : vector<1xf32>
    %201 = vector.multi_reduction <maximumf>, %200, %cst_41 [1] : vector<1x8xf32> to vector<1xf32>
    %202 = vector.shape_cast %201 : vector<1xf32> to vector<1x1xf32>
    %203 = vector.broadcast %202 : vector<1x1xf32> to vector<1x8xf32>
    %204 = arith.subf %200, %203 : vector<1x8xf32>
    %205 = math.exp %204 : vector<1x8xf32>
    %cst_42 = arith.constant dense<0.000000e+00> : vector<1xf32>
    %206 = vector.multi_reduction <add>, %205, %cst_42 [1] : vector<1x8xf32> to vector<1xf32>
    %207 = vector.shape_cast %206 : vector<1xf32> to vector<1x1xf32>
    %208 = math.log %207 : vector<1x1xf32>
    %209 = arith.addf %202, %208 : vector<1x1xf32>
    %210 = vector.broadcast %209 : vector<1x1xf32> to vector<1x8xf32>
    %211 = arith.subf %200, %210 : vector<1x8xf32>
    %cst_43 = arith.constant -1.000000e+30 : f32
    %212 = vector.broadcast %cst_43 : f32 to vector<1x120xf32>
    %213 = tpu.concatenate %211, %212 in 1 : vector<1x8xf32>, vector<1x120xf32> -> vector<1x128xf32>
    %214 = vector.shape_cast %213 : vector<1x128xf32> to vector<1x128xf32>
    %215 = vector.broadcast %214 : vector<1x128xf32> to vector<8x128xf32>
    %c0_44 = arith.constant 0 : index
    %c0_45 = arith.constant 0 : index
    %c0_46 = arith.constant 0 : index
    %216 = vector.load %arg3[%c0_44, %c0_45, %c0_46] : memref<1x8x128xf32, #tpu.memory_space<vmem>>, vector<1x8x128xf32>
    %217 = vector.shape_cast %216 : vector<1x8x128xf32> to vector<8x128xf32>
    %218 = vector.shape_cast %215 : vector<8x128xf32> to vector<1x8x128xf32>
    tpu.vector_store %arg3[%c0_44, %c0_45, %c0_46], %218 {strides = array<i32>} : memref<1x8x128xf32, #tpu.memory_space<vmem>>, vector<1x8x128xf32>,
    return
  }
  func.func @transform_0(%arg0: i32) -> (i32, i32, i32) {
    %c0_i32 = arith.constant 0 : i32
    %c0_i32_0 = arith.constant 0 : i32
    %c0_i32_1 = arith.constant 0 : i32
    return %arg0, %c0_i32, %c0_i32_0 : i32, i32, i32
  }
  func.func @transform_1(%arg0: i32) -> (i32, i32) {
    %c0_i32 = arith.constant 0 : i32
    %c0_i32_0 = arith.constant 0 : i32
    %c0_i32_1 = arith.constant 0 : i32
    return %c0_i32, %c0_i32_0 : i32, i32
  }
  func.func @transform_2(%arg0: i32) -> (i32, i32, i32) {
    %c0_i32 = arith.constant 0 : i32
    %c0_i32_0 = arith.constant 0 : i32
    %c0_i32_1 = arith.constant 0 : i32
    return %arg0, %c0_i32, %c0_i32_0 : i32, i32, i32
  }
}

</mosaic_0001>

<bundles_post_ra>
// kernel: tpu_custom_call.1
= control target key start
LH: loop header
LB: loop body
LE: loop exit
PB: predicated region body
PF: predicated region fallthrough
CT: control target
= control target key end

     0   :  { %7 = vsyncpa [#allocation3], 0  ;;  %s6080_s0 = inlined_call_operand.vmem [shape: f32[4,104,32], index: 0, kind: input, shape index: {}]   ;;  %s6081_s1 = inlined_call_operand.vmem [shape: f32[240,128], index: 1, kind: input, shape index: {}]   ;;  %s6082_s2 = inlined_call_operand.hbm [shape: f32[4,8,128], index: 2, kind: output, shape index: {}]  }
   0x1   :  { %9 = vsyncpa [#allocation3 + $0x1], 0  ;;  %s3931_s9 = smov 0   ;;  %s3933_s10 = smov 0  }
   0x2   :  { %s3935_s11 = smov 0   ;;  %s3937_s12 = smov 0  }
   0x3 LB: > { %s3952_s13 = sadd.s32 4294967295, %s3883_s12   ;;  %s3191_s14 = sadd.s32 4294967294, %s3883_s12   ;;  %s3883_s12 = sphi %s3937_s12, %s6469_s12   ;;  %s3879_s11 = sphi %s3935_s11, %s6468_s11   ;;  %s3875_s10 = sphi %s3933_s10, %s6467_s10   ;;  %s3871_s9 = sphi %s3931_s9, %s6466_s9  }
   0x4   : > { %s3956_s15 = sadd.s32 1, %s3883_s12   ;;  %s69_s16 = sadd.s32 1, %s3879_s11 }
   0x5   : > { %s66_s17 = ssub.s32 %s3883_s12, %s3956_s15  ;;  %p79_p0 = scmp.ne.s32.totalorder %s3879_s11, %s3875_s10 }
   0x6   : > { %p67_p1 = scmp.eq.s32.totalorder %s66_s17, 0  ;;  %p80_p2 = scmp.eq.s32.totalorder %s3952_s13, 3 }
   0x7   : > { %p85_p3 = scmp.ne.s32.totalorder %s3875_s10, %s3871_s9  ;;  %p86_p4 = scmp.eq.s32.totalorder %s3191_s14, 3 }
   0x8   : > { %s3967_s18 = scalar_select %p67_p1, %s3879_s11, %s69_s16  }
   0x9   : > { %p3969_p5 = por %p80_p2, %p79_p0  ;;  %p3973_p6 = por %p86_p4, %p85_p3 }
   0xa   : > { %p3194_p7 = scmp.ge.s32.totalorder %s3883_s12, 1  ;;  %p115_p8 = scmp.lt.s32.totalorder %s3883_s12, 5 }
   0xc   : > { %p116_p9 = pnand %p3194_p7, %p115_p8 }
   0xe   : > { %119 = sbr.rel (%p116_p9) target bundleno = 2703 (0xa8f), region = 28 }
  0x13   : > { %p137_p10 = scmp.lt.s32.totalorder %s3952_s13, 3  ;;  %v154_v0 = vld [vmem:[%s6081_s1 + $0x60] sm:$0xff]  ;;  %v3885_v1 = vmov 31   ;;  %v153_v2 = vld [vmem:[%s6081_s1 + $0x58] sm:$0xff]  ;;  %v152_v3 = vld [vmem:[%s6081_s1 + $0x50] sm:$0xff]  ;;  %v197_v52 = vlaneseq  ;;  %vm271_vm0 = vcmask 850944  }
  0x14   : > { %3653 = vset.pattern.permute.xlu1 %v3885_v1  ;;  %3652 = vset.pattern.permute.xlu0 %v3885_v1  ;;  %v151_v4 = vld [vmem:[%s6081_s1 + $0x48] sm:$0xff]  ;;  %v150_v5 = vld [vmem:[%s6081_s1 + $0x40] sm:$0xff]  ;;  %v149_v18 = vld [vmem:[%s6081_s1 + $0x38] sm:$0xff]  ;;  %v6083_v56 = vmov 0.0   ;;  %vm437_vm13 = vcmask 261120   ;;  %vm1121_vm14 = vcmask 1046528  }
  0x15   : > { %s138_s25 = scalar_select %p137_p10, %s3952_s13, 3  ;;  %3380 = vmatprep.subr.mxu0 %v154_v0  ;;  %v148_v23 = vld [vmem:[%s6081_s1 + $0x30] sm:$0xff]  ;;  %v147_v26 = vld [vmem:[%s6081_s1 + $0x28] sm:$0xff]  ;;  %v146_v33 = vld [vmem:[%s6081_s1 + $0x20] sm:$0xff]  ;;  %v198_v53 = vand.u32 127, %v197_v52  ;;  %vm1140_vm15 = vcmask 1045504  }
  0x16   : > { %3381 = vmatpush3.msra.mxu0 %v154_v0  ;;  %v145_v38 = vld [vmem:[%s6081_s1 + $0x18] sm:$0xff]  ;;  %v144_v41 = vld [vmem:[%s6081_s1 + $0x10] sm:$0xff]  ;;  %v143_v46 = vld [vmem:[%s6081_s1 + $0x8] sm:$0xff]  ;;  %s3901_s4 = smov 32   ;;  %s3902_s6 = smov 64  }
  0x17   : > { %s3558_s28 = smul.u32 104, %s138_s25  ;;  %3382 = vmatprep.subr.mxu0 %v153_v2  ;;  %v142_v49 = vld [vmem:[%s6081_s1] sm:$0xff]  ;;  %v157_v51 = vld [vmem:[%s6081_s1 + $0x78] sm:$0xff]  ;;  %s3887_s25 = smov 96  }
  0x18   : > { %3383 = vmatpush3.msra.mxu0 %v153_v2  ;;  %v158_v50 = vld [vmem:[%s6081_s1 + $0x80] sm:$0xff]  ;;  %s134_s17 = sand.u32 1, %s3875_s10   ;;  %s3277_s21 = sshll.u32 %s3952_s13, 7 }
  0x19   : > { %s3996_s5 = scalar_lea.vmem %s6080_s0, %s3558_s28  ;;  %3384 = vmatprep.subr.mxu0 %v152_v3  ;;  %3424 = vmatprep.subr.mxu1 %v158_v50  ;;  %s3130_s26 = scalar_lea.hbm %s6082_s2, %s3277_s21 }
  0x1a   : > { %v4002_v6 = vld [vmem:[%s3996_s5 + $0x10] sm:$0xff]  ;;  %v4005_v7 = vld [vmem:[%s3996_s5] sm:$0xff]  ;;  %v4008_v8 = vld [vmem:[%s3996_s5 + $0x18] sm:$0xff]  ;;  %3385 = vmatpush3.msra.mxu0 %v152_v3  ;;  %3425 = vmatpush3.msra.mxu1 %v158_v50  ;;  %s3119_s27 = scalar_lea.sflag [#allocation3], %s134_s17  ;;  %s3915_s29 = smov [#allocation2]  }
  0x1b   : > { %v3563_v9 = vtrunc.f32 %v4002_v6  ;;  %v3559_v10 = vtrunc.f32 %v4005_v7  ;;  %v3565_v11 = vtrunc.f32 %v4008_v8  ;;  %v4014_v12 = vld [vmem:[%s3996_s5 + $0x8] sm:$0xff]  ;;  %3386 = vmatprep.subr.mxu0 %v151_v4  ;;  %v4021_v15 = vld [vmem:[%s3996_s5 + $0x20] sm:$0xff]  ;;  %v4032_v24 = vld [vmem:[%s3996_s5 + $0x38] sm:$0xff]  ;;  %3426 = vmatprep.subr.mxu1 %v157_v51  ;;  %s3827_s30 = sshll.u32 %s3915_s29, 4  ;;  %s3828_s30 = int_to_ptr.vmem [resolvable:$false] %s3827_s30 }
  0x1c   : > { %v3561_v13 = vtrunc.f32 %v4014_v12  ;;  %v4018_v14 = vld [vmem:[%s3996_s5 + $0x28] sm:$0xff]  ;;  %3387 = vmatpush3.msra.mxu0 %v151_v4  ;;  %v3567_v22 = vtrunc.f32 %v4021_v15  ;;  %v4035_v25 = vld [vmem:[%s3996_s5 + $0x30] sm:$0xff]  ;;  %v3573_v29 = vtrunc.f32 %v4032_v24  ;;  %v180_v32 = vld [vmem:[%s3996_s5 + $0x40] sm:$0xff]  ;;  %3427 = vmatpush3.msra.mxu1 %v157_v51  ;;  %s3829_s13 = scalar_lea.vmem %s3828_s30, 256 }
  0x1d   : > { %v3564_v16 = vcvt.f32.s32 %v3563_v9  ;;  %v3560_v17 = vcvt.f32.s32 %v3559_v10  ;;  %3388 = vmatprep.subr.mxu0 %v150_v5  ;;  %v3566_v19 = vcvt.f32.s32 %v3565_v11  ;;  %v3569_v21 = vtrunc.f32 %v4018_v14  ;;  %v181_v31 = vld [vmem:[%s3996_s5 + $0x48] sm:$0xff]  ;;  %v183_v39 = vld [vmem:[%s3996_s5 + $0x58] sm:$0xff]  ;;  %v182_v40 = vld [vmem:[%s3996_s5 + $0x50] sm:$0xff] }
  0x1e   : > { %3389 = vmatpush3.msra.mxu0 %v150_v5  ;;  %v3562_v20 = vcvt.f32.s32 %v3561_v13  ;;  %v3568_v28 = vcvt.f32.s32 %v3567_v22  ;;  %v3571_v30 = vtrunc.f32 %v4035_v25  ;;  %v3574_v34 = vcvt.f32.s32 %v3573_v29  ;;  %v155_v22 = vld [vmem:[%s6081_s1 + $0x68] sm:$0xff] }
  0x1f   : > { %206 = vperm.xlu1 %3653, %v3564_v16   ;;  %200 = vperm.xlu0 %3652, %v3560_v17   ;;  %v3570_v27 = vcvt.f32.s32 %v3569_v21  ;;  %v3577_v36 = vtrunc.f32 %v181_v31  ;;  %v3575_v37 = vtrunc.f32 %v180_v32  ;;  %v3581_v44 = vtrunc.f32 %v183_v39  ;;  %v156_v21 = vld [vmem:[%s6081_s1 + $0x70] sm:$0xff] }
  0x20   : > { %3390 = vmatprep.subr.mxu0 %v149_v18  ;;  %v3572_v35 = vcvt.f32.s32 %v3571_v30  ;;  %v3579_v45 = vtrunc.f32 %v182_v40  ;;  %3428 = vmatprep.subr.mxu1 %v156_v21 }
  0x21   : > { %3391 = vmatpush3.msra.mxu0 %v149_v18  ;;  %v3578_v42 = vcvt.f32.s32 %v3577_v36  ;;  %v3576_v43 = vcvt.f32.s32 %v3575_v37  ;;  %v3582_v47 = vcvt.f32.s32 %v3581_v44  ;;  %3429 = vmatpush3.msra.mxu1 %v156_v21 }
  0x22   : > { %3392 = vmatprep.subr.mxu0 %v148_v23  ;;  %v3580_v48 = vcvt.f32.s32 %v3579_v45  ;;  %3430 = vmatprep.subr.mxu1 %v155_v22  ;;  %v4111_v45 = vshrl.u32 %v197_v52, 7 }
  0x23   : > { %209 = vperm.xlu1 %3653, %v3566_v19   ;;  %203 = vperm.xlu0 %3652, %v3562_v20  }
  0x24   : > { %3393 = vmatpush3.msra.mxu0 %v148_v23  ;;  %3431 = vmatpush3.msra.mxu1 %v155_v22  ;;  %6091 = vst [vmem:[#allocation5_spill] sm:$0xff] %v4111_v45 }
  0x25   : > { %3394 = vmatprep.subr.mxu0 %v147_v26 }
  0x26   : > { %3395 = vmatpush3.msra.mxu0 %v147_v26 }
  0x27   : > { %215 = vperm.xlu1 %3653, %v3570_v27   ;;  %212 = vperm.xlu0 %3652, %v3568_v28  }
  0x28   : > { %3396 = vmatprep.subr.mxu0 %v146_v33 }
  0x29   : > { %3397 = vmatpush3.msra.mxu0 %v146_v33 }
  0x2a   : > { %3398 = vmatprep.subr.mxu0 %v145_v38 }
  0x2b   : > { %221 = vperm.xlu1 %3653, %v3574_v34   ;;  %218 = vperm.xlu0 %3652, %v3572_v35  }
  0x2c   : > { %3399 = vmatpush3.msra.mxu0 %v145_v38 }
  0x2d   : > { %3400 = vmatprep.subr.mxu0 %v144_v41 }
  0x2e   : > { %3401 = vmatpush3.msra.mxu0 %v144_v41 }
  0x2f   : > { %227 = vperm.xlu1 %3653, %v3578_v42   ;;  %224 = vperm.xlu0 %3652, %v3576_v43  }
  0x30   : > { %3402 = vmatprep.subr.mxu0 %v143_v46 }
  0x31   : > { %3403 = vmatpush3.msra.mxu0 %v143_v46 }
  0x32   : > { %3404 = vmatprep.subr.mxu0 %v142_v49 }
  0x33   : > { %233 = vperm.xlu1 %3653, %v3582_v47   ;;  %230 = vperm.xlu0 %3652, %v3580_v48   ;;  %v4114_v48 = vsub.s32 0, %v4111_v45 }
  0x34   : > { %3405 = vmatpush3.msra.mxu0 %v142_v49  ;;  %v171_v49 = vld [vmem:[%s6081_s1 + $0xe8] sm:$0xff] }
  0x35   : > { %6092 = vst [vmem:[#allocation6_spill] sm:$0xff] %v4114_v48  ;;  %v436_v51 = vrot.slane %v171_v49, %v4114_v48 }
  0x9a   : > { %v207_v54 = vpop.permute.xlu1 %206  ;;  %v201_v55 = vpop.permute.xlu0 %200 }
  0x9b   : > { %vm235_vm1 = vcmp.eq.s32.totalorder %v198_v53, %v201_v55  ;;  %vm237_vm2 = vcmp.eq.s32.totalorder %v198_v53, %v207_v54 }
  0x9c   : > { %v3197_v57 = vsel %vm235_vm1, 1.0, %v6083_v56  ;;  %v3199_v60 = vsel %vm237_vm2, 1.0, %v6083_v56  ;;  %vm1230_vm1 = vcmask 785408   ;;  %vm3914_vm2 = vmmov 0  }
  0x9d   : > { %3406 = vmatprep.mubr.msk.f32.mxu0 %vm271_vm0, %v3197_v57 }
  0x9e   : > { %v210_v58 = vpop.permute.xlu1 %209  ;;  %v204_v59 = vpop.permute.xlu0 %203 }
  0x9f   : > { %vm236_vm3 = vcmp.eq.s32.totalorder %v198_v53, %v204_v59  ;;  %vm238_vm4 = vcmp.eq.s32.totalorder %v198_v53, %v210_v58 }
  0xa0   : > { %v3198_v61 = vsel %vm236_vm3, 1.0, %v6083_v56  ;;  %v3200_v0 = vsel %vm238_vm4, 1.0, %v6083_v56  ;;  %vm1477_vm3 = vcmask 523520   ;;  %vm1539_vm4 = vcmask 785920  }
  0xa1   : > { %3407 = vmatmul.mubr.msk.f32.vlgmr.msra.gmra.mxu0 %vm271_vm0, %v3198_v61 }
  0xa2   : > { %v216_v62 = vpop.permute.xlu1 %215  ;;  %3409 = vmatprep.mubr.msk.f32.mxu0 %vm271_vm0, %v3199_v60  ;;  %v213_v63 = vpop.permute.xlu0 %212 }
  0xa3   : > { %vm239_vm5 = vcmp.eq.s32.totalorder %v198_v53, %v213_v63  ;;  %vm240_vm6 = vcmp.eq.s32.totalorder %v198_v53, %v216_v62 }
  0xa4   : > { %v3201_v1 = vsel %vm239_vm5, 1.0, %v6083_v56  ;;  %v3202_v4 = vsel %vm240_vm6, 1.0, %v6083_v56  ;;  %vm2879_vm5 = vcmask 1040384   ;;  %vm2881_vm6 = vcmask 1041408  }
  0xa5   : > { %3410 = vmatmul.mubr.msk.f32.gmra.mxu0 %vm271_vm0, %v3200_v0 }
  0xa6   : > { %v222_v2 = vpop.permute.xlu1 %221  ;;  %3412 = vmatprep.mubr.msk.f32.mxu0 %vm271_vm0, %v3201_v1  ;;  %v219_v3 = vpop.permute.xlu0 %218 }
  0xa7   : > { %vm241_vm7 = vcmp.eq.s32.totalorder %v198_v53, %v219_v3  ;;  %vm242_vm8 = vcmp.eq.s32.totalorder %v198_v53, %v222_v2 }
  0xa8   : > { %v3203_v5 = vsel %vm241_vm7, 1.0, %v6083_v56  ;;  %v3204_v11 = vsel %vm242_vm8, 1.0, %v6083_v56  ;;  %vm2883_vm7 = vcmask 1042432   ;;  %vm2885_vm8 = vcmask 1043456  }
  0xa9   : > { %3413 = vmatmul.mubr.msk.f32.gmra.mxu0 %vm271_vm0, %v3202_v4 }
  0xaa   : > { %v228_v9 = vpop.permute.xlu1 %227  ;;  %3415 = vmatprep.mubr.msk.f32.mxu0 %vm271_vm0, %v3203_v5  ;;  %v225_v10 = vpop.permute.xlu0 %224 }
  0xab   : > { %vm243_vm9 = vcmp.eq.s32.totalorder %v198_v53, %v225_v10  ;;  %vm244_vm10 = vcmp.eq.s32.totalorder %v198_v53, %v228_v9 }
  0xac   : > { %v3205_v13 = vsel %vm243_vm9, 1.0, %v6083_v56  ;;  %v3206_v18 = vsel %vm244_vm10, 1.0, %v6083_v56  ;;  %vm2887_vm9 = vcmask 1044480   ;;  %vm3097_vm10 = vcmask 57344  }
  0xad   : > { %3416 = vmatmul.mubr.msk.f32.gmra.mxu0 %vm271_vm0, %v3204_v11 }
  0xae   : > { %v234_v16 = vpop.permute.xlu1 %233  ;;  %3418 = vmatprep.mubr.msk.f32.mxu0 %vm271_vm0, %v3205_v13  ;;  %v231_v17 = vpop.permute.xlu0 %230 }
  0xaf   : > { %vm245_vm11 = vcmp.eq.s32.totalorder %v198_v53, %v231_v17  ;;  %vm246_vm12 = vcmp.eq.s32.totalorder %v198_v53, %v234_v16 }
  0xb0   : > { %v3207_v19 = vsel %vm245_vm11, 1.0, %v6083_v56  ;;  %v3208_v20 = vsel %vm246_vm12, 1.0, %v6083_v56  ;;  %vm3111_vm11 = vcmask 64512  }
  0xb1   : > { %3419 = vmatmul.mubr.msk.f32.gmra.mxu0 %vm271_vm0, %v3206_v18 }
  0xb2   : > { %3421 = vmatprep.mubr.msk.f32.mxu0 %vm271_vm0, %v3207_v19 }
  0xb5   : > { %3422 = vmatmul.mubr.msk.f32.gmra.mxu0 %vm271_vm0, %v3208_v20  ;;  %vm1217_vm0 = vcmask 523264  }
 0x161   : > { %v3408_v23 = vpop.f32.mrf.mxu0 }
 0x163   : > { %v374_v26 = vpop.f32.mrf.mxu0 }
 0x164   : > { %3432 = vmatprep.mubr.msk.f32.mxu1 %vm437_vm13, %v374_v26 }
 0x165   : > { %v3411_v27 = vpop.f32.mrf.mxu0  ;;  %3433 = vmatmul.mubr.msk.f32.vlgmr.msra.gmra.mxu1 %vm437_vm13, %v3408_v23 }
 0x167   : > { %v384_v28 = vpop.f32.mrf.mxu0 }
 0x168   : > { %3435 = vmatprep.mubr.msk.f32.mxu1 %vm437_vm13, %v384_v28 }
 0x169   : > { %v3414_v29 = vpop.f32.mrf.mxu0  ;;  %3436 = vmatmul.mubr.msk.f32.gmra.mxu1 %vm437_vm13, %v3411_v27 }
 0x16b   : > { %v394_v30 = vpop.f32.mrf.mxu0 }
 0x16c   : > { %3438 = vmatprep.mubr.msk.f32.mxu1 %vm437_vm13, %v394_v30 }
 0x16d   : > { %v3417_v31 = vpop.f32.mrf.mxu0  ;;  %3439 = vmatmul.mubr.msk.f32.gmra.mxu1 %vm437_vm13, %v3414_v29 }
 0x16f   : > { %v404_v32 = vpop.f32.mrf.mxu0 }
 0x170   : > { %3441 = vmatprep.mubr.msk.f32.mxu1 %vm437_vm13, %v404_v32 }
 0x171   : > { %v3420_v33 = vpop.f32.mrf.mxu0  ;;  %3442 = vmatmul.mubr.msk.f32.gmra.mxu1 %vm437_vm13, %v3417_v31 }
 0x173   : > { %v414_v34 = vpop.f32.mrf.mxu0 }
 0x174   : > { %3444 = vmatprep.mubr.msk.f32.mxu1 %vm437_vm13, %v414_v34 }
 0x175   : > { %v3423_v35 = vpop.f32.mrf.mxu0  ;;  %3445 = vmatmul.mubr.msk.f32.gmra.mxu1 %vm437_vm13, %v3420_v33 }
 0x177   : > { %v424_v36 = vpop.f32.mrf.mxu0 }
 0x178   : > { %3447 = vmatprep.mubr.msk.f32.mxu1 %vm437_vm13, %v424_v36 }
 0x179   : > { %3448 = vmatmul.mubr.msk.f32.gmra.mxu1 %vm437_vm13, %v3423_v35 }
 0x225   : > { %v3434_v37 = vpop.f32.mrf.mxu1 }
 0x226   : > { %v546_v59 = vadd.f32 %v3434_v37, %v436_v51 }
 0x227   : > { %v540_v38 = vpop.f32.mrf.mxu1 }
 0x228   : > { %v541_v58 = vadd.f32 %v540_v38, %v436_v51  ;;  %v3234_v27 = vmul.f32 -1.442695, %v546_v59 }
 0x229   : > { %v3437_v39 = vpop.f32.mrf.mxu1 }
 0x22a   : > { %v556_v61 = vadd.f32 %v3437_v39, %v436_v51  ;;  %v3233_v23 = vmul.f32 -1.442695, %v541_v58 }
 0x22b   : > { %v550_v40 = vpop.f32.mrf.mxu1 }
 0x22c   : > { %v551_v60 = vadd.f32 %v550_v40, %v436_v51  ;;  %v3236_v30 = vmul.f32 -1.442695, %v556_v61 }
 0x22d   : > { %v3440_v41 = vpop.f32.mrf.mxu1 }
 0x22e   : > { %v566_v0 = vadd.f32 %v3440_v41, %v436_v51  ;;  %v3235_v29 = vmul.f32 -1.442695, %v551_v60 }
 0x22f   : > { %v560_v42 = vpop.f32.mrf.mxu1 }
 0x230   : > { %v561_v62 = vadd.f32 %v560_v42, %v436_v51  ;;  %v3238_v35 = vmul.f32 -1.442695, %v566_v0 }
 0x231   : > { %v3443_v43 = vpop.f32.mrf.mxu1 }
 0x232   : > { %v576_v5 = vadd.f32 %v3443_v43, %v436_v51  ;;  %v3237_v33 = vmul.f32 -1.442695, %v561_v62 }
 0x233   : > { %v570_v44 = vpop.f32.mrf.mxu1 }
 0x234   : > { %v571_v2 = vadd.f32 %v570_v44, %v436_v51  ;;  %v3240_v41 = vmul.f32 -1.442695, %v576_v5 }
 0x235   : > { %v3446_v46 = vpop.f32.mrf.mxu1 }
 0x236   : > { %v586_v55 = vadd.f32 %v3446_v46, %v436_v51  ;;  %v3239_v38 = vmul.f32 -1.442695, %v571_v2 }
 0x237   : > { %v580_v47 = vpop.f32.mrf.mxu1 }
 0x238   : > { %v581_v52 = vadd.f32 %v580_v47, %v436_v51  ;;  %v3242_v22 = vmul.f32 -1.442695, %v586_v55 }
 0x239   : > { %v3449_v50 = vpop.f32.mrf.mxu1 }
 0x23a   : > { %v596_v53 = vadd.f32 %v3449_v50, %v436_v51  ;;  %v3241_v26 = vmul.f32 -1.442695, %v581_v52 }
 0x23b   : > { %v590_v54 = vpop.f32.mrf.mxu1 }
 0x23c   : > { %3702 = vtanh.f32 %v596_v53  ;;  %v591_v57 = vadd.f32 %v590_v54, %v436_v51  ;;  %v3244_v20 = vmul.f32 -1.442695, %v596_v53 }
 0x23d   : > { %3704 = vtanh.f32 %v586_v55 }
 0x23e   : > { %3706 = vtanh.f32 %v591_v57  ;;  %v3243_v21 = vmul.f32 -1.442695, %v591_v57 }
 0x23f   : > { %3708 = vtanh.f32 %v541_v58 }
 0x240   : > { %3710 = vtanh.f32 %v581_v52 }
 0x241   : > { %3712 = vtanh.f32 %v546_v59 }
 0x242   : > { %3714 = vtanh.f32 %v551_v60 }
 0x243   : > { %3716 = vtanh.f32 %v556_v61 }
 0x244   : > { %3718 = vtanh.f32 %v561_v62 }
 0x245   : > { %3720 = vtanh.f32 %v566_v0 }
 0x246   : > { %3722 = vtanh.f32 %v571_v2 }
 0x247   : > { %3724 = vtanh.f32 %v576_v5 }
 0x248   : > { %3726 = vpow2.f32 %v3244_v20 }
 0x249   : > { %v3703_v63 = vpop.eup %3702  ;;  %3728 = vpow2.f32 %v3243_v21 }
 0x24a   : > { %717 = vrot.lane.b32.xlu0 %v3703_v63, %s3887_s25  ;;  %v3705_v1 = vpop.eup %3704  ;;  %3730 = vpow2.f32 %v3242_v22 }
 0x24b   : > { %v3707_v3 = vpop.eup %3706  ;;  %3732 = vpow2.f32 %v3233_v23 }
 0x24c   : > { %715 = vrot.lane.b32.xlu1 %v3707_v3, %s3887_s25  ;;  %v3709_v4 = vpop.eup %3708  ;;  %3734 = vpow2.f32 %v3241_v26 }
 0x24d   : > { %v3711_v9 = vpop.eup %3710  ;;  %3736 = vpow2.f32 %v3234_v27 }
 0x24e   : > { %713 = vrot.lane.b32.xlu0 %v3705_v1, %s3887_s25  ;;  %v3713_v10 = vpop.eup %3712  ;;  %3738 = vpow2.f32 %v3235_v29 }
 0x24f   : > { %v3715_v11 = vpop.eup %3714  ;;  %3740 = vpow2.f32 %v3236_v30 }
 0x250   : > { %711 = vrot.lane.b32.xlu1 %v3711_v9, %s3887_s25  ;;  %v3717_v13 = vpop.eup %3716 }
 0x251   : > { %v3719_v16 = vpop.eup %3718 }
 0x252   : > { %695 = vrot.lane.b32.xlu0 %v3709_v4, %s3887_s25  ;;  %v3721_v17 = vpop.eup %3720 }
 0x253   : > { %v3723_v18 = vpop.eup %3722 }
 0x254   : > { %697 = vrot.lane.b32.xlu1 %v3713_v10, %s3887_s25  ;;  %v3725_v19 = vpop.eup %3724 }
 0x255   : > { %v3727_v28 = vpop.eup %3726 }
 0x256   : > { %699 = vrot.lane.b32.xlu0 %v3715_v11, %s3887_s25  ;;  %v646_v31 = vadd.f32 1.0, %v3727_v28  ;;  %v3729_v32 = vpop.eup %3728 }
 0x257   : > { %v3731_v34 = vpop.eup %3730  ;;  %v645_v36 = vadd.f32 1.0, %v3729_v32 }
 0x258   : > { %701 = vrot.lane.b32.xlu1 %v3717_v13, %s3887_s25  ;;  %3742 = vrcp.f32 %v646_v31  ;;  %v3733_v37 = vpop.eup %3732  ;;  %v644_v39 = vadd.f32 1.0, %v3731_v34 }
 0x259   : > { %3744 = vpow2.f32 %v3237_v33  ;;  %v3735_v40 = vpop.eup %3734  ;;  %v635_v42 = vadd.f32 1.0, %v3733_v37 }
 0x25a   : > { %703 = vrot.lane.b32.xlu0 %v3719_v16, %s3887_s25  ;;  %3746 = vpow2.f32 %v3238_v35  ;;  %v643_v43 = vadd.f32 1.0, %v3735_v40  ;;  %v3737_v44 = vpop.eup %3736 }
 0x25b   : > { %3748 = vrcp.f32 %v645_v36  ;;  %v3739_v46 = vpop.eup %3738  ;;  %v636_v49 = vadd.f32 1.0, %v3737_v44 }
 0x25c   : > { %705 = vrot.lane.b32.xlu1 %v3721_v17, %s3887_s25  ;;  %3750 = vpow2.f32 %v3239_v38  ;;  %v3741_v47 = vpop.eup %3740  ;;  %v637_v51 = vadd.f32 1.0, %v3739_v46 }
 0x25d   : > { %3752 = vrcp.f32 %v644_v39  ;;  %v638_v58 = vadd.f32 1.0, %v3741_v47 }
 0x25e   : > { %707 = vrot.lane.b32.xlu0 %v3723_v18, %s3887_s25  ;;  %3754 = vpow2.f32 %v3240_v41  ;;  %v184_v41 = vld [vmem:[%s3996_s5 + $0x60] sm:$0xff] }
 0x25f   : > { %3756 = vrcp.f32 %v635_v42  ;;  %v746_v42 = vrot.slane %v184_v41, %v4114_v48 }
 0x260   : > { %709 = vrot.lane.b32.xlu1 %v3725_v19, %s3887_s25  ;;  %3758 = vrcp.f32 %v643_v43 }
 0x261   : > { %3760 = vrcp.f32 %v636_v49 }
 0x262   : > { %3762 = vrcp.f32 %v637_v51 }
 0x263   : > { %3764 = vrcp.f32 %v638_v58 }
 0x265   : > { %v3743_v50 = vpop.eup %3742 }
 0x266   : > { %v3745_v54 = vpop.eup %3744 }
 0x267   : > { %v3747_v57 = vpop.eup %3746  ;;  %v639_v59 = vadd.f32 1.0, %v3745_v54 }
 0x268   : > { %v3749_v52 = vpop.eup %3748  ;;  %v640_v2 = vadd.f32 1.0, %v3747_v57 }
 0x269   : > { %v3751_v62 = vpop.eup %3750  ;;  %3766 = vrcp.f32 %v639_v59 }
 0x26a   : > { %v3753_v0 = vpop.eup %3752  ;;  %v641_v5 = vadd.f32 1.0, %v3751_v62  ;;  %3768 = vrcp.f32 %v640_v2 }
 0x26b   : > { %v3755_v1 = vpop.eup %3754 }
 0x26c   : > { %v3757_v4 = vpop.eup %3756  ;;  %v642_v16 = vadd.f32 1.0, %v3755_v1  ;;  %3770 = vrcp.f32 %v641_v5 }
 0x26d   : > { %v3759_v13 = vpop.eup %3758 }
 0x26e   : > { %3772 = vrcp.f32 %v642_v16  ;;  %v3761_v20 = vpop.eup %3760 }
 0x26f   : > { %v3763_v22 = vpop.eup %3762 }
 0x270   : > { %v3765_v28 = vpop.eup %3764 }
 0x276   : > { %v3767_v30 = vpop.eup %3766 }
 0x277   : > { %v3769_v34 = vpop.eup %3768 }
 0x279   : > { %v3771_v35 = vpop.eup %3770 }
 0x27b   : > { %v3773_v39 = vpop.eup %3772 }
 0x2bc   : > { %v718_v53 = vpop.permute.xlu0 %717 }
 0x2bd   : > { %v742_v55 = vmul.f32 %v3743_v50, %v718_v53 }
 0x2be   : > { %v716_v60 = vpop.permute.xlu1 %715 }
 0x2bf   : > { %3450 = vmatprep.subr.msk.mxu1 %vm437_vm13, %v742_v55  ;;  %v741_v63 = vmul.f32 %v3749_v52, %v716_v60 }
 0x2c0   : > { %v714_v61 = vpop.permute.xlu0 %713  ;;  %3451 = vmatpush3.xpose.msk.msra.mxu1 %vm437_vm13, %v742_v55 }
 0x2c1   : > { %v740_v3 = vmul.f32 %v3753_v0, %v714_v61  ;;  %3452 = vmatprep.subr.msk.mxu1 %vm437_vm13, %v741_v63 }
 0x2c2   : > { %v712_v9 = vpop.permute.xlu1 %711 }
 0x2c3   : > { %v739_v17 = vmul.f32 %v3759_v13, %v712_v9  ;;  %v3888_v9 = vmov 0  }
 0x2c4   : > { %v696_v10 = vpop.permute.xlu0 %695  ;;  %3453 = vmatpush3.xpose.msk.msra.mxu1 %vm437_vm13, %v741_v63  ;;  %3655 = vset.pattern.permute.xlu1 %v3888_v9 }
 0x2c5   : > { %v4136_v11 = vmul.f32 %v3757_v4, %v696_v10  ;;  %3454 = vmatprep.subr.msk.mxu1 %vm437_vm13, %v740_v3  ;;  %3654 = vset.pattern.permute.xlu0 %v3888_v9  ;;  %v3893_v9 = vmov 17  }
 0x2c6   : > { %v698_v18 = vpop.permute.xlu1 %697 }
 0x2c7   : > { %3458 = vmatprep.mubr.msk.f32.mxu1 %vm437_vm13, %v4136_v11  ;;  %v4144_v23 = vmul.f32 %v3761_v20, %v698_v18 }
 0x2c8   : > { %v700_v19 = vpop.permute.xlu0 %699  ;;  %3455 = vmatpush3.xpose.msk.msra.mxu1 %vm437_vm13, %v740_v3 }
 0x2c9   : > { %3456 = vmatprep.subr.msk.mxu1 %vm437_vm13, %v739_v17  ;;  %v4146_v27 = vmul.f32 %v3763_v22, %v700_v19 }
 0x2ca   : > { %v702_v21 = vpop.permute.xlu1 %701 }
 0x2cb   : > { %v4152_v31 = vmul.f32 %v3765_v28, %v702_v21 }
 0x2cc   : > { %3457 = vmatpush3.xpose.msk.msra.mxu1 %vm437_vm13, %v739_v17  ;;  %v704_v26 = vpop.permute.xlu0 %703 }
 0x2cd   : > { %3470 = vmatprep.subr.mxu1 %v742_v55  ;;  %v4154_v32 = vmul.f32 %v3767_v30, %v704_v26 }
 0x2ce   : > { %v706_v29 = vpop.permute.xlu1 %705 }
 0x2cf   : > { %3459 = vmatmul.mubr.msk.f32.vlgmr.msra.gmra.mxu1 %vm437_vm13, %v4144_v23  ;;  %v4160_v36 = vmul.f32 %v3769_v34, %v706_v29 }
 0x2d0   : > { %3461 = vmatprep.mubr.msk.f32.mxu1 %vm437_vm13, %v4146_v27  ;;  %3471 = vmatpush3.msra.mxu1 %v742_v55  ;;  %v708_v33 = vpop.permute.xlu0 %707 }
 0x2d1   : > { %3472 = vmatprep.subr.mxu1 %v741_v63  ;;  %v4162_v37 = vmul.f32 %v3771_v35, %v708_v33 }
 0x2d2   : > { %3473 = vmatpush3.msra.mxu1 %v741_v63  ;;  %v710_v38 = vpop.permute.xlu1 %709 }
 0x2d3   : > { %3462 = vmatmul.mubr.msk.f32.gmra.mxu1 %vm437_vm13, %v4152_v31  ;;  %3474 = vmatprep.subr.mxu1 %v740_v3  ;;  %v4169_v40 = vmul.f32 %v3773_v39, %v710_v38 }
 0x2d4   : > { %3464 = vmatprep.mubr.msk.f32.mxu1 %vm437_vm13, %v4154_v32  ;;  %3475 = vmatpush3.msra.mxu1 %v740_v3 }
 0x2d5   : > { %3476 = vmatprep.subr.mxu1 %v739_v17 }
 0x2d6   : > { %3477 = vmatpush3.msra.mxu1 %v739_v17 }
 0x2d7   : > { %3465 = vmatmul.mubr.msk.f32.gmra.mxu1 %vm437_vm13, %v4160_v36  ;;  %3526 = vmatprep.subr.mxu1 %v6083_v56 }
 0x2d8   : > { %3467 = vmatprep.mubr.msk.f32.mxu1 %vm437_vm13, %v4162_v37 }
 0x2db   : > { %3468 = vmatmul.mubr.msk.f32.gmra.mxu1 %vm437_vm13, %v4169_v40 }
 0x38f   : > { %v3460_v43 = vpop.f32.mrf.mxu1 }
 0x390   : > { %v855_v44 = vadd.f32 %v3460_v43, %v746_v42 }
 0x391   : > { %v849_v46 = vpop.f32.mrf.mxu1 }
 0x392   : > { %v850_v47 = vadd.f32 %v849_v46, %v746_v42  ;;  %v891_v49 = vsel %vm437_vm13, %v855_v44, -inf }
 0x393   : > { %892 = vmax.xlane.f32.xlu1 %v891_v49  ;;  %v3463_v50 = vpop.f32.mrf.mxu1 }
 0x394   : > { %v888_v51 = vsel %vm437_vm13, %v850_v47, -inf  ;;  %v865_v57 = vadd.f32 %v3463_v50, %v746_v42 }
 0x395   : > { %v859_v53 = vpop.f32.mrf.mxu1  ;;  %889 = vmax.xlane.f32.xlu0 %v888_v51 }
 0x396   : > { %v860_v54 = vadd.f32 %v859_v53, %v746_v42  ;;  %v897_v63 = vsel %vm437_vm13, %v865_v57, -inf }
 0x397   : > { %v3466_v55 = vpop.f32.mrf.mxu1 }
 0x398   : > { %v894_v58 = vsel %vm437_vm13, %v860_v54, -inf  ;;  %v875_v61 = vadd.f32 %v3466_v55, %v746_v42 }
 0x399   : > { %v869_v52 = vpop.f32.mrf.mxu1  ;;  %895 = vmax.xlane.f32.xlu0 %v894_v58 }
 0x39a   : > { %v870_v59 = vadd.f32 %v869_v52, %v746_v42  ;;  %v903_v4 = vsel %vm437_vm13, %v875_v61, -inf }
 0x39b   : > { %v3469_v60 = vpop.f32.mrf.mxu1 }
 0x39c   : > { %v900_v62 = vsel %vm437_vm13, %v870_v59, -inf  ;;  %v885_v2 = vadd.f32 %v3469_v60, %v746_v42 }
 0x39d   : > { %v879_v0 = vpop.f32.mrf.mxu1  ;;  %901 = vmax.xlane.f32.xlu1 %v900_v62  ;;  %898 = vmax.xlane.f32.xlu0 %v897_v63 }
 0x39e   : > { %v4180_v1 = vadd.f32 %v879_v0, %v746_v42  ;;  %v909_v5 = vsel %vm437_vm13, %v885_v2, -inf  ;;  %v3889_v0 = vmov 8  }
 0x3a0   : > { %v906_v3 = vsel %vm437_vm13, %v4180_v1, -inf }
 0x3a1   : > { %907 = vmax.xlane.f32.xlu1 %v906_v3  ;;  %904 = vmax.xlane.f32.xlu0 %v903_v4  ;;  %v3891_v4 = vmov 1  }
 0x3a5   : > { %910 = vmax.xlane.f32.xlu0 %v909_v5  ;;  %v3892_v5 = vmov 9  }
 0x41c   : > { %v893_v10 = vpop.xlane.xlu1 %892 }
 0x41d   : > { %v913_v13 = vsub.f32 %v855_v44, %v893_v10  ;;  %v3894_v10 = vmov 2  }
 0x41e   : > { %v890_v16 = vpop.xlane.xlu0 %889 }
 0x41f   : > { %v922_v17 = vmul.f32 1.442695, %v913_v13  ;;  %v912_v18 = vsub.f32 %v850_v47, %v890_v16 }
 0x421   : > { %3774 = vpow2.f32 %v922_v17  ;;  %v920_v19 = vmul.f32 1.442695, %v912_v18 }
 0x422   : > { %v896_v20 = vpop.xlane.xlu0 %895 }
 0x423   : > { %3776 = vpow2.f32 %v920_v19  ;;  %v914_v21 = vsub.f32 %v860_v54, %v896_v20 }
 0x425   : > { %v924_v22 = vmul.f32 1.442695, %v914_v21 }
 0x426   : > { %v902_v26 = vpop.xlane.xlu1 %901  ;;  %v899_v28 = vpop.xlane.xlu0 %898 }
 0x427   : > { %3778 = vpow2.f32 %v924_v22  ;;  %v916_v29 = vsub.f32 %v870_v59, %v902_v26  ;;  %v915_v30 = vsub.f32 %v865_v57, %v899_v28  ;;  %v4283_v26 = vld [vmem:[%s3996_s5 + $0x20] sm:$0xff] }
 0x429   : > { %v928_v33 = vmul.f32 1.442695, %v916_v29  ;;  %v926_v34 = vmul.f32 1.442695, %v915_v30  ;;  %v3896_v29 = vmov 18  }
 0x42a   : > { %v905_v35 = vpop.xlane.xlu0 %904 }
 0x42b   : > { %3780 = vpow2.f32 %v928_v33  ;;  %v917_v38 = vsub.f32 %v875_v61, %v905_v35  ;;  %v908_v61 = vpop.xlane.xlu1 %907  ;;  %v4294_v35 = vld [vmem:[%s3996_s5 + $0x30] sm:$0xff] }
 0x42c   : > { %3782 = vpow2.f32 %v926_v34  ;;  %v918_v62 = vsub.f32 %v4180_v1, %v908_v61  ;;  %v3890_v1 = vmov 16   ;;  %v4289_v34 = vld [vmem:[%s3996_s5] sm:$0xff] }
 0x42d   : > { %v930_v39 = vmul.f32 1.442695, %v917_v38 }
 0x42e   : > { %v4186_v41 = vpop.eup %3774  ;;  %v911_v42 = vpop.xlane.xlu0 %910  ;;  %v932_v63 = vmul.f32 1.442695, %v918_v62 }
 0x42f   : > { %v919_v43 = vsub.f32 %v885_v2, %v911_v42  ;;  %v939_v44 = vsel %vm437_vm13, %v4186_v41, 0.0  ;;  %3784 = vpow2.f32 %v930_v39  ;;  %v4300_v39 = vld [vmem:[%s3996_s5 + $0x18] sm:$0xff]  ;;  %v4308_v42 = vld [vmem:[%s3996_s5 + $0x28] sm:$0xff] }
 0x430   : > { %v4190_v46 = vpop.eup %3776  ;;  %940 = vadd.xlane.f32.xlu0 %v939_v44  ;;  %v3897_v44 = vmov 3  }
 0x431   : > { %v934_v47 = vmul.f32 1.442695, %v919_v43  ;;  %v936_v49 = vsel %vm437_vm13, %v4190_v46, 0.0  ;;  %v4313_v43 = vld [vmem:[%s3996_s5 + $0x38] sm:$0xff] }
 0x432   : > { %937 = vadd.xlane.f32.xlu1 %v936_v49 }
 0x433   : > { %3786 = vpow2.f32 %v934_v47 }
 0x434   : > { %v4194_v50 = vpop.eup %3778  ;;  %3788 = vpow2.f32 %v932_v63 }
 0x435   : > { %v942_v51 = vsel %vm437_vm13, %v4194_v50, 0.0 }
 0x436   : > { %943 = vadd.xlane.f32.xlu1 %v942_v51 }
 0x438   : > { %v4198_v53 = vpop.eup %3780 }
 0x439   : > { %v4200_v54 = vpop.eup %3782  ;;  %v948_v55 = vsel %vm437_vm13, %v4198_v53, 0.0 }
 0x43a   : > { %949 = vadd.xlane.f32.xlu1 %v948_v55  ;;  %v945_v57 = vsel %vm437_vm13, %v4200_v54, 0.0 }
 0x43b   : > { %946 = vadd.xlane.f32.xlu0 %v945_v57 }
 0x43c   : > { %v4206_v58 = vpop.eup %3784 }
 0x43d   : > { %v951_v52 = vsel %vm437_vm13, %v4206_v58, 0.0 }
 0x43f   : > { %952 = vadd.xlane.f32.xlu0 %v951_v52 }
 0x440   : > { %v4210_v59 = vpop.eup %3786 }
 0x441   : > { %v957_v60 = vsel %vm437_vm13, %v4210_v59, 0.0  ;;  %v4221_v2 = vpop.eup %3788 }
 0x442   : > { %v954_v3 = vsel %vm437_vm13, %v4221_v2, 0.0 }
 0x443   : > { %958 = vadd.xlane.f32.xlu0 %v957_v60 }
 0x44b   : > { %1375 = vperm.xlu1 %3655, %v4014_v12  }
 0x459   : > { %1370 = vperm.xlu0 %3654, %v4005_v7  }
 0x45d   : > { %1385 = vperm.xlu0 %3654, %v4008_v8  }
 0x461   : > { %1395 = vperm.xlu0 %3654, %v4018_v14  }
 0x465   : > { %1405 = vperm.xlu0 %3654, %v4032_v24  }
 0x469   : > { %3657 = vset.pattern.permute.xlu0 %v3889_v0 }
 0x46a   : > { %1442 = vperm.xlu0 %3657, %v4014_v12  }
 0x46e   : > { %1454 = vperm.xlu0 %3657, %v4021_v15  }
 0x46f   : > { %955 = vadd.xlane.f32.xlu1 %v954_v3 }
 0x472   : > { %1462 = vperm.xlu0 %3657, %v4035_v25  }
 0x476   : > { %3658 = vset.pattern.permute.xlu0 %v3890_v1 }
 0x477   : > { %1500 = vperm.xlu0 %3658, %v4005_v7  }
 0x47b   : > { %1512 = vperm.xlu0 %3658, %v4008_v8  }
 0x47f   : > { %1520 = vperm.xlu0 %3658, %v4018_v14  }
 0x480   : > { %1380 = vperm.xlu1 %3655, %v4002_v6  }
 0x483   : > { %1528 = vperm.xlu0 %3658, %v4032_v24  }
 0x484   : > { %1390 = vperm.xlu1 %3655, %v4021_v15  }
 0x487   : > { %3661 = vset.pattern.permute.xlu0 %v3891_v4 }
 0x488   : > { %1400 = vperm.xlu1 %3655, %v4035_v25   ;;  %1568 = vperm.xlu0 %3661, %v4014_v12  }
 0x48c   : > { %3656 = vset.pattern.permute.xlu1 %v3889_v0  ;;  %1580 = vperm.xlu0 %3661, %v4021_v15  }
 0x48d   : > { %1438 = vperm.xlu1 %3656, %v4005_v7  }
 0x490   : > { %1588 = vperm.xlu0 %3661, %v4035_v25  }
 0x491   : > { %1446 = vperm.xlu1 %3656, %v4002_v6  }
 0x494   : > { %3662 = vset.pattern.permute.xlu0 %v3892_v5 }
 0x495   : > { %1450 = vperm.xlu1 %3656, %v4008_v8   ;;  %1625 = vperm.xlu0 %3662, %v4005_v7  }
 0x499   : > { %1458 = vperm.xlu1 %3656, %v4018_v14   ;;  %1637 = vperm.xlu0 %3662, %v4008_v8  }
 0x49d   : > { %1466 = vperm.xlu1 %3656, %v4032_v24   ;;  %1645 = vperm.xlu0 %3662, %v4018_v14  }
 0x4a1   : > { %3659 = vset.pattern.permute.xlu1 %v3890_v1  ;;  %1653 = vperm.xlu0 %3662, %v4032_v24  }
 0x4a2   : > { %1504 = vperm.xlu1 %3659, %v4014_v12  }
 0x4a5   : > { %3665 = vset.pattern.permute.xlu0 %v3893_v9 }
 0x4a6   : > { %1508 = vperm.xlu1 %3659, %v4002_v6   ;;  %1690 = vperm.xlu0 %3665, %v4014_v12  }
 0x4aa   : > { %1516 = vperm.xlu1 %3659, %v4021_v15   ;;  %1702 = vperm.xlu0 %3665, %v4021_v15  }
 0x4ae   : > { %1524 = vperm.xlu1 %3659, %v4035_v25   ;;  %1710 = vperm.xlu0 %3665, %v4035_v25  }
 0x4b2   : > { %3660 = vset.pattern.permute.xlu1 %v3891_v4  ;;  %3666 = vset.pattern.permute.xlu0 %v3894_v10 }
 0x4b3   : > { %1564 = vperm.xlu1 %3660, %v4005_v7   ;;  %1749 = vperm.xlu0 %3666, %v4005_v7  }
 0x4b7   : > { %1572 = vperm.xlu1 %3660, %v4002_v6   ;;  %1761 = vperm.xlu0 %3666, %v4008_v8   ;;  %v3895_v6 = vmov 10  }
 0x4b9   : > { %v941_v13 = vpop.xlane.xlu0 %940 }
 0x4ba   : > { %3790 = vrcp.f32 %v941_v13 }
 0x4bb   : > { %v938_v16 = vpop.xlane.xlu1 %937  ;;  %1576 = vperm.xlu1 %3660, %v4008_v8   ;;  %1769 = vperm.xlu0 %3666, %v4018_v14  }
 0x4bc   : > { %3792 = vrcp.f32 %v938_v16 }
 0x4bf   : > { %v944_v17 = vpop.xlane.xlu1 %943  ;;  %1584 = vperm.xlu1 %3660, %v4018_v14   ;;  %1777 = vperm.xlu0 %3666, %v4032_v24   ;;  %v4267_v14 = vld [vmem:[%s3996_s5 + $0x8] sm:$0xff] }
 0x4c0   : > { %3794 = vrcp.f32 %v944_v17 }
 0x4c3   : > { %v950_v7 = vpop.xlane.xlu1 %949  ;;  %1592 = vperm.xlu1 %3660, %v4032_v24   ;;  %3669 = vset.pattern.permute.xlu0 %v3895_v6 }
 0x4c4   : > { %3796 = vrcp.f32 %v950_v7  ;;  %v947_v18 = vpop.xlane.xlu0 %946  ;;  %1814 = vperm.xlu0 %3669, %v4014_v12   ;;  %v4275_v12 = vld [vmem:[%s3996_s5 + $0x10] sm:$0xff] }
 0x4c5   : > { %3798 = vrcp.f32 %v947_v18 }
 0x4c7   : > { %3663 = vset.pattern.permute.xlu1 %v3892_v5  ;;  %v3791_v8 = vpop.eup %3790  ;;  %v4328_v47 = vpop.permute.xlu1 %1375 }
 0x4c8   : > { %v953_v19 = vpop.xlane.xlu0 %952  ;;  %1629 = vperm.xlu1 %3663, %v4267_v14   ;;  %1826 = vperm.xlu0 %3669, %v4021_v15   ;;  %v963_v21 = vmul.f32 %v3791_v8, %v4186_v41 }
 0x4c9   : > { %v3793_v24 = vpop.eup %3792  ;;  %3800 = vrcp.f32 %v953_v19 }
 0x4ca   : > { %v961_v20 = vmul.f32 %v3793_v24, %v4190_v46  ;;  %v3898_v46 = vmov 11  }
 0x4cc   : > { %3478 = vmatprep.mubr.msk.f32.mxu1 %vm437_vm13, %v961_v20  ;;  %1633 = vperm.xlu1 %3663, %v4275_v12   ;;  %v959_v49 = vpop.xlane.xlu0 %958 }
 0x4cd   : > { %v3795_v22 = vpop.eup %3794  ;;  %3479 = vmatmul.mubr.msk.f32.vlgmr.msra.gmra.mxu1 %vm437_vm13, %v963_v21  ;;  %1834 = vperm.xlu0 %3669, %v4035_v25   ;;  %3802 = vrcp.f32 %v959_v49 }
 0x4ce   : > { %v965_v15 = vmul.f32 %v3795_v22, %v4194_v50 }
 0x4d0   : > { %3481 = vmatprep.mubr.msk.f32.mxu1 %vm437_vm13, %v965_v15  ;;  %1641 = vperm.xlu1 %3663, %v4283_v26  }
 0x4d1   : > { %v3797_v28 = vpop.eup %3796  ;;  %3670 = vset.pattern.permute.xlu0 %v3896_v29 }
 0x4d2   : > { %v3799_v30 = vpop.eup %3798  ;;  %v969_v33 = vmul.f32 %v3797_v28, %v4198_v53  ;;  %1871 = vperm.xlu0 %3670, %v4289_v34  }
 0x4d3   : > { %v967_v25 = vmul.f32 %v3799_v30, %v4200_v54  ;;  %v3899_v54 = vmov 19  }
 0x4d4   : > { %1649 = vperm.xlu1 %3663, %v4294_v35   ;;  %v4349_v60 = vpop.permute.xlu0 %1370 }
 0x4d5   : > { %3482 = vmatmul.mubr.msk.f32.gmra.mxu1 %vm437_vm13, %v967_v25 }
 0x4d6   : > { %v3801_v38 = vpop.eup %3800  ;;  %3484 = vmatprep.mubr.msk.f32.mxu1 %vm437_vm13, %v969_v33  ;;  %1883 = vperm.xlu0 %3670, %v4300_v39  }
 0x4d7   : > { %v971_v41 = vmul.f32 %v3801_v38, %v4206_v58 }
 0x4d8   : > { %3664 = vset.pattern.permute.xlu1 %v3893_v9  ;;  %v4360_v0 = vpop.permute.xlu0 %1385 }
 0x4d9   : > { %3485 = vmatmul.mubr.msk.f32.gmra.mxu1 %vm437_vm13, %v971_v41  ;;  %1686 = vperm.xlu1 %3664, %v4289_v34  }
 0x4da   : > { %1891 = vperm.xlu0 %3670, %v4308_v42   ;;  %v3803_v57 = vpop.eup %3802 }
 0x4db   : > { %v975_v61 = vmul.f32 %v3803_v57, %v4210_v59 }
 0x4dc   : > { %v4368_v3 = vpop.permute.xlu0 %1395 }
 0x4dd   : > { %1694 = vperm.xlu1 %3664, %v4275_v12   ;;  %6095 = vst [vmem:[#allocation9_spill] sm:$0xff] %v4368_v3 }
 0x4de   : > { %1899 = vperm.xlu0 %3670, %v4313_v43  }
 0x4e0   : > { %v4376_v5 = vpop.permute.xlu0 %1405 }
 0x4e1   : > { %1698 = vperm.xlu1 %3664, %v4300_v39   ;;  %6098 = vst [vmem:[#allocation12_spill] sm:$0xff] %v4376_v5 }
 0x4e2   : > { %3673 = vset.pattern.permute.xlu0 %v3897_v44 }
 0x4e3   : > { %1938 = vperm.xlu0 %3673, %v4267_v14  }
 0x4e5   : > { %1706 = vperm.xlu1 %3664, %v4308_v42  }
 0x4e7   : > { %1950 = vperm.xlu0 %3673, %v4283_v26  }
 0x4e9   : > { %1714 = vperm.xlu1 %3664, %v4313_v43  }
 0x4eb   : > { %1958 = vperm.xlu0 %3673, %v4294_v35  }
 0x4ed   : > { %3667 = vset.pattern.permute.xlu1 %v3894_v10  ;;  %v4381_v10 = vpop.permute.xlu0 %1442 }
 0x4ee   : > { %1753 = vperm.xlu1 %3667, %v4267_v14  }
 0x4ef   : > { %3674 = vset.pattern.permute.xlu0 %v3898_v46 }
 0x4f0   : > { %1995 = vperm.xlu0 %3674, %v4289_v34  }
 0x4f1   : > { %v4390_v17 = vpop.permute.xlu0 %1454 }
 0x4f2   : > { %1757 = vperm.xlu1 %3667, %v4275_v12   ;;  %6100 = vst [vmem:[#allocation14_spill] sm:$0xff] %v4390_v17  ;;  %v4564_v17 = vld [vmem:[%s6081_s1 + $0x90] sm:$0xff] }
 0x4f4   : > { %2007 = vperm.xlu0 %3674, %v4300_v39  }
 0x4f6   : > { %1765 = vperm.xlu1 %3667, %v4283_v26  }
 0x4f8   : > { %v956_v50 = vpop.xlane.xlu1 %955  ;;  %2015 = vperm.xlu0 %3674, %v4308_v42  }
 0x4f9   : > { %3804 = vrcp.f32 %v956_v50 }
 0x4fa   : > { %1773 = vperm.xlu1 %3667, %v4294_v35  }
 0x4fc   : > { %v4334_v51 = vpop.permute.xlu1 %1380  ;;  %2023 = vperm.xlu0 %3674, %v4313_v43  }
 0x4fe   : > { %3668 = vset.pattern.permute.xlu1 %v3895_v6  ;;  %v4395_v6 = vpop.permute.xlu0 %1462 }
 0x4ff   : > { %1810 = vperm.xlu1 %3668, %v4289_v34   ;;  %6102 = vst [vmem:[#allocation16_spill] sm:$0xff] %v4395_v6 }
 0x500   : > { %v4339_v53 = vpop.permute.xlu1 %1390  ;;  %3677 = vset.pattern.permute.xlu0 %v3899_v54 }
 0x501   : > { %6093 = vst [vmem:[#allocation7_spill] sm:$0xff] %v4339_v53  ;;  %2060 = vperm.xlu0 %3677, %v4267_v14  }
 0x502   : > { %v4401_v8 = vpop.permute.xlu0 %1500 }
 0x503   : > { %1818 = vperm.xlu1 %3668, %v4275_v12  }
 0x504   : > { %v4344_v55 = vpop.permute.xlu1 %1400 }
 0x505   : > { %6094 = vst [vmem:[#allocation8_spill] sm:$0xff] %v4344_v55  ;;  %2072 = vperm.xlu0 %3677, %v4283_v26  }
 0x506   : > { %v3805_v58 = vpop.eup %3804  ;;  %v4408_v20 = vpop.permute.xlu0 %1512 }
 0x507   : > { %v973_v52 = vmul.f32 %v3805_v58, %v4221_v2  ;;  %1822 = vperm.xlu1 %3668, %v4300_v39   ;;  %v3900_v2 = vmov 4  }
 0x508   : > { %v4352_v62 = vpop.permute.xlu1 %1438 }
 0x509   : > { %3487 = vmatprep.mubr.msk.f32.mxu1 %vm437_vm13, %v973_v52  ;;  %2080 = vperm.xlu0 %3677, %v4294_v35  }
 0x50a   : > { %3488 = vmatmul.mubr.msk.f32.gmra.mxu1 %vm437_vm13, %v975_v61  ;;  %v4414_v22 = vpop.permute.xlu0 %1520 }
 0x50b   : > { %1830 = vperm.xlu1 %3668, %v4308_v42   ;;  %6104 = vst [vmem:[#allocation18_spill] sm:$0xff] %v4414_v22  ;;  %v4539_v22 = vld [vmem:[%s6081_s1 + $0xa8] sm:$0xff] }
 0x50c   : > { %v4358_v63 = vpop.permute.xlu1 %1446 }
 0x50d   : > { %3678 = vset.pattern.permute.xlu0 %v3900_v2 }
 0x50e   : > { %2119 = vperm.xlu0 %3678, %v4289_v34  }
 0x50f   : > { %1838 = vperm.xlu1 %3668, %v4313_v43  }
 0x510   : > { %v4364_v59 = vpop.permute.xlu1 %1450 }
 0x512   : > { %2131 = vperm.xlu0 %3678, %v4300_v39  }
 0x513   : > { %3671 = vset.pattern.permute.xlu1 %v3896_v29  ;;  %v4422_v29 = vpop.permute.xlu0 %1528 }
 0x514   : > { %1875 = vperm.xlu1 %3671, %v4267_v14   ;;  %v4371_v1 = vpop.permute.xlu1 %1458  ;;  %6106 = vst [vmem:[#allocation20_spill] sm:$0xff] %v4422_v29  ;;  %v4521_v29 = vld [vmem:[%s6081_s1 + $0xb8] sm:$0xff] }
 0x515   : > { %6096 = vst [vmem:[#allocation10_spill] sm:$0xff] %v4371_v1 }
 0x517   : > { %v4427_v33 = vpop.permute.xlu0 %1568 }
 0x518   : > { %1879 = vperm.xlu1 %3671, %v4275_v12   ;;  %v4374_v4 = vpop.permute.xlu1 %1466 }
 0x519   : > { %6097 = vst [vmem:[#allocation11_spill] sm:$0xff] %v4374_v4  ;;  %v4546_v4 = vld [vmem:[%s6081_s1 + $0xa0] sm:$0xff] }
 0x51b   : > { %v4436_v41 = vpop.permute.xlu0 %1580 }
 0x51c   : > { %1887 = vperm.xlu1 %3671, %v4283_v26   ;;  %6110 = vst [vmem:[#allocation24_spill] sm:$0xff] %v4436_v41 }
 0x51d   : > { %v4379_v9 = vpop.permute.xlu1 %1504 }
 0x520   : > { %1895 = vperm.xlu1 %3671, %v4294_v35  }
 0x521   : > { %v4384_v13 = vpop.permute.xlu1 %1508 }
 0x524   : > { %3672 = vset.pattern.permute.xlu1 %v3897_v44 }
 0x525   : > { %1934 = vperm.xlu1 %3672, %v4289_v34   ;;  %v4388_v16 = vpop.permute.xlu1 %1516 }
 0x526   : > { %6099 = vst [vmem:[#allocation13_spill] sm:$0xff] %v4388_v16 }
 0x529   : > { %1942 = vperm.xlu1 %3672, %v4275_v12   ;;  %v4393_v7 = vpop.permute.xlu1 %1524 }
 0x52a   : > { %6101 = vst [vmem:[#allocation15_spill] sm:$0xff] %v4393_v7 }
 0x52d   : > { %1946 = vperm.xlu1 %3672, %v4300_v39  }
 0x52e   : > { %v4398_v18 = vpop.permute.xlu1 %1564 }
 0x531   : > { %1954 = vperm.xlu1 %3672, %v4308_v42  }
 0x532   : > { %v4403_v19 = vpop.permute.xlu1 %1572 }
 0x535   : > { %1962 = vperm.xlu1 %3672, %v4313_v43  }
 0x536   : > { %v4406_v24 = vpop.permute.xlu1 %1576 }
 0x539   : > { %3675 = vset.pattern.permute.xlu1 %v3898_v46  ;;  %v4441_v46 = vpop.permute.xlu0 %1588 }
 0x53a   : > { %1999 = vperm.xlu1 %3675, %v4267_v14   ;;  %v4412_v21 = vpop.permute.xlu1 %1584  ;;  %6111 = vst [vmem:[#allocation25_spill] sm:$0xff] %v4441_v46  ;;  %v4512_v46 = vld [vmem:[%s6081_s1 + $0xc0] sm:$0xff] }
 0x53b   : > { %6103 = vst [vmem:[#allocation17_spill] sm:$0xff] %v4412_v21 }
 0x53d   : > { %v4447_v50 = vpop.permute.xlu0 %1625 }
 0x53e   : > { %2003 = vperm.xlu1 %3675, %v4275_v12   ;;  %v4417_v15 = vpop.permute.xlu1 %1592 }
 0x53f   : > { %6105 = vst [vmem:[#allocation19_spill] sm:$0xff] %v4417_v15 }
 0x541   : > { %v4454_v58 = vpop.permute.xlu0 %1637 }
 0x542   : > { %2011 = vperm.xlu1 %3675, %v4283_v26   ;;  %6115 = vst [vmem:[#allocation29_spill] sm:$0xff] %v4454_v58 }
 0x543   : > { %v4420_v28 = vpop.permute.xlu1 %1629 }
 0x545   : > { %v4459_v61 = vpop.permute.xlu0 %1645 }
 0x546   : > { %2019 = vperm.xlu1 %3675, %v4294_v35   ;;  %6117 = vst [vmem:[#allocation31_spill] sm:$0xff] %v4459_v61  ;;  %v4484_v61 = vld [vmem:[%s6081_s1 + $0xd8] sm:$0xff] }
 0x547   : > { %v4425_v30 = vpop.permute.xlu1 %1633 }
 0x548   : > { %6107 = vst [vmem:[#allocation21_spill] sm:$0xff] %v4425_v30 }
 0x54a   : > { %3676 = vset.pattern.permute.xlu1 %v3899_v54 }
 0x54b   : > { %2056 = vperm.xlu1 %3676, %v4289_v34   ;;  %v4431_v25 = vpop.permute.xlu1 %1641 }
 0x54c   : > { %6108 = vst [vmem:[#allocation22_spill] sm:$0xff] %v4431_v25 }
 0x54f   : > { %2064 = vperm.xlu1 %3676, %v4275_v12   ;;  %v4434_v38 = vpop.permute.xlu1 %1649 }
 0x550   : > { %6109 = vst [vmem:[#allocation23_spill] sm:$0xff] %v4434_v38  ;;  %v4465_v38 = vpop.permute.xlu0 %1653 }
 0x551   : > { %6120 = vst [vmem:[#allocation34_spill] sm:$0xff] %v4465_v38 }
 0x553   : > { %2068 = vperm.xlu1 %3676, %v4300_v39  }
 0x554   : > { %v4439_v44 = vpop.permute.xlu1 %1686 }
 0x557   : > { %2076 = vperm.xlu1 %3676, %v4308_v42  }
 0x558   : > { %v4444_v49 = vpop.permute.xlu1 %1694 }
 0x559   : > { %6112 = vst [vmem:[#allocation26_spill] sm:$0xff] %v4444_v49 }
 0x55b   : > { %2084 = vperm.xlu1 %3676, %v4313_v43  }
 0x55c   : > { %v4449_v54 = vpop.permute.xlu1 %1698 }
 0x55d   : > { %6113 = vst [vmem:[#allocation27_spill] sm:$0xff] %v4449_v54 }
 0x55f   : > { %3679 = vset.pattern.permute.xlu1 %v3900_v2  ;;  %v4469_v2 = vpop.permute.xlu0 %1690 }
 0x560   : > { %2123 = vperm.xlu1 %3679, %v4267_v14   ;;  %v4452_v57 = vpop.permute.xlu1 %1706 }
 0x561   : > { %6114 = vst [vmem:[#allocation28_spill] sm:$0xff] %v4452_v57  ;;  %v4476_v57 = vld [vmem:[%s6081_s1 + $0xe0] sm:$0xff] }
 0x562   : > { %3490 = vmatprep.subr.mxu0 %v4476_v57 }
 0x563   : > { %3491 = vmatpush3.msra.mxu0 %v4476_v57 }
 0x564   : > { %2127 = vperm.xlu1 %3679, %v4275_v12   ;;  %v4457_v52 = vpop.permute.xlu1 %1714  ;;  %3492 = vmatprep.subr.mxu0 %v4484_v61 }
 0x565   : > { %6116 = vst [vmem:[#allocation30_spill] sm:$0xff] %v4457_v52  ;;  %v4478_v52 = vpop.permute.xlu0 %1702  ;;  %3493 = vmatpush3.msra.mxu0 %v4484_v61 }
 0x566   : > { %6123 = vst [vmem:[#allocation37_spill] sm:$0xff] %v4478_v52  ;;  %v4503_v52 = vld [vmem:[%s6081_s1 + $0xc8] sm:$0xff] }
 0x569   : > { %v4461_v56 = vpop.permute.xlu1 %1753  ;;  %v4505_v21 = vpop.permute.xlu0 %1710 }
 0x56a   : > { %6118 = vst [vmem:[#allocation32_spill] sm:$0xff] %v4461_v56  ;;  %6126 = vst [vmem:[#allocation40_spill] sm:$0xff] %v4505_v21  ;;  %v4526_v21 = vld [vmem:[%s6081_s1 + $0xb0] sm:$0xff] }
 0x56d   : > { %v4463_v48 = vpop.permute.xlu1 %1757  ;;  %v4530_v7 = vpop.permute.xlu0 %1749 }
 0x56e   : > { %6119 = vst [vmem:[#allocation33_spill] sm:$0xff] %v4463_v48  ;;  %6128 = vst [vmem:[#allocation42_spill] sm:$0xff] %v4530_v7 }
 0x571   : > { %v4467_v25 = vpop.permute.xlu1 %1765  ;;  %v4557_v6 = vpop.permute.xlu0 %1761 }
 0x572   : > { %6121 = vst [vmem:[#allocation35_spill] sm:$0xff] %v4467_v25  ;;  %6131 = vst [vmem:[#allocation45_spill] sm:$0xff] %v4557_v6 }
 0x575   : > { %v4471_v15 = vpop.permute.xlu1 %1773 }
 0x576   : > { %6122 = vst [vmem:[#allocation36_spill] sm:$0xff] %v4471_v15  ;;  %v4494_v15 = vld [vmem:[%s6081_s1 + $0xd0] sm:$0xff] }
 0x577   : > { %3494 = vmatprep.subr.mxu0 %v4494_v15 }
 0x578   : > { %3495 = vmatpush3.msra.mxu0 %v4494_v15 }
 0x579   : > { %3496 = vmatprep.subr.mxu0 %v4503_v52 }
 0x57a   : > { %v4486_v38 = vpop.permute.xlu1 %1810  ;;  %3497 = vmatpush3.msra.mxu0 %v4503_v52 }
 0x57b   : > { %6124 = vst [vmem:[#allocation38_spill] sm:$0xff] %v4486_v38  ;;  %3498 = vmatprep.subr.mxu0 %v4512_v46 }
 0x57c   : > { %3499 = vmatpush3.msra.mxu0 %v4512_v46 }
 0x57d   : > { %3500 = vmatprep.subr.mxu0 %v4521_v29 }
 0x57e   : > { %v4497_v25 = vpop.permute.xlu1 %1818  ;;  %3501 = vmatpush3.msra.mxu0 %v4521_v29 }
 0x57f   : > { %6125 = vst [vmem:[#allocation39_spill] sm:$0xff] %v4497_v25  ;;  %3502 = vmatprep.subr.mxu0 %v4526_v21  ;;  %v4581_v25 = vpop.permute.xlu0 %1769 }
 0x580   : > { %3503 = vmatpush3.msra.mxu0 %v4526_v21  ;;  %6133 = vst [vmem:[#allocation47_spill] sm:$0xff] %v4581_v25 }
 0x581   : > { %3504 = vmatprep.subr.mxu0 %v4539_v22 }
 0x582   : > { %v4515_v41 = vpop.permute.xlu1 %1822  ;;  %3505 = vmatpush3.msra.mxu0 %v4539_v22 }
 0x583   : > { %6127 = vst [vmem:[#allocation41_spill] sm:$0xff] %v4515_v41  ;;  %3506 = vmatprep.subr.mxu0 %v4546_v4  ;;  %v4579_v41 = vld [vmem:[%s6081_s1 + $0x88] sm:$0xff]  ;;  %v4596_v56 = vpop.permute.xlu0 %1777 }
 0x584   : > { %3507 = vmatpush3.msra.mxu0 %v4546_v4  ;;  %6136 = vst [vmem:[#allocation49_spill] sm:$0xff] %v4596_v56 }
 0x586   : > { %v4533_v16 = vpop.permute.xlu1 %1830 }
 0x587   : > { %6129 = vst [vmem:[#allocation43_spill] sm:$0xff] %v4533_v16  ;;  %v4555_v16 = vld [vmem:[%s6081_s1 + $0x98] sm:$0xff] }
 0x588   : > { %3508 = vmatprep.subr.mxu0 %v4555_v16 }
 0x589   : > { %3509 = vmatpush3.msra.mxu0 %v4555_v16 }
 0x58a   : > { %v4549_v1 = vpop.permute.xlu1 %1838  ;;  %3510 = vmatprep.subr.mxu0 %v4564_v17 }
 0x58b   : > { %6130 = vst [vmem:[#allocation44_spill] sm:$0xff] %v4549_v1  ;;  %3511 = vmatpush3.msra.mxu0 %v4564_v17 }
 0x58c   : > { %3512 = vmatprep.subr.mxu0 %v4579_v41 }
 0x58d   : > { %v3480_v55 = vpop.f32.mrf.mxu1  ;;  %3513 = vmatpush3.msra.mxu0 %v4579_v41 }
 0x58e   : > { %v4568_v1 = vmul.f32 %v3480_v55, %v4144_v23 }
 0x58f   : > { %v1066_v3 = vpop.f32.mrf.mxu1  ;;  %v4571_v5 = vpop.permute.xlu1 %1875 }
 0x590   : > { %6132 = vst [vmem:[#allocation46_spill] sm:$0xff] %v4571_v5  ;;  %v4574_v53 = vmul.f32 %v1066_v3, %v4136_v11  ;;  %v1123_v23 = vrot.slane %v4568_v1, 1  ;;  %v6134_v5 = vmov 0.0   ;;  %v1142_v6 = vrot.slane %v4568_v1, 2 }
 0x591   : > { %3553 = vmatprep.subr.mxu0 %v6134_v5  ;;  %3550 = vmatprep.mubr.msk.f32.mxu1 %vm3914_vm2, %v6134_v5 }
 0x592   : > { %v6086_v55 = vrot.slane %v4574_v53, 1  ;;  %v6087_v11 = vrot.slane %v4574_v53, 2 }
 0x593   : > { %v4593_v25 = vpop.permute.xlu1 %1879 }
 0x594   : > { %v1124_v3 = vsel %vm1121_vm14, %v6086_v55, %v1123_v23  ;;  %6135 = vst [vmem:[#allocation48_spill] sm:$0xff] %v4593_v25  ;;  %v1143_v54 = vsel %vm1140_vm15, %v6087_v11, %v1142_v6 }
 0x595   : > { %v3483_v38 = vpop.f32.mrf.mxu1  ;;  %1160 = vrot.lane.b32.xlu1 %v1124_v3, %s3901_s4 }
 0x596   : > { %v4606_v3 = vmul.f32 %v3483_v38, %v4152_v31 }
 0x597   : > { %v1076_v48 = vpop.f32.mrf.mxu1  ;;  %v4610_v56 = vpop.permute.xlu1 %1887 }
 0x598   : > { %v4599_v49 = vmul.f32 %v1076_v48, %v4146_v27  ;;  %6137 = vst [vmem:[#allocation50_spill] sm:$0xff] %v4610_v56  ;;  %v1127_v31 = vrot.slane %v4606_v3, 1 }
 0x599   : > { %v3486_v55 = vpop.f32.mrf.mxu1  ;;  %1185 = vrot.lane.b32.xlu1 %v1143_v54, %s3902_s6  ;;  %v4618_v54 = vpop.permute.xlu0 %1814 }
 0x59a   : > { %v1125_v25 = vrot.slane %v4599_v49, 1  ;;  %v1144_v58 = vrot.slane %v4599_v49, 2  ;;  %6138 = vst [vmem:[#allocation51_spill] sm:$0xff] %v4618_v54 }
 0x59b   : > { %v1086_v30 = vpop.f32.mrf.mxu1 }
 0x59c   : > { %v4613_v48 = vmul.f32 %v1086_v30, %v4154_v32  ;;  %v1126_v27 = vsel %vm1121_vm14, %v1123_v23, %v1125_v25  ;;  %v1145_v11 = vsel %vm1140_vm15, %v1142_v6, %v1144_v58  ;;  %v1128_v7 = vsel %vm1121_vm14, %v1125_v25, %v1127_v31  ;;  %v4627_v30 = vpop.permute.xlu1 %1895 }
 0x59d   : > { %1162 = vrot.lane.b32.xlu0 %v1126_v27, %s3901_s4  ;;  %1187 = vrot.lane.b32.xlu1 %v1145_v11, %s3902_s6  ;;  %6139 = vst [vmem:[#allocation52_spill] sm:$0xff] %v4627_v30  ;;  %v1146_v6 = vrot.slane %v4606_v3, 2  ;;  %v4631_v23 = vmul.f32 %v3486_v55, %v4160_v36  ;;  %v4634_v27 = vpop.permute.xlu0 %1826 }
 0x59e   : > { %v1129_v38 = vrot.slane %v4613_v48, 1  ;;  %v1148_v32 = vrot.slane %v4613_v48, 2  ;;  %6140 = vst [vmem:[#allocation53_spill] sm:$0xff] %v4634_v27 }
 0x59f   : > { %v1147_v11 = vsel %vm1140_vm15, %v1144_v58, %v1146_v6 }
 0x5a0   : > { %v1130_v56 = vsel %vm1121_vm14, %v1127_v31, %v1129_v38  ;;  %v1149_v25 = vsel %vm1140_vm15, %v1146_v6, %v1148_v32  ;;  %v1131_v31 = vrot.slane %v4631_v23, 1 }
 0x5a1   : > { %1164 = vrot.lane.b32.xlu0 %v1128_v7, %s3901_s4  ;;  %1166 = vrot.lane.b32.xlu1 %v1130_v56, %s3901_s4  ;;  %v4641_v7 = vpop.permute.xlu1 %1934  ;;  %v4645_v36 = vpop.permute.xlu0 %1834  ;;  %v1150_v56 = vrot.slane %v4631_v23, 2 }
 0x5a2   : > { %6141 = vst [vmem:[#allocation54_spill] sm:$0xff] %v4641_v7  ;;  %v1132_v30 = vsel %vm1121_vm14, %v1129_v38, %v1131_v31  ;;  %6142 = vst [vmem:[#allocation55_spill] sm:$0xff] %v4645_v36 }
 0x5a3   : > { %v1151_v58 = vsel %vm1140_vm15, %v1148_v32, %v1150_v56 }
 0x5a5   : > { %1189 = vrot.lane.b32.xlu0 %v1147_v11, %s3902_s6  ;;  %1191 = vrot.lane.b32.xlu1 %v1149_v25, %s3902_s6  ;;  %v4650_v55 = vpop.permute.xlu1 %1942  ;;  %v4652_v6 = vpop.permute.xlu0 %1871 }
 0x5a6   : > { %6143 = vst [vmem:[#allocation56_spill] sm:$0xff] %v4650_v55  ;;  %6144 = vst [vmem:[#allocation57_spill] sm:$0xff] %v4652_v6 }
 0x5a9   : > { %1168 = vrot.lane.b32.xlu0 %v1132_v30, %s3901_s4  ;;  %v4654_v11 = vpop.permute.xlu1 %1946  ;;  %v4656_v25 = vpop.permute.xlu0 %1883 }
 0x5aa   : > { %6145 = vst [vmem:[#allocation58_spill] sm:$0xff] %v4654_v11  ;;  %6146 = vst [vmem:[#allocation59_spill] sm:$0xff] %v4656_v25 }
 0x5ad   : > { %1193 = vrot.lane.b32.xlu0 %v1151_v58, %s3902_s6  ;;  %v4658_v27 = vpop.permute.xlu1 %1954  ;;  %v4660_v38 = vpop.permute.xlu0 %1891 }
 0x5ae   : > { %6147 = vst [vmem:[#allocation60_spill] sm:$0xff] %v4658_v27  ;;  %6148 = vst [vmem:[#allocation61_spill] sm:$0xff] %v4660_v38 }
 0x5b1   : > { %v4662_v30 = vpop.permute.xlu1 %1962  ;;  %v4664_v36 = vpop.permute.xlu0 %1899 }
 0x5b2   : > { %6149 = vst [vmem:[#allocation62_spill] sm:$0xff] %v4662_v30  ;;  %6150 = vst [vmem:[#allocation63_spill] sm:$0xff] %v4664_v36 }
 0x5b5   : > { %v4666_v7 = vpop.permute.xlu1 %1999  ;;  %v4668_v32 = vpop.permute.xlu0 %1938 }
 0x5b6   : > { %6151 = vst [vmem:[#allocation64_spill] sm:$0xff] %v4666_v7  ;;  %6152 = vst [vmem:[#allocation65_spill] sm:$0xff] %v4668_v32  ;;  %v6155_v7 = vrot.slane %v4574_v53, 1 }
 0x5b9   : > { %v4673_v6 = vpop.permute.xlu1 %2003  ;;  %v4679_v38 = vpop.permute.xlu0 %1950 }
 0x5ba   : > { %6153 = vst [vmem:[#allocation66_spill] sm:$0xff] %v4673_v6  ;;  %6154 = vst [vmem:[#allocation67_spill] sm:$0xff] %v4679_v38 }
 0x5bd   : > { %v4689_v6 = vpop.permute.xlu1 %2011  ;;  %v4695_v38 = vpop.permute.xlu0 %1958 }
 0x5be   : > { %6156 = vst [vmem:[#allocation68_spill] sm:$0xff] %v4689_v6  ;;  %6158 = vst [vmem:[#allocation69_spill] sm:$0xff] %v4695_v38 }
 0x5c1   : > { %v4701_v54 = vpop.permute.xlu1 %2019 }
 0x5c2   : > { %6159 = vst [vmem:[#allocation70_spill] sm:$0xff] %v4701_v54 }
 0x5ca   : > { %v3489_v58 = vpop.f32.mrf.mxu1 }
 0x5cb   : > { %v4671_v55 = vmul.f32 %v3489_v58, %v4169_v40 }
 0x5cc   : > { %v1096_v11 = vpop.f32.mrf.mxu1 }
 0x5cd   : > { %v1135_v25 = vrot.slane %v4671_v55, 1  ;;  %v4677_v27 = vmul.f32 %v1096_v11, %v4162_v37  ;;  %v1154_v30 = vrot.slane %v4671_v55, 2  ;;  %v6157_v37 = vrot.slane %v4574_v53, 2 }
 0x5cf   : > { %v1133_v36 = vrot.slane %v4677_v27, 1  ;;  %v1139_v32 = vsel %vm1121_vm14, %v1135_v25, %v6155_v7  ;;  %v1152_v40 = vrot.slane %v4677_v27, 2  ;;  %v1158_v11 = vsel %vm1140_vm15, %v1154_v30, %v6157_v37  ;;  %v4709_v37 = vpop.permute.xlu1 %2056 }
 0x5d0   : > { %1174 = vrot.lane.b32.xlu1 %v1139_v32, %s3901_s4 }
 0x5d1   : > { %v1136_v58 = vsel %vm1121_vm14, %v1133_v36, %v1135_v25  ;;  %v1155_v7 = vsel %vm1140_vm15, %v1152_v40, %v1154_v30  ;;  %v1134_v32 = vsel %vm1121_vm14, %v1131_v31, %v1133_v36  ;;  %v4704_v25 = vpop.permute.xlu0 %1995  ;;  %v3903_v31 = vmov 12  }
 0x5d2   : > { %1172 = vrot.lane.b32.xlu0 %v1136_v58, %s3901_s4  ;;  %v1153_v58 = vsel %vm1140_vm15, %v1150_v56, %v1152_v40 }
 0x5d3   : > { %v4716_v36 = vpop.permute.xlu1 %2064 }
 0x5d4   : > { %1199 = vrot.lane.b32.xlu1 %v1158_v11, %s3902_s6  ;;  %6160 = vst [vmem:[#allocation71_spill] sm:$0xff] %v4716_v36 }
 0x5d5   : > { %v4712_v30 = vpop.permute.xlu0 %2007 }
 0x5d6   : > { %1197 = vrot.lane.b32.xlu0 %v1155_v7, %s3902_s6  ;;  %v3904_v7 = vmov 20  }
 0x5d7   : > { %v4723_v56 = vpop.permute.xlu1 %2068 }
 0x5d8   : > { %1170 = vrot.lane.b32.xlu1 %v1134_v32, %s3901_s4  ;;  %6162 = vst [vmem:[#allocation73_spill] sm:$0xff] %v4723_v56 }
 0x5d9   : > { %v4719_v11 = vpop.permute.xlu0 %2015 }
 0x5da   : > { %2139 = vperm.xlu0 %3678, %v4308_v42   ;;  %6161 = vst [vmem:[#allocation72_spill] sm:$0xff] %v4719_v11  ;;  %v3905_v11 = vmov 5  }
 0x5db   : > { %v4729_v32 = vpop.permute.xlu1 %2076 }
 0x5dc   : > { %1195 = vrot.lane.b32.xlu1 %v1153_v58, %s3902_s6  ;;  %6164 = vst [vmem:[#allocation75_spill] sm:$0xff] %v4729_v32 }
 0x5dd   : > { %v4726_v40 = vpop.permute.xlu0 %2023 }
 0x5de   : > { %2147 = vperm.xlu0 %3678, %v4313_v43   ;;  %6163 = vst [vmem:[#allocation74_spill] sm:$0xff] %v4726_v40 }
 0x5e0   : > { %2135 = vperm.xlu1 %3679, %v4283_v26  }
 0x5e1   : > { %v4733_v58 = vpop.permute.xlu0 %2060 }
 0x5e2   : > { %3681 = vset.pattern.permute.xlu0 %v3903_v31 }
 0x5e3   : > { %2184 = vperm.xlu0 %3681, %v4267_v14  }
 0x5e4   : > { %2143 = vperm.xlu1 %3679, %v4294_v35  }
 0x5e5   : > { %v4739_v54 = vpop.permute.xlu0 %2072 }
 0x5e6   : > { %6166 = vst [vmem:[#allocation77_spill] sm:$0xff] %v4739_v54 }
 0x5e7   : > { %2196 = vperm.xlu0 %3681, %v4283_v26  }
 0x5e8   : > { %3680 = vset.pattern.permute.xlu1 %v3903_v31  ;;  %v4737_v31 = vpop.permute.xlu1 %2084 }
 0x5e9   : > { %2180 = vperm.xlu1 %3680, %v4289_v34   ;;  %6165 = vst [vmem:[#allocation76_spill] sm:$0xff] %v4737_v31  ;;  %v4746_v32 = vpop.permute.xlu0 %2080 }
 0x5ea   : > { %6168 = vst [vmem:[#allocation79_spill] sm:$0xff] %v4746_v32 }
 0x5eb   : > { %2204 = vperm.xlu0 %3681, %v4294_v35  }
 0x5ec   : > { %v4743_v40 = vpop.permute.xlu1 %2123 }
 0x5ed   : > { %2188 = vperm.xlu1 %3680, %v4275_v12   ;;  %6167 = vst [vmem:[#allocation78_spill] sm:$0xff] %v4743_v40  ;;  %v4753_v54 = vpop.permute.xlu0 %2119  ;;  %v3906_v40 = vmov 13  }
 0x5ee   : > { %6170 = vst [vmem:[#allocation81_spill] sm:$0xff] %v4753_v54 }
 0x5ef   : > { %3682 = vset.pattern.permute.xlu0 %v3904_v7 }
 0x5f0   : > { %2241 = vperm.xlu0 %3682, %v4289_v34   ;;  %v4750_v31 = vpop.permute.xlu1 %2127 }
 0x5f1   : > { %2192 = vperm.xlu1 %3680, %v4300_v39   ;;  %6169 = vst [vmem:[#allocation80_spill] sm:$0xff] %v4750_v31 }
 0x5f4   : > { %2253 = vperm.xlu0 %3682, %v4300_v39  }
 0x5f5   : > { %2200 = vperm.xlu1 %3680, %v4308_v42  }
 0x5f8   : > { %2261 = vperm.xlu0 %3682, %v4308_v42  }
 0x5f9   : > { %2208 = vperm.xlu1 %3680, %v4313_v43  }
 0x5fc   : > { %2269 = vperm.xlu0 %3682, %v4313_v43  }
 0x5fd   : > { %3683 = vset.pattern.permute.xlu1 %v3904_v7  ;;  %v4758_v7 = vpop.permute.xlu0 %2131 }
 0x5fe   : > { %2245 = vperm.xlu1 %3683, %v4267_v14   ;;  %6171 = vst [vmem:[#allocation82_spill] sm:$0xff] %v4758_v7 }
 0x600   : > { %3685 = vset.pattern.permute.xlu0 %v3905_v11 }
 0x601   : > { %2308 = vperm.xlu0 %3685, %v4267_v14  }
 0x602   : > { %2249 = vperm.xlu1 %3683, %v4275_v12  }
 0x605   : > { %2320 = vperm.xlu0 %3685, %v4283_v26  }
 0x606   : > { %2257 = vperm.xlu1 %3683, %v4283_v26  }
 0x607   : > { %v1161_v6 = vpop.permute.xlu1 %1160 }
 0x608   : > { %v1209_v32 = vsel %vm437_vm13, %v4574_v53, %v1161_v6 }
 0x609   : > { %2328 = vperm.xlu0 %3685, %v4294_v35  }
 0x60a   : > { %2265 = vperm.xlu1 %3683, %v4294_v35  }
 0x60b   : > { %v1186_v38 = vpop.permute.xlu1 %1185 }
 0x60c   : > { %v1218_v31 = vsel %vm1217_vm0, %v1209_v32, %v1186_v38 }
 0x60d   : > { %3514 = vmatprep.mubr.msk.f32.mxu0 %vm1230_vm1, %v1218_v31  ;;  %3686 = vset.pattern.permute.xlu0 %v3906_v40 }
 0x60e   : > { %3684 = vset.pattern.permute.xlu1 %v3905_v11  ;;  %2365 = vperm.xlu0 %3686, %v4289_v34  }
 0x60f   : > { %v1163_v54 = vpop.permute.xlu0 %1162  ;;  %2304 = vperm.xlu1 %3684, %v4289_v34   ;;  %v1188_v56 = vpop.permute.xlu1 %1187 }
 0x610   : > { %v1210_v7 = vsel %vm437_vm13, %v4568_v1, %v1163_v54 }
 0x611   : > { %v1219_v36 = vsel %vm1217_vm0, %v1210_v7, %v1188_v56 }
 0x612   : > { %3515 = vmatmul.mubr.msk.f32.vlgmr.msra.gmra.mxu0 %vm1230_vm1, %v1219_v36  ;;  %2377 = vperm.xlu0 %3686, %v4300_v39  }
 0x613   : > { %v1165_v53 = vpop.permute.xlu0 %1164  ;;  %2312 = vperm.xlu1 %3684, %v4275_v12   ;;  %v1167_v6 = vpop.permute.xlu1 %1166 }
 0x614   : > { %v1211_v38 = vsel %vm437_vm13, %v4599_v49, %v1165_v53  ;;  %v1212_v1 = vsel %vm437_vm13, %v4606_v3, %v1167_v6  ;;  %v3907_v49 = vmov 21   ;;  %v3908_v53 = vmov 6  }
 0x616   : > { %2385 = vperm.xlu0 %3686, %v4308_v42  }
 0x617   : > { %v1190_v11 = vpop.permute.xlu0 %1189  ;;  %2316 = vperm.xlu1 %3684, %v4300_v39   ;;  %v1192_v36 = vpop.permute.xlu1 %1191 }
 0x618   : > { %v1220_v54 = vsel %vm1217_vm0, %v1211_v38, %v1190_v11  ;;  %v1221_v56 = vsel %vm1217_vm0, %v1212_v1, %v1192_v36  ;;  %v3910_v11 = vmov 22  }
 0x619   : > { %3517 = vmatprep.mubr.msk.f32.mxu0 %vm1230_vm1, %v1220_v54 }
 0x61a   : > { %3518 = vmatmul.mubr.msk.f32.gmra.mxu0 %vm1230_vm1, %v1221_v56  ;;  %2393 = vperm.xlu0 %3686, %v4313_v43  }
 0x61b   : > { %v1169_v32 = vpop.permute.xlu0 %1168  ;;  %2324 = vperm.xlu1 %3684, %v4308_v42  }
 0x61c   : > { %v1213_v31 = vsel %vm437_vm13, %v4613_v48, %v1169_v32  ;;  %v3909_v48 = vmov 14  }
 0x61e   : > { %3689 = vset.pattern.permute.xlu0 %v3907_v49 }
 0x61f   : > { %v1194_v3 = vpop.permute.xlu0 %1193  ;;  %2332 = vperm.xlu1 %3684, %v4313_v43   ;;  %2430 = vperm.xlu0 %3689, %v4267_v14  }
 0x620   : > { %v1222_v7 = vsel %vm1217_vm0, %v1213_v31, %v1194_v3 }
 0x621   : > { %3520 = vmatprep.mubr.msk.f32.mxu0 %vm1230_vm1, %v1222_v7 }
 0x623   : > { %3687 = vset.pattern.permute.xlu1 %v3906_v40  ;;  %2442 = vperm.xlu0 %3689, %v4283_v26  }
 0x624   : > { %2369 = vperm.xlu1 %3687, %v4267_v14  }
 0x627   : > { %2450 = vperm.xlu0 %3689, %v4294_v35  }
 0x628   : > { %2373 = vperm.xlu1 %3687, %v4275_v12  }
 0x62b   : > { %3690 = vset.pattern.permute.xlu0 %v3908_v53 }
 0x62c   : > { %2381 = vperm.xlu1 %3687, %v4283_v26   ;;  %2489 = vperm.xlu0 %3690, %v4289_v34  }
 0x630   : > { %2389 = vperm.xlu1 %3687, %v4294_v35   ;;  %2501 = vperm.xlu0 %3690, %v4300_v39  }
 0x634   : > { %3688 = vset.pattern.permute.xlu1 %v3907_v49  ;;  %2509 = vperm.xlu0 %3690, %v4308_v42  }
 0x635   : > { %2426 = vperm.xlu1 %3688, %v4289_v34  }
 0x638   : > { %2517 = vperm.xlu0 %3690, %v4313_v43  }
 0x639   : > { %2434 = vperm.xlu1 %3688, %v4275_v12  }
 0x63c   : > { %3693 = vset.pattern.permute.xlu0 %v3909_v48 }
 0x63d   : > { %2438 = vperm.xlu1 %3688, %v4300_v39   ;;  %2554 = vperm.xlu0 %3693, %v4267_v14  }
 0x641   : > { %2446 = vperm.xlu1 %3688, %v4308_v42   ;;  %2566 = vperm.xlu0 %3693, %v4283_v26  }
 0x642   : > { %v1175_v40 = vpop.permute.xlu1 %1174 }
 0x643   : > { %v1216_v3 = vsel %vm437_vm13, %v4671_v55, %v1175_v40 }
 0x644   : > { %v1173_v38 = vpop.permute.xlu0 %1172 }
 0x645   : > { %2454 = vperm.xlu1 %3688, %v4313_v43   ;;  %2574 = vperm.xlu0 %3693, %v4294_v35   ;;  %v1215_v32 = vsel %vm437_vm13, %v4677_v27, %v1173_v38 }
 0x646   : > { %v1200_v6 = vpop.permute.xlu1 %1199 }
 0x648   : > { %v1198_v54 = vpop.permute.xlu0 %1197 }
 0x649   : > { %3691 = vset.pattern.permute.xlu1 %v3908_v53  ;;  %3694 = vset.pattern.permute.xlu0 %v3910_v11  ;;  %v1224_v31 = vsel %vm1217_vm0, %v1215_v32, %v1198_v54  ;;  %v3911_v53 = vmov 7   ;;  %v3912_v54 = vmov 15  }
 0x64a   : > { %2493 = vperm.xlu1 %3691, %v4267_v14   ;;  %v1171_v1 = vpop.permute.xlu1 %1170  ;;  %2611 = vperm.xlu0 %3694, %v4289_v34  }
 0x64b   : > { %v1214_v36 = vsel %vm437_vm13, %v4631_v23, %v1171_v1  ;;  %v1225_v23 = vsel %vm1217_vm0, %v1216_v3, %v1200_v6 }
 0x64e   : > { %2497 = vperm.xlu1 %3691, %v4275_v12   ;;  %v1196_v56 = vpop.permute.xlu1 %1195  ;;  %2623 = vperm.xlu0 %3694, %v4300_v39  }
 0x64f   : > { %v1223_v49 = vsel %vm1217_vm0, %v1214_v36, %v1196_v56 }
 0x650   : > { %3521 = vmatmul.mubr.msk.f32.gmra.mxu0 %vm1230_vm1, %v1223_v49 }
 0x651   : > { %3523 = vmatprep.mubr.msk.f32.mxu0 %vm1230_vm1, %v1224_v31 }
 0x652   : > { %2505 = vperm.xlu1 %3691, %v4283_v26   ;;  %2631 = vperm.xlu0 %3694, %v4308_v42  }
 0x654   : > { %3524 = vmatmul.mubr.msk.f32.gmra.mxu0 %vm1230_vm1, %v1225_v23 }
 0x655   : > { %v4827_v27 = vpop.permute.xlu0 %2139  ;;  %3555 = vmatprep.mubr.msk.f32.mxu0 %vm3914_vm2, %v6134_v5 }
 0x656   : > { %6172 = vst [vmem:[#allocation83_spill] sm:$0xff] %v4827_v27  ;;  %2513 = vperm.xlu1 %3691, %v4294_v35   ;;  %2639 = vperm.xlu0 %3694, %v4313_v43  }
 0x659   : > { %v4831_v7 = vpop.permute.xlu0 %2147 }
 0x65a   : > { %6173 = vst [vmem:[#allocation84_spill] sm:$0xff] %v4831_v7  ;;  %3692 = vset.pattern.permute.xlu1 %v3909_v48  ;;  %3697 = vset.pattern.permute.xlu0 %v3911_v53 }
 0x65b   : > { %2550 = vperm.xlu1 %3692, %v4289_v34   ;;  %v4834_v55 = vpop.permute.xlu1 %2135  ;;  %2678 = vperm.xlu0 %3697, %v4267_v14  }
 0x65c   : > { %6174 = vst [vmem:[#allocation85_spill] sm:$0xff] %v4834_v55 }
 0x65e   : > { %v4837_v40 = vpop.permute.xlu0 %2184 }
 0x65f   : > { %2558 = vperm.xlu1 %3692, %v4275_v12   ;;  %v4840_v6 = vpop.permute.xlu1 %2143  ;;  %2690 = vperm.xlu0 %3697, %v4283_v26  }
 0x660   : > { %6175 = vst [vmem:[#allocation86_spill] sm:$0xff] %v4840_v6 }
 0x662   : > { %v4843_v38 = vpop.permute.xlu0 %2196 }
 0x663   : > { %6176 = vst [vmem:[#allocation87_spill] sm:$0xff] %v4843_v38  ;;  %2562 = vperm.xlu1 %3692, %v4300_v39   ;;  %2698 = vperm.xlu0 %3697, %v4294_v35  }
 0x664   : > { %v4847_v48 = vpop.permute.xlu1 %2180 }
 0x666   : > { %v4849_v1 = vpop.permute.xlu0 %2204 }
 0x667   : > { %6177 = vst [vmem:[#allocation88_spill] sm:$0xff] %v4849_v1  ;;  %2570 = vperm.xlu1 %3692, %v4308_v42   ;;  %3698 = vset.pattern.permute.xlu0 %v3912_v54 }
 0x668   : > { %v4852_v36 = vpop.permute.xlu1 %2188  ;;  %2735 = vperm.xlu0 %3698, %v4289_v34  }
 0x66b   : > { %2578 = vperm.xlu1 %3692, %v4313_v43   ;;  %v4856_v56 = vpop.permute.xlu0 %2241 }
 0x66c   : > { %v4858_v32 = vpop.permute.xlu1 %2192  ;;  %2747 = vperm.xlu0 %3698, %v4300_v39  }
 0x66f   : > { %3695 = vset.pattern.permute.xlu1 %v3910_v11  ;;  %v4861_v49 = vpop.permute.xlu0 %2253  ;;  %v3913_v11 = vmov 23  }
 0x670   : > { %2615 = vperm.xlu1 %3695, %v4267_v14   ;;  %v4864_v31 = vpop.permute.xlu1 %2200  ;;  %2755 = vperm.xlu0 %3698, %v4308_v42  }
 0x671   : > { %6178 = vst [vmem:[#allocation89_spill] sm:$0xff] %v4864_v31 }
 0x673   : > { %v4867_v3 = vpop.permute.xlu0 %2261 }
 0x674   : > { %6179 = vst [vmem:[#allocation90_spill] sm:$0xff] %v4867_v3  ;;  %2619 = vperm.xlu1 %3695, %v4275_v12   ;;  %v4870_v23 = vpop.permute.xlu1 %2208  ;;  %2763 = vperm.xlu0 %3698, %v4313_v43  }
 0x675   : > { %6180 = vst [vmem:[#allocation91_spill] sm:$0xff] %v4870_v23 }
 0x677   : > { %v4873_v1 = vpop.permute.xlu0 %2269 }
 0x678   : > { %6181 = vst [vmem:[#allocation92_spill] sm:$0xff] %v4873_v1  ;;  %2627 = vperm.xlu1 %3695, %v4283_v26   ;;  %3701 = vset.pattern.permute.xlu0 %v3913_v11 }
 0x679   : > { %v4876_v38 = vpop.permute.xlu1 %2245  ;;  %2800 = vperm.xlu0 %3701, %v4267_v14  }
 0x67c   : > { %2635 = vperm.xlu1 %3695, %v4294_v35   ;;  %v4880_v31 = vpop.permute.xlu0 %2308 }
 0x67d   : > { %v4882_v3 = vpop.permute.xlu1 %2249  ;;  %2812 = vperm.xlu0 %3701, %v4283_v26  }
 0x680   : > { %3696 = vset.pattern.permute.xlu1 %v3911_v53  ;;  %v4885_v23 = vpop.permute.xlu0 %2320 }
 0x681   : > { %6182 = vst [vmem:[#allocation93_spill] sm:$0xff] %v4885_v23  ;;  %2674 = vperm.xlu1 %3696, %v4289_v34   ;;  %v4888_v1 = vpop.permute.xlu1 %2257  ;;  %2820 = vperm.xlu0 %3701, %v4294_v35  }
 0x682   : > { %6183 = vst [vmem:[#allocation94_spill] sm:$0xff] %v4888_v1 }
 0x684   : > { %v4891_v7 = vpop.permute.xlu0 %2328 }
 0x685   : > { %6184 = vst [vmem:[#allocation95_spill] sm:$0xff] %v4891_v7  ;;  %2682 = vperm.xlu1 %3696, %v4275_v12   ;;  %v4894_v6 = vpop.permute.xlu1 %2265  ;;  %2929 = vrot.lane.b32.xlu0 %v4476_v57, %s3901_s4 }
 0x686   : > { %6185 = vst [vmem:[#allocation96_spill] sm:$0xff] %v4894_v6 }
 0x689   : > { %2686 = vperm.xlu1 %3696, %v4300_v39   ;;  %v4899_v53 = vpop.permute.xlu0 %2365  ;;  %2925 = vrot.lane.b32.xlu0 %v4494_v15, %s3901_s4 }
 0x68a   : > { %v4903_v23 = vpop.permute.xlu1 %2304 }
 0x68d   : > { %2694 = vperm.xlu1 %3696, %v4308_v42   ;;  %v4906_v1 = vpop.permute.xlu0 %2377  ;;  %2921 = vrot.lane.b32.xlu0 %v4512_v46, %s3901_s4 }
 0x68e   : > { %v4910_v7 = vpop.permute.xlu1 %2312 }
 0x691   : > { %2702 = vperm.xlu1 %3696, %v4313_v43   ;;  %v4913_v57 = vpop.permute.xlu0 %2385  ;;  %2917 = vrot.lane.b32.xlu0 %v4526_v21, %s3901_s4 }
 0x692   : > { %6186 = vst [vmem:[#allocation97_spill] sm:$0xff] %v4913_v57  ;;  %v4917_v6 = vpop.permute.xlu1 %2316 }
 0x695   : > { %3699 = vset.pattern.permute.xlu1 %v3912_v54  ;;  %v4919_v15 = vpop.permute.xlu0 %2393  ;;  %2913 = vrot.lane.b32.xlu0 %v4546_v4, %s3901_s4 }
 0x696   : > { %6187 = vst [vmem:[#allocation98_spill] sm:$0xff] %v4919_v15  ;;  %2739 = vperm.xlu1 %3699, %v4267_v14   ;;  %v4924_v46 = vpop.permute.xlu1 %2324 }
 0x697   : > { %6188 = vst [vmem:[#allocation99_spill] sm:$0xff] %v4924_v46 }
 0x699   : > { %2909 = vrot.lane.b32.xlu0 %v4564_v17, %s3901_s4 }
 0x69a   : > { %2743 = vperm.xlu1 %3699, %v4275_v12   ;;  %v4929_v57 = vpop.permute.xlu1 %2332  ;;  %v4931_v21 = vpop.permute.xlu0 %2430 }
 0x69b   : > { %6189 = vst [vmem:[#allocation100_spill] sm:$0xff] %v4929_v57 }
 0x69e   : > { %2751 = vperm.xlu1 %3699, %v4283_v26   ;;  %v4934_v54 = vpop.permute.xlu0 %2442 }
 0x69f   : > { %6190 = vst [vmem:[#allocation101_spill] sm:$0xff] %v4934_v54  ;;  %v4936_v15 = vpop.permute.xlu1 %2369 }
 0x6a2   : > { %2759 = vperm.xlu1 %3699, %v4294_v35   ;;  %v4939_v14 = vpop.permute.xlu0 %2450 }
 0x6a3   : > { %6191 = vst [vmem:[#allocation102_spill] sm:$0xff] %v4939_v14  ;;  %v4941_v4 = vpop.permute.xlu1 %2373 }
 0x6a6   : > { %3700 = vset.pattern.permute.xlu1 %v3913_v11 }
 0x6a7   : > { %2796 = vperm.xlu1 %3700, %v4289_v34   ;;  %v4944_v17 = vpop.permute.xlu1 %2381  ;;  %v4946_v57 = vpop.permute.xlu0 %2489 }
 0x6a8   : > { %6192 = vst [vmem:[#allocation103_spill] sm:$0xff] %v4944_v17  ;;  %6193 = vst [vmem:[#allocation104_spill] sm:$0xff] %v4946_v57 }
 0x6ab   : > { %2804 = vperm.xlu1 %3700, %v4275_v12   ;;  %v4949_v26 = vpop.permute.xlu1 %2389  ;;  %v4951_v54 = vpop.permute.xlu0 %2501 }
 0x6ac   : > { %6194 = vst [vmem:[#allocation105_spill] sm:$0xff] %v4949_v26  ;;  %6195 = vst [vmem:[#allocation106_spill] sm:$0xff] %v4951_v54 }
 0x6af   : > { %2808 = vperm.xlu1 %3700, %v4300_v39   ;;  %v4954_v35 = vpop.permute.xlu0 %2509 }
 0x6b0   : > { %6196 = vst [vmem:[#allocation107_spill] sm:$0xff] %v4954_v35  ;;  %v4956_v14 = vpop.permute.xlu1 %2426 }
 0x6b3   : > { %2816 = vperm.xlu1 %3700, %v4308_v42   ;;  %v4959_v11 = vpop.permute.xlu0 %2517 }
 0x6b4   : > { %6197 = vst [vmem:[#allocation108_spill] sm:$0xff] %v4959_v11  ;;  %v4961_v34 = vpop.permute.xlu1 %2434 }
 0x6b7   : > { %2824 = vperm.xlu1 %3700, %v4313_v43  }
 0x6b8   : > { %v4964_v17 = vpop.permute.xlu1 %2438  ;;  %v4966_v12 = vpop.permute.xlu0 %2554 }
 0x6b9   : > { %6198 = vst [vmem:[#allocation109_spill] sm:$0xff] %v4966_v12 }
 0x6bb   : > { %2927 = vrot.lane.b32.xlu1 %v4484_v61, %s3901_s4 }
 0x6bc   : > { %v4970_v39 = vpop.permute.xlu1 %2446  ;;  %v4972_v35 = vpop.permute.xlu0 %2566 }
 0x6bd   : > { %6199 = vst [vmem:[#allocation110_spill] sm:$0xff] %v4970_v39  ;;  %6200 = vst [vmem:[#allocation111_spill] sm:$0xff] %v4972_v35 }
 0x6bf   : > { %2923 = vrot.lane.b32.xlu1 %v4503_v52, %s3901_s4 }
 0x6c0   : > { %v4976_v42 = vpop.permute.xlu1 %2454  ;;  %v4978_v11 = vpop.permute.xlu0 %2574 }
 0x6c1   : > { %6201 = vst [vmem:[#allocation112_spill] sm:$0xff] %v4976_v42  ;;  %6202 = vst [vmem:[#allocation113_spill] sm:$0xff] %v4978_v11 }
 0x6c3   : > { %2919 = vrot.lane.b32.xlu1 %v4521_v29, %s3901_s4 }
 0x6c5   : > { %v4982_v43 = vpop.permute.xlu1 %2493  ;;  %v4984_v26 = vpop.permute.xlu0 %2611 }
 0x6c6   : > { %6203 = vst [vmem:[#allocation114_spill] sm:$0xff] %v4982_v43  ;;  %6204 = vst [vmem:[#allocation115_spill] sm:$0xff] %v4984_v26 }
 0x6c7   : > { %2915 = vrot.lane.b32.xlu1 %v4539_v22, %s3901_s4 }
 0x6c9   : > { %v4988_v61 = vpop.permute.xlu1 %2497  ;;  %v4990_v35 = vpop.permute.xlu0 %2623 }
 0x6ca   : > { %6205 = vst [vmem:[#allocation116_spill] sm:$0xff] %v4988_v61  ;;  %6206 = vst [vmem:[#allocation117_spill] sm:$0xff] %v4990_v35 }
 0x6cb   : > { %2911 = vrot.lane.b32.xlu1 %v4555_v16, %s3901_s4  ;;  %v1228_v16 = vsub.s32 1, %v4111_v45 }
 0x6cd   : > { %v4996_v29 = vpop.permute.xlu1 %2505  ;;  %v4998_v52 = vpop.permute.xlu0 %2631 }
 0x6ce   : > { %6207 = vst [vmem:[#allocation118_spill] sm:$0xff] %v4996_v29  ;;  %6208 = vst [vmem:[#allocation119_spill] sm:$0xff] %v4998_v52  ;;  %v3820_v52 = vld [vmem:[%s6081_s1 + $0xe8] sm:$0xff] }
 0x6cf   : > { %2907 = vrot.lane.b32.xlu1 %v4579_v41, %s3901_s4  ;;  %v5014_v29 = vrot.slane %v3820_v52, %v1228_v16 }
 0x6d1   : > { %v5002_v22 = vpop.permute.xlu1 %2513  ;;  %v5004_v11 = vpop.permute.xlu0 %2639 }
 0x6d2   : > { %6209 = vst [vmem:[#allocation120_spill] sm:$0xff] %v5002_v22  ;;  %6210 = vst [vmem:[#allocation121_spill] sm:$0xff] %v5004_v11  ;;  %v3516_v55 = vpop.f32.mrf.mxu0 }
 0x6d3   : > { %v1327_v11 = vadd.f32 %v3516_v55, %v5014_v29 }
 0x6d4   : > { %v1321_v22 = vpop.f32.mrf.mxu0 }
 0x6d6   : > { %v2551_v42 = vpop.permute.xlu1 %2550  ;;  %v2679_v39 = vpop.permute.xlu0 %2678 }
 0x6da   : > { %v5007_v46 = vpop.permute.xlu1 %2558  ;;  %v5009_v27 = vpop.permute.xlu0 %2690 }
 0x6db   : > { %6211 = vst [vmem:[#allocation122_spill] sm:$0xff] %v5007_v46  ;;  %6212 = vst [vmem:[#allocation123_spill] sm:$0xff] %v5009_v27  ;;  %v1322_v46 = vadd.f32 %v1321_v22, %v5014_v29  ;;  %v3519_v12 = vpop.f32.mrf.mxu0  ;;  %v5022_v27 = vmax.f32 %v1327_v11, 0.0 }
 0x6dd   : > { %v5028_v52 = vmax.f32 %v1322_v46, 0.0  ;;  %v1331_v16 = vpop.f32.mrf.mxu0  ;;  %v2706_v55 = vadd.f32 %v2679_v39, %v5022_v27  ;;  %v1409_v11 = vadd.f32 %v4328_v47, %v5022_v27  ;;  %v1470_v46 = vadd.f32 %v4381_v10, %v5022_v27 }
 0x6de   : > { %v2563_v41 = vpop.permute.xlu1 %2562  ;;  %v5016_v35 = vpop.permute.xlu0 %2698  ;;  %v1596_v10 = vadd.f32 %v4427_v33, %v5022_v27 }
 0x6df   : > { %6213 = vst [vmem:[#allocation124_spill] sm:$0xff] %v5016_v35  ;;  %v1337_v35 = vadd.f32 %v3519_v12, %v5014_v29  ;;  %v2581_v12 = vadd.f32 %v2551_v42, %v5028_v52  ;;  %v1408_v39 = vadd.f32 %v4349_v60, %v5028_v52  ;;  %v1595_v47 = vadd.f32 %v4398_v18, %v5028_v52 }
 0x6e0   : > { %v5059_v42 = vsel %vm437_vm13, %v2706_v55, -inf  ;;  %v1656_v60 = vadd.f32 %v4447_v50, %v5028_v52  ;;  %v5072_v33 = vsel %vm437_vm13, %v1409_v11, -inf }
 0x6e1   : > { %v5050_v57 = vmax.f32 %v1337_v35, 0.0  ;;  %6217 = vst [vmem:[#allocation128_spill] sm:$0xff] %v5059_v42  ;;  %v5081_v50 = vsel %vm1477_vm3, %v2581_v12, -inf }
 0x6e2   : > { %v5019_v26 = vpop.permute.xlu1 %2570  ;;  %6219 = vst [vmem:[#allocation130_spill] sm:$0xff] %v5081_v50 }
 0x6e3   : > { %6214 = vst [vmem:[#allocation125_spill] sm:$0xff] %v5019_v26  ;;  %v2736_v45 = vpop.permute.xlu0 %2735  ;;  %v1332_v26 = vadd.f32 %v1331_v16, %v5014_v29  ;;  %v1469_v16 = vadd.f32 %v4352_v62, %v5028_v52  ;;  %v1718_v62 = vadd.f32 %v4469_v2, %v5022_v27  ;;  %v5084_v2 = vsel %vm437_vm13, %v1408_v39, -inf }
 0x6e4   : > { %v2584_v11 = vadd.f32 %v2563_v41, %v5050_v57  ;;  %v1411_v39 = vadd.f32 %v4360_v0, %v5050_v57  ;;  %v5109_v41 = vsel %vm1477_vm3, %v1656_v60, -inf  ;;  %v1598_v0 = vadd.f32 %v4406_v24, %v5050_v57  ;;  %v6229_v24 = vld [vmem:[#allocation21_spill] sm:$0xff] }
 0x6e5   : > { %6224 = vst [vmem:[#allocation135_spill] sm:$0xff] %v5109_v41  ;;  %v6230_v41 = vld [vmem:[#allocation29_spill] sm:$0xff] }
 0x6e6   : > { %v5024_v54 = vpop.permute.xlu1 %2578 }
 0x6e7   : > { %6215 = vst [vmem:[#allocation126_spill] sm:$0xff] %v5024_v54  ;;  %v5026_v61 = vpop.permute.xlu0 %2747  ;;  %v1532_v54 = vadd.f32 %v4379_v9, %v5022_v27  ;;  %v1657_v9 = vadd.f32 %v4420_v28, %v5022_v27  ;;  %v5075_v28 = vsel %vm1477_vm3, %v1470_v46, -inf  ;;  %v5094_v46 = vsel %vm437_vm13, %v1595_v47, -inf }
 0x6e8   : > { %6221 = vst [vmem:[#allocation132_spill] sm:$0xff] %v5094_v46 }
 0x6e9   : > { %v5078_v55 = vsel %vm1539_vm4, %v1532_v54, -inf  ;;  %v5097_v54 = vsel %vm437_vm13, %v1596_v10, -inf  ;;  %v5100_v12 = vsel %vm1477_vm3, %v1657_v9, -inf }
 0x6ea   : > { %6218 = vst [vmem:[#allocation129_spill] sm:$0xff] %v5078_v55  ;;  %6222 = vst [vmem:[#allocation133_spill] sm:$0xff] %v5097_v54  ;;  %v1659_v54 = vadd.f32 %v6230_v41, %v5050_v57 }
 0x6eb   : > { %v5033_v43 = vpop.permute.xlu1 %2615  ;;  %v5035_v22 = vpop.permute.xlu0 %2755  ;;  %6223 = vst [vmem:[#allocation134_spill] sm:$0xff] %v5100_v12  ;;  %v5133_v12 = vsel %vm1477_vm3, %v2584_v11, -inf }
 0x6ec   : > { %6216 = vst [vmem:[#allocation127_spill] sm:$0xff] %v5035_v22  ;;  %v1531_v22 = vadd.f32 %v4401_v8, %v5028_v52  ;;  %v5065_v8 = vmax.f32 %v1332_v26, 0.0  ;;  %v5087_v26 = vsel %vm1477_vm3, %v1469_v16, -inf  ;;  %v1472_v16 = vadd.f32 %v4364_v59, %v5050_v57 }
 0x6ed   : > { %v1717_v59 = vadd.f32 %v4439_v44, %v5028_v52 }
 0x6ee   : > { %v5090_v42 = vsel %vm1539_vm4, %v1531_v22, -inf  ;;  %v1534_v22 = vadd.f32 %v4408_v20, %v5050_v57  ;;  %v1410_v10 = vadd.f32 %v4334_v51, %v5065_v8  ;;  %v1471_v9 = vadd.f32 %v4358_v63, %v5065_v8  ;;  %v6227_v51 = vld [vmem:[#allocation42_spill] sm:$0xff] }
 0x6ef   : > { %v5067_v35 = vpop.permute.xlu1 %2619  ;;  %v5069_v18 = vpop.permute.xlu0 %2763  ;;  %6220 = vst [vmem:[#allocation131_spill] sm:$0xff] %v5090_v42  ;;  %v1533_v20 = vadd.f32 %v4384_v13, %v5065_v8  ;;  %v1597_v60 = vadd.f32 %v4403_v19, %v5065_v8  ;;  %v1780_v63 = vadd.f32 %v6227_v51, %v5028_v52  ;;  %6228 = vst [vmem:[#allocation42_spill] sm:$0xff] %v5133_v12  ;;  %v6231_v13 = vld [vmem:[#allocation27_spill] sm:$0xff]  ;;  %v6257_v42 = vld [vmem:[#allocation48_spill] sm:$0xff] }
 0x6f0   : > { %v1658_v44 = vadd.f32 %v6229_v24, %v5065_v8  ;;  %v1720_v46 = vadd.f32 %v6231_v13, %v5050_v57  ;;  %v2766_v19 = vadd.f32 %v2736_v45, %v5028_v52  ;;  %v5149_v11 = vsel %vm1539_vm4, %v1534_v22, -inf  ;;  %v6236_v45 = vld [vmem:[#allocation26_spill] sm:$0xff] }
 0x6f1   : > { %6233 = vst [vmem:[#allocation29_spill] sm:$0xff] %v5149_v11  ;;  %v5154_v24 = vsel %vm437_vm13, %v1410_v10, -inf  ;;  %v5157_v41 = vsel %vm1477_vm3, %v1471_v9, -inf  ;;  %v5160_v13 = vsel %vm437_vm13, %v1598_v0, -inf  ;;  %v5170_v22 = vsel %vm437_vm13, %v1597_v60, -inf  ;;  %v6239_v10 = vld [vmem:[#allocation32_spill] sm:$0xff] }
 0x6f2   : > { %6235 = vst [vmem:[#allocation138_spill] sm:$0xff] %v5160_v13  ;;  %6238 = vst [vmem:[#allocation139_spill] sm:$0xff] %v5170_v22  ;;  %v6240_v9 = vld [vmem:[#allocation33_spill] sm:$0xff]  ;;  %v5177_v0 = vsel %vm1477_vm3, %v1658_v44, -inf  ;;  %v5180_v13 = vsel %vm1477_vm3, %v1659_v54, -inf  ;;  %v5188_v60 = vsel %vm1477_vm3, %v2766_v19, -inf  ;;  %v2769_v54 = vadd.f32 %v5026_v61, %v5050_v57 }
 0x6f3   : > { %v5111_v47 = vpop.permute.xlu1 %2627  ;;  %v1782_v11 = vadd.f32 %v6240_v9, %v5065_v8  ;;  %6241 = vst [vmem:[#allocation32_spill] sm:$0xff] %v5177_v0  ;;  %6242 = vst [vmem:[#allocation33_spill] sm:$0xff] %v5180_v13  ;;  %v6246_v9 = vld [vmem:[#allocation38_spill] sm:$0xff]  ;;  %v6247_v44 = vld [vmem:[#allocation51_spill] sm:$0xff] }
 0x6f4   : > { %6225 = vst [vmem:[#allocation136_spill] sm:$0xff] %v5111_v47  ;;  %v5121_v50 = vpop.permute.xlu0 %2800  ;;  %v5128_v47 = vsel %vm1539_vm4, %v1718_v62, -inf  ;;  %v5143_v62 = vsel %vm437_vm13, %v1411_v39, -inf  ;;  %v1719_v39 = vadd.f32 %v6236_v45, %v5065_v8  ;;  %v5183_v45 = vsel %vm1539_vm4, %v1717_v59, -inf  ;;  %v6250_v19 = vld [vmem:[#allocation41_spill] sm:$0xff] }
 0x6f5   : > { %6226 = vst [vmem:[#allocation137_spill] sm:$0xff] %v5128_v47  ;;  %v5146_v47 = vsel %vm1477_vm3, %v1472_v16, -inf  ;;  %v5167_v16 = vsel %vm1539_vm4, %v1533_v20, -inf  ;;  %6243 = vst [vmem:[#allocation140_spill] sm:$0xff] %v5183_v45  ;;  %v6244_v20 = vld [vmem:[#allocation45_spill] sm:$0xff]  ;;  %v1841_v22 = vadd.f32 %v6246_v9, %v5028_v52  ;;  %v1842_v0 = vadd.f32 %v6247_v44, %v5022_v27 }
 0x6f6   : > { %6232 = vst [vmem:[#allocation21_spill] sm:$0xff] %v5146_v47  ;;  %6237 = vst [vmem:[#allocation26_spill] sm:$0xff] %v5167_v16  ;;  %v1783_v55 = vadd.f32 %v6244_v20, %v5050_v57  ;;  %v5200_v59 = vsel %vm1539_vm4, %v1719_v39, -inf  ;;  %v6249_v20 = vld [vmem:[#allocation39_spill] sm:$0xff]  ;;  %v1844_v13 = vadd.f32 %v6250_v19, %v5050_v57  ;;  %v5211_v9 = vsel %vm437_vm13, %v1780_v63, -inf  ;;  %v6254_v39 = vld [vmem:[#allocation57_spill] sm:$0xff] }
 0x6f7   : > { %v5151_v51 = vpop.permute.xlu1 %2635  ;;  %6248 = vst [vmem:[#allocation38_spill] sm:$0xff] %v5200_v59  ;;  %v1843_v45 = vadd.f32 %v6249_v20, %v5065_v8  ;;  %6251 = vst [vmem:[#allocation51_spill] sm:$0xff] %v5211_v9  ;;  %v5217_v61 = vsel %vm437_vm13, %v1782_v11, -inf  ;;  %v1902_v59 = vadd.f32 %v6254_v39, %v5028_v52  ;;  %v6256_v19 = vld [vmem:[#allocation46_spill] sm:$0xff]  ;;  %v1904_v47 = vadd.f32 %v6257_v42, %v5065_v8  ;;  %v6258_v63 = vld [vmem:[#allocation59_spill] sm:$0xff] }
 0x6f8   : > { %6234 = vst [vmem:[#allocation27_spill] sm:$0xff] %v5151_v51  ;;  %v5164_v12 = vpop.permute.xlu0 %2812  ;;  %v1781_v51 = vadd.f32 %v6239_v10, %v5022_v27  ;;  %v5191_v10 = vsel %vm1539_vm4, %v1720_v46, -inf  ;;  %6253 = vst [vmem:[#allocation41_spill] sm:$0xff] %v5217_v61  ;;  %v5222_v20 = vsel %vm437_vm13, %v1783_v55, -inf  ;;  %v1903_v16 = vadd.f32 %v6256_v19, %v5022_v27  ;;  %v6261_v55 = vld [vmem:[#allocation54_spill] sm:$0xff] }
 0x6f9   : > { %6245 = vst [vmem:[#allocation45_spill] sm:$0xff] %v5191_v10  ;;  %6255 = vst [vmem:[#allocation57_spill] sm:$0xff] %v5222_v20  ;;  %v1905_v9 = vadd.f32 %v6258_v63, %v5050_v57  ;;  %v5233_v11 = vsel %vm1477_vm3, %v1841_v22, -inf  ;;  %v5236_v39 = vsel %vm1477_vm3, %v1842_v0, -inf  ;;  %v5241_v19 = vsel %vm1477_vm3, %v2769_v54, -inf  ;;  %v6266_v54 = vld [vmem:[#allocation58_spill] sm:$0xff] }
 0x6fa   : > { %v5214_v44 = vsel %vm437_vm13, %v1781_v51, -inf  ;;  %v2643_v51 = vadd.f32 %v5033_v43, %v5022_v27  ;;  %6259 = vst [vmem:[#allocation46_spill] sm:$0xff] %v5233_v11  ;;  %6260 = vst [vmem:[#allocation48_spill] sm:$0xff] %v5236_v39  ;;  %v5244_v42 = vsel %vm1477_vm3, %v1843_v45, -inf  ;;  %v5247_v63 = vsel %vm1477_vm3, %v1844_v13, -inf  ;;  %v6263_v43 = vld [vmem:[#allocation65_spill] sm:$0xff] }
 0x6fb   : > { %6252 = vst [vmem:[#allocation39_spill] sm:$0xff] %v5214_v44  ;;  %v1965_v44 = vadd.f32 %v6261_v55, %v5028_v52  ;;  %6262 = vst [vmem:[#allocation59_spill] sm:$0xff] %v5247_v63  ;;  %v1966_v20 = vadd.f32 %v6263_v43, %v5022_v27  ;;  %v5254_v0 = vsel %vm1539_vm4, %v1902_v59, -inf  ;;  %v6265_v55 = vld [vmem:[#allocation56_spill] sm:$0xff]  ;;  %v1968_v61 = vadd.f32 %v6266_v54, %v5050_v57 }
 0x6fc   : > { %v5206_v46 = vpop.permute.xlu1 %2674  ;;  %v5208_v10 = vpop.permute.xlu0 %2820  ;;  %6264 = vst [vmem:[#allocation54_spill] sm:$0xff] %v5254_v0  ;;  %v1967_v39 = vadd.f32 %v6265_v55, %v5065_v8  ;;  %v2026_v45 = vadd.f32 %v4704_v25, %v5028_v52  ;;  %v5263_v13 = vsel %vm1539_vm4, %v1903_v16, -inf  ;;  %v5266_v43 = vsel %vm1539_vm4, %v1904_v47, -inf  ;;  %v6268_v59 = vld [vmem:[#allocation64_spill] sm:$0xff]  ;;  %v6271_v47 = vld [vmem:[#allocation66_spill] sm:$0xff] }
 0x6fd   : > { %v5269_v63 = vsel %vm1539_vm4, %v1905_v9, -inf  ;;  %v2027_v0 = vadd.f32 %v6268_v59, %v5022_v27  ;;  %v5274_v55 = vsel %vm1539_vm4, %v2643_v51, -inf  ;;  %v2644_v54 = vadd.f32 %v5067_v35, %v5065_v8 }
 0x6fe   : > { %6267 = vst [vmem:[#allocation65_spill] sm:$0xff] %v5269_v63  ;;  %6269 = vst [vmem:[#allocation56_spill] sm:$0xff] %v5274_v55  ;;  %v5280_v25 = vsel %vm437_vm13, %v1965_v44, -inf  ;;  %v2028_v16 = vadd.f32 %v6271_v47, %v5065_v8  ;;  %v5285_v9 = vsel %vm437_vm13, %v1966_v20, -inf  ;;  %v2087_v51 = vadd.f32 %v4709_v37, %v5028_v52  ;;  %v6275_v47 = vld [vmem:[#allocation71_spill] sm:$0xff]  ;;  %v6277_v37 = vld [vmem:[#allocation73_spill] sm:$0xff] }
 0x6ff   : > { %6270 = vst [vmem:[#allocation58_spill] sm:$0xff] %v5280_v25  ;;  %6272 = vst [vmem:[#allocation64_spill] sm:$0xff] %v5285_v9  ;;  %v2088_v35 = vadd.f32 %v4733_v58, %v5022_v27  ;;  %v5296_v44 = vsel %vm437_vm13, %v1967_v39, -inf  ;;  %v5299_v55 = vsel %vm437_vm13, %v1968_v61, -inf  ;;  %v5302_v20 = vsel %vm1477_vm3, %v2026_v45, -inf  ;;  %v6278_v25 = vld [vmem:[#allocation81_spill] sm:$0xff] }
 0x700   : > { %v5251_v22 = vpop.permute.xlu1 %2682  ;;  %v2930_v11 = vpop.permute.xlu0 %2929  ;;  %6273 = vst [vmem:[#allocation66_spill] sm:$0xff] %v5296_v44  ;;  %6274 = vst [vmem:[#allocation141_spill] sm:$0xff] %v5302_v20  ;;  %v5307_v9 = vsel %vm1477_vm3, %v2027_v0, -inf  ;;  %v2090_v58 = vadd.f32 %v6277_v37, %v5050_v57  ;;  %v2150_v63 = vadd.f32 %v6278_v25, %v5028_v52  ;;  %v6279_v39 = vld [vmem:[#allocation78_spill] sm:$0xff]  ;;  %v5316_v61 = vsel %vm1539_vm4, %v2644_v54, -inf }
 0x701   : > { %3527 = vmatpush3.msra.mxu1 %v2930_v11  ;;  %v2029_v11 = vadd.f32 %v4712_v30, %v5050_v57  ;;  %v2089_v30 = vadd.f32 %v6275_v47, %v5065_v8  ;;  %6276 = vst [vmem:[#allocation71_spill] sm:$0xff] %v5307_v9  ;;  %v2151_v44 = vadd.f32 %v6279_v39, %v5022_v27  ;;  %6280 = vst [vmem:[#allocation73_spill] sm:$0xff] %v5316_v61  ;;  %v6281_v47 = vld [vmem:[#allocation80_spill] sm:$0xff]  ;;  %v6282_v0 = vld [vmem:[#allocation82_spill] sm:$0xff] }
 0x702   : > { %3528 = vmatprep.subr.mxu1 %v6134_v5  ;;  %v5319_v45 = vsel %vm1477_vm3, %v2028_v16, -inf  ;;  %v2152_v20 = vadd.f32 %v6281_v47, %v5065_v8  ;;  %v2153_v9 = vadd.f32 %v6282_v0, %v5050_v57  ;;  %v2828_v37 = vadd.f32 %v5121_v50, %v5022_v27 }
 0x703   : > { %v5328_v25 = vsel %vm1477_vm3, %v2029_v11, -inf  ;;  %v5331_v39 = vsel %vm1539_vm4, %v2087_v51, -inf  ;;  %v5334_v54 = vsel %vm1539_vm4, %v2088_v35, -inf  ;;  %v5339_v61 = vsel %vm1539_vm4, %v2089_v30, -inf }
 0x704   : > { %v5293_v59 = vpop.permute.xlu1 %2686  ;;  %v2211_v47 = vadd.f32 %v4847_v48, %v5028_v52  ;;  %v2212_v50 = vadd.f32 %v4837_v40, %v5022_v27  ;;  %v2213_v11 = vadd.f32 %v4852_v36, %v5065_v8  ;;  %v5348_v51 = vsel %vm1539_vm4, %v2090_v58, -inf }
 0x705   : > { %v5351_v35 = vsel %vm437_vm13, %v2150_v63, -inf  ;;  %v5354_v0 = vsel %vm437_vm13, %v2151_v44, -inf  ;;  %v2214_v30 = vadd.f32 %v4858_v32, %v5050_v57  ;;  %v5359_v48 = vsel %vm437_vm13, %v2152_v20, -inf }
 0x706   : > { %v5362_v40 = vsel %vm437_vm13, %v2153_v9, -inf  ;;  %v2272_v36 = vadd.f32 %v4856_v56, %v5028_v52  ;;  %v2273_v58 = vadd.f32 %v4876_v38, %v5022_v27  ;;  %v5369_v63 = vsel %vm1539_vm4, %v2828_v37, -inf }
 0x707   : > { %v2274_v44 = vadd.f32 %v4882_v3, %v5065_v8  ;;  %v2275_v32 = vadd.f32 %v4861_v49, %v5050_v57  ;;  %v2335_v20 = vadd.f32 %v4903_v23, %v5028_v52  ;;  %v5383_v56 = vsel %vm1477_vm3, %v2212_v50, -inf }
 0x708   : > { %v5336_v16 = vpop.permute.xlu1 %2694  ;;  %v5386_v38 = vsel %vm1477_vm3, %v2213_v11, -inf  ;;  %v2336_v3 = vadd.f32 %v4880_v31, %v5022_v27  ;;  %v5391_v37 = vsel %vm1477_vm3, %v2214_v30, -inf  ;;  %v2337_v49 = vadd.f32 %v4910_v7, %v5065_v8 }
 0x709   : > { %6283 = vst [vmem:[#allocation81_spill] sm:$0xff] %v5336_v16  ;;  %v5380_v16 = vsel %vm1477_vm3, %v2211_v47, -inf  ;;  %v2338_v23 = vadd.f32 %v4917_v6, %v5050_v57  ;;  %v2396_v47 = vadd.f32 %v4899_v53, %v5028_v52  ;;  %v5400_v50 = vsel %vm1539_vm4, %v2272_v36, -inf }
 0x70a   : > { %6285 = vst [vmem:[#allocation80_spill] sm:$0xff] %v5400_v50  ;;  %v5403_v11 = vsel %vm1539_vm4, %v2273_v58, -inf  ;;  %v2397_v31 = vadd.f32 %v4936_v15, %v5022_v27  ;;  %v2398_v30 = vadd.f32 %v4941_v4, %v5065_v8  ;;  %v2705_v7 = vadd.f32 %v5206_v46, %v5028_v52 }
 0x70b   : > { %6286 = vst [vmem:[#allocation82_spill] sm:$0xff] %v5403_v11  ;;  %v5412_v6 = vsel %vm1539_vm4, %v2274_v44, -inf  ;;  %v5415_v53 = vsel %vm1539_vm4, %v2275_v32, -inf  ;;  %v5418_v36 = vsel %vm437_vm13, %v2335_v20, -inf  ;;  %v2399_v15 = vadd.f32 %v4906_v1, %v5050_v57 }
 0x70c   : > { %v5377_v9 = vpop.permute.xlu1 %2702  ;;  %6287 = vst [vmem:[#allocation142_spill] sm:$0xff] %v5412_v6  ;;  %6288 = vst [vmem:[#allocation143_spill] sm:$0xff] %v5415_v53  ;;  %v2457_v4 = vadd.f32 %v4956_v14, %v5028_v52  ;;  %v2458_v46 = vadd.f32 %v4931_v21, %v5022_v27  ;;  %v5431_v53 = vsel %vm437_vm13, %v2337_v49, -inf  ;;  %v5434_v20 = vsel %vm437_vm13, %v2338_v23, -inf }
 0x70d   : > { %6284 = vst [vmem:[#allocation78_spill] sm:$0xff] %v5377_v9  ;;  %6289 = vst [vmem:[#allocation144_spill] sm:$0xff] %v5418_v36  ;;  %v5421_v9 = vsel %vm437_vm13, %v2336_v3, -inf  ;;  %v5437_v3 = vsel %vm1477_vm3, %v2396_v47, -inf  ;;  %v5440_v1 = vsel %vm1477_vm3, %v2397_v31, -inf  ;;  %v5443_v14 = vsel %vm1477_vm3, %v2398_v30, -inf }
 0x70e   : > { %6290 = vst [vmem:[#allocation145_spill] sm:$0xff] %v5421_v9  ;;  %6291 = vst [vmem:[#allocation146_spill] sm:$0xff] %v5431_v53  ;;  %v2459_v21 = vadd.f32 %v4961_v34, %v5065_v8  ;;  %v2460_v49 = vadd.f32 %v4964_v17, %v5050_v57  ;;  %v5460_v30 = vsel %vm1539_vm4, %v2457_v4, -inf  ;;  %v5463_v34 = vsel %vm1539_vm4, %v2458_v46, -inf  ;;  %v6300_v17 = vld [vmem:[#allocation104_spill] sm:$0xff] }
 0x70f   : > { %6292 = vst [vmem:[#allocation147_spill] sm:$0xff] %v5434_v20  ;;  %6293 = vst [vmem:[#allocation148_spill] sm:$0xff] %v5437_v3  ;;  %v2707_v4 = vadd.f32 %v5251_v22, %v5065_v8  ;;  %v6306_v22 = vld [vmem:[#allocation7_spill] sm:$0xff] }
 0x710   : > { %v3522_v58 = vpop.f32.mrf.mxu0  ;;  %6294 = vst [vmem:[#allocation149_spill] sm:$0xff] %v5440_v1  ;;  %6295 = vst [vmem:[#allocation150_spill] sm:$0xff] %v5443_v14  ;;  %v5457_v1 = vsel %vm1477_vm3, %v2399_v15, -inf  ;;  %v6302_v15 = vld [vmem:[#allocation114_spill] sm:$0xff]  ;;  %v5477_v46 = vsel %vm1539_vm4, %v2459_v21, -inf }
 0x711   : > { %v1347_v44 = vadd.f32 %v3522_v58, %v5014_v29  ;;  %v2740_v32 = vpop.permute.xlu1 %2739  ;;  %v5450_v58 = vsel %vm437_vm13, %v2705_v7, -inf  ;;  %6297 = vst [vmem:[#allocation152_spill] sm:$0xff] %v5457_v1  ;;  %6298 = vst [vmem:[#allocation153_spill] sm:$0xff] %v5460_v30  ;;  %v2520_v7 = vadd.f32 %v6300_v17, %v5028_v52  ;;  %v2521_v1 = vadd.f32 %v6302_v15, %v5022_v27  ;;  %v6307_v21 = vld [vmem:[#allocation106_spill] sm:$0xff] }
 0x712   : > { %v1341_v9 = vpop.f32.mrf.mxu0  ;;  %6296 = vst [vmem:[#allocation151_spill] sm:$0xff] %v5450_v58  ;;  %v2767_v47 = vadd.f32 %v2740_v32, %v5022_v27  ;;  %6299 = vst [vmem:[#allocation154_spill] sm:$0xff] %v5463_v34  ;;  %v5480_v17 = vsel %vm1539_vm4, %v2460_v49, -inf }
 0x713   : > { %v5452_v23 = vmax.f32 %v1347_v44, 0.0  ;;  %v1342_v3 = vadd.f32 %v1341_v9, %v5014_v29  ;;  %v6301_v44 = vld [vmem:[#allocation127_spill] sm:$0xff]  ;;  %6303 = vst [vmem:[#allocation104_spill] sm:$0xff] %v5477_v46  ;;  %v5493_v46 = vadd.f32 %v6307_v21, %v5050_v57  ;;  %v5496_v49 = vsel %vm437_vm13, %v2520_v7, -inf  ;;  %v6312_v7 = vld [vmem:[#allocation109_spill] sm:$0xff] }
 0x714   : > { %v3525_v31 = vpop.f32.mrf.mxu0  ;;  %6304 = vst [vmem:[#allocation127_spill] sm:$0xff] %v5480_v17  ;;  %v2775_v34 = vsel %vm1477_vm3, %v2767_v47, -inf  ;;  %6308 = vst [vmem:[#allocation114_spill] sm:$0xff] %v5496_v49 }
 0x715   : > { %v2771_v58 = vadd.f32 %v6301_v44, %v5452_v23  ;;  %v5469_v14 = vmax.f32 %v1342_v3, 0.0  ;;  %v1357_v9 = vadd.f32 %v3525_v31, %v5014_v29  ;;  %v2744_v32 = vpop.permute.xlu1 %2743  ;;  %v6305_v44 = vld [vmem:[#allocation116_spill] sm:$0xff] }
 0x716   : > { %v1351_v30 = vpop.f32.mrf.mxu0  ;;  %v2522_v3 = vadd.f32 %v6305_v44, %v5065_v8 }
 0x717   : > { %v2780_v31 = vsel %vm1477_vm3, %v2771_v58, -inf  ;;  %v5486_v20 = vmax.f32 %v1357_v9, 0.0  ;;  %v1352_v15 = vadd.f32 %v1351_v30, %v5014_v29  ;;  %v1412_v53 = vadd.f32 %v6306_v22, %v5469_v14  ;;  %v6309_v9 = vld [vmem:[#allocation12_spill] sm:$0xff] }
 0x718   : > { %v2781_v36 = vmax.f32 %v2775_v34, %v2780_v31  ;;  %v5505_v30 = vsel %vm437_vm13, %v2521_v1, -inf  ;;  %v5508_v34 = vsel %vm437_vm13, %v2707_v4, -inf  ;;  %v5513_v22 = vadd.f32 %v6312_v7, %v5022_v27  ;;  %v6314_v1 = vld [vmem:[#allocation9_spill] sm:$0xff]  ;;  %v6315_v4 = vld [vmem:[#allocation8_spill] sm:$0xff]  ;;  %v6316_v7 = vld [vmem:[#allocation14_spill] sm:$0xff] }
 0x719   : > { %v5498_v44 = vmax.f32 %v1352_v15, 0.0  ;;  %v2752_v47 = vpop.permute.xlu1 %2751  ;;  %v2773_v58 = vadd.f32 %v5069_v18, %v5486_v20  ;;  %v1415_v29 = vadd.f32 %v6309_v9, %v5486_v20  ;;  %6310 = vst [vmem:[#allocation116_spill] sm:$0xff] %v5505_v30  ;;  %6311 = vst [vmem:[#allocation7_spill] sm:$0xff] %v5508_v34  ;;  %v6313_v15 = vld [vmem:[#allocation122_spill] sm:$0xff]  ;;  %v2768_v18 = vadd.f32 %v2744_v32, %v5065_v8 }
 0x71a   : > { %v2770_v31 = vadd.f32 %v2752_v47, %v5469_v14  ;;  %v5517_v21 = vadd.f32 %v6313_v15, %v5065_v8  ;;  %v1413_v30 = vadd.f32 %v6314_v1, %v5452_v23  ;;  %v1420_v27 = vsel %vm437_vm13, %v1412_v53, -inf  ;;  %v6317_v1 = vld [vmem:[#allocation16_spill] sm:$0xff] }
 0x71b   : > { %v2784_v9 = vsel %vm1477_vm3, %v2773_v58, -inf  ;;  %v1414_v34 = vadd.f32 %v6315_v4, %v5498_v44  ;;  %v1473_v15 = vadd.f32 %v6316_v7, %v5469_v14  ;;  %v1426_v11 = vsel %vm437_vm13, %v1415_v29, -inf }
 0x71c   : > { %v2778_v47 = vsel %vm1477_vm3, %v2770_v31, -inf  ;;  %v2785_v49 = vmax.f32 %v5241_v19, %v2784_v9  ;;  %v1475_v6 = vadd.f32 %v6317_v1, %v5498_v44  ;;  %v6318_v19 = vld [vmem:[#allocation10_spill] sm:$0xff]  ;;  %v6319_v9 = vld [vmem:[#allocation11_spill] sm:$0xff]  ;;  %v5545_v29 = vsel %vm437_vm13, %v2522_v3, -inf }
 0x71d   : > { %v2779_v17 = vmax.f32 %v5188_v60, %v2778_v47  ;;  %v2760_v32 = vpop.permute.xlu1 %2759  ;;  %v1424_v58 = vsel %vm437_vm13, %v1414_v34, -inf  ;;  %v1474_v53 = vadd.f32 %v6318_v19, %v5452_v23  ;;  %v1476_v7 = vadd.f32 %v6319_v9, %v5486_v20  ;;  %v6320_v34 = vld [vmem:[#allocation18_spill] sm:$0xff]  ;;  %6321 = vst [vmem:[#allocation106_spill] sm:$0xff] %v5545_v29 }
 0x71e   : > { %v2772_v4 = vadd.f32 %v2760_v32, %v5498_v44  ;;  %v1425_v31 = vmax.f32 %v5154_v24, %v1424_v58  ;;  %v1422_v60 = vsel %vm437_vm13, %v1413_v30, -inf  ;;  %v1536_v47 = vadd.f32 %v6320_v34, %v5452_v23 }
 0x71f   : > { %v2786_v50 = vmax.f32 %v2779_v17, %v2781_v36  ;;  %v2776_v1 = vsel %vm1477_vm3, %v2768_v18, -inf  ;;  %v1421_v24 = vmax.f32 %v5084_v2, %v1420_v27  ;;  %v1427_v58 = vmax.f32 %v5143_v62, %v1426_v11  ;;  %v6322_v62 = vld [vmem:[#allocation13_spill] sm:$0xff] }
 0x720   : > { %v2782_v32 = vsel %vm1477_vm3, %v2772_v4, -inf  ;;  %v2831_v19 = vadd.f32 %v5164_v12, %v5469_v14  ;;  %v1482_v17 = vsel %vm1477_vm3, %v1473_v15, -inf  ;;  %v1486_v30 = vsel %vm1477_vm3, %v1475_v6, -inf  ;;  %v6323_v12 = vld [vmem:[#allocation15_spill] sm:$0xff] }
 0x721   : > { %v2783_v36 = vmax.f32 %v2776_v1, %v2782_v32  ;;  %v1423_v3 = vmax.f32 %v5072_v33, %v1422_v60  ;;  %v1429_v34 = vmax.f32 %v1425_v31, %v1427_v58  ;;  %v1484_v18 = vsel %vm1477_vm3, %v1474_v53, -inf  ;;  %v6324_v60 = vld [vmem:[#allocation20_spill] sm:$0xff]  ;;  %v6325_v58 = vld [vmem:[#allocation21_spill] sm:$0xff] }
 0x722   : > { %v2797_v9 = vpop.permute.xlu1 %2796  ;;  %v1488_v4 = vsel %vm1477_vm3, %v1476_v7, -inf  ;;  %v1535_v11 = vadd.f32 %v6322_v62, %v5469_v14  ;;  %v1537_v27 = vadd.f32 %v6323_v12, %v5498_v44  ;;  %v2833_v6 = vadd.f32 %v5208_v10, %v5498_v44 }
 0x723   : > { %v2787_v29 = vmax.f32 %v2783_v36, %v2785_v49  ;;  %v2827_v2 = vadd.f32 %v2797_v9, %v5028_v52  ;;  %v1428_v15 = vmax.f32 %v1421_v24, %v1423_v3  ;;  %v1483_v33 = vmax.f32 %v5087_v26, %v1482_v17  ;;  %v6326_v36 = vld [vmem:[#allocation115_spill] sm:$0xff] }
 0x724   : > { %v1487_v31 = vmax.f32 %v5157_v41, %v1486_v30  ;;  %v5568_v53 = vsel %vm1539_vm4, %v2831_v19, -inf  ;;  %v1538_v1 = vadd.f32 %v6324_v60, %v5486_v20  ;;  %v1485_v26 = vmax.f32 %v5075_v28, %v1484_v18 }
 0x725   : > { %v5570_v49 = vmax.f32 %v2786_v50, %v2787_v29  ;;  %v5573_v7 = vsel %vm1539_vm4, %v2827_v2, -inf  ;;  %v1430_v24 = vmax.f32 %v1428_v15, %v1429_v34  ;;  %v1489_v41 = vmax.f32 %v6325_v58, %v1488_v4  ;;  %v6328_v2 = vld [vmem:[#allocation25_spill] sm:$0xff]  ;;  %v6330_v15 = vld [vmem:[#allocation26_spill] sm:$0xff] }
 0x726   : > { %v2840_v32 = vmax.f32 %v5573_v7, %v5568_v53  ;;  %v2805_v10 = vpop.permute.xlu1 %2804  ;;  %v1544_v50 = vsel %vm1539_vm4, %v1535_v11, -inf  ;;  %v1548_v29 = vsel %vm1539_vm4, %v1537_v27, -inf  ;;  %v2642_v17 = vadd.f32 %v6326_v36, %v5028_v52  ;;  %v6329_v27 = vld [vmem:[#allocation131_spill] sm:$0xff] }
 0x727   : > { %v2829_v19 = vadd.f32 %v2805_v10, %v5065_v8  ;;  %v5587_v30 = vsel %vm1539_vm4, %v2833_v6, -inf  ;;  %v1490_v9 = vmax.f32 %v1483_v33, %v1485_v26  ;;  %v1491_v3 = vmax.f32 %v1487_v31, %v1489_v41  ;;  %v6327_v8 = vld [vmem:[#allocation24_spill] sm:$0xff]  ;;  %v6331_v33 = vld [vmem:[#allocation17_spill] sm:$0xff]  ;;  %v6332_v53 = vld [vmem:[#allocation19_spill] sm:$0xff] }
 0x728   : > { %v1546_v34 = vsel %vm1539_vm4, %v1536_v47, -inf  ;;  %v1550_v18 = vsel %vm1539_vm4, %v1538_v1, -inf  ;;  %v1599_v4 = vadd.f32 %v6327_v8, %v5469_v14  ;;  %v1601_v62 = vadd.f32 %v6328_v2, %v5498_v44  ;;  %v6333_v26 = vld [vmem:[#allocation129_spill] sm:$0xff] }
 0x729   : > { %v5591_v28 = vsel %vm1539_vm4, %v2829_v19, -inf  ;;  %v1431_v12 = vrot.slane %v1430_v24, 4  ;;  %v1545_v6 = vmax.f32 %v6329_v27, %v1544_v50  ;;  %v1549_v47 = vmax.f32 %v6330_v15, %v1548_v29  ;;  %v6334_v41 = vld [vmem:[#allocation29_spill] sm:$0xff]  ;;  %v6337_v15 = vld [vmem:[#allocation139_spill] sm:$0xff] }
 0x72a   : > { %v2809_v11 = vpop.permute.xlu1 %2808  ;;  %v1600_v31 = vadd.f32 %v6331_v33, %v5452_v23  ;;  %v1602_v7 = vadd.f32 %v6332_v53, %v5486_v20  ;;  %v5608_v60 = vsel %vm437_vm13, %v5493_v46, -inf  ;;  %v5612_v1 = vsel %vm1477_vm3, %v5513_v22, -inf  ;;  %v6335_v22 = vld [vmem:[#allocation117_spill] sm:$0xff] }
 0x72b   : > { %v1492_v10 = vmax.f32 %v1490_v9, %v1491_v3  ;;  %v1547_v58 = vmax.f32 %v6333_v26, %v1546_v34  ;;  %v1551_v19 = vmax.f32 %v6334_v41, %v1550_v18  ;;  %v5618_v50 = vsel %vm1477_vm3, %v5517_v21, -inf  ;;  %v2926_v3 = vpop.permute.xlu0 %2925  ;;  %v6338_v26 = vld [vmem:[#allocation132_spill] sm:$0xff] }
 0x72c   : > { %v5622_v29 = vadd.f32 %v5293_v59, %v5050_v57  ;;  %v1607_v46 = vsel %vm437_vm13, %v1599_v4, -inf  ;;  %v1611_v36 = vsel %vm437_vm13, %v1601_v62, -inf  ;;  %v5628_v8 = vadd.f32 %v6335_v22, %v5050_v57 }
 0x72d   : > { %v1432_v34 = vmax.f32 %v1430_v24, %v1431_v12  ;;  %v1552_v18 = vmax.f32 %v1545_v6, %v1547_v58  ;;  %v1553_v2 = vmax.f32 %v1549_v47, %v1551_v19  ;;  %v5631_v21 = vsel %vm1539_vm4, %v2642_v17, -inf  ;;  %v6339_v24 = vld [vmem:[#allocation22_spill] sm:$0xff]  ;;  %v6341_v58 = vld [vmem:[#allocation31_spill] sm:$0xff] }
 0x72e   : > { %v2817_v9 = vpop.permute.xlu1 %2816  ;;  %6336 = vst [vmem:[#allocation12_spill] sm:$0xff] %v5631_v21  ;;  %v1609_v59 = vsel %vm437_vm13, %v1600_v31, -inf  ;;  %v1612_v4 = vmax.f32 %v6337_v15, %v1611_v36  ;;  %v1613_v62 = vsel %vm437_vm13, %v1602_v7, -inf  ;;  %v2830_v33 = vadd.f32 %v2809_v11, %v5050_v57  ;;  %v6340_v17 = vld [vmem:[#allocation138_spill] sm:$0xff]  ;;  %v6342_v31 = vld [vmem:[#allocation23_spill] sm:$0xff] }
 0x72f   : > { %v2832_v27 = vadd.f32 %v2817_v9, %v5452_v23  ;;  %v1493_v53 = vrot.slane %v1492_v10, 4  ;;  %v1608_v41 = vmax.f32 %v6338_v26, %v1607_v46  ;;  %v1660_v12 = vadd.f32 %v6339_v24, %v5469_v14  ;;  %v6343_v46 = vld [vmem:[#allocation133_spill] sm:$0xff] }
 0x730   : > { %v1614_v47 = vmax.f32 %v6340_v17, %v1613_v62  ;;  %v1661_v19 = vadd.f32 %v6341_v58, %v5452_v23  ;;  %v1662_v36 = vadd.f32 %v6342_v31, %v5498_v44  ;;  %v2789_v7 = vrot.slane %v5570_v49, 4  ;;  %v2922_v31 = vpop.permute.xlu0 %2921 }
 0x731   : > { %v2841_v6 = vsel %vm1539_vm4, %v2832_v27, -inf  ;;  %v1554_v22 = vmax.f32 %v1552_v18, %v1553_v2  ;;  %v1610_v9 = vmax.f32 %v6343_v46, %v1609_v59  ;;  %v6344_v27 = vld [vmem:[#allocation34_spill] sm:$0xff]  ;;  %v1668_v24 = vsel %vm1477_vm3, %v1660_v12, -inf }
 0x732   : > { %v2842_v57 = vmax.f32 %v5369_v63, %v2841_v6  ;;  %v2825_v11 = vpop.permute.xlu1 %2824  ;;  %v1616_v26 = vmax.f32 %v1612_v4, %v1614_v47  ;;  %v1663_v62 = vadd.f32 %v6344_v27, %v5486_v20  ;;  %v2838_v17 = vsel %vm1539_vm4, %v2830_v33, -inf  ;;  %v6346_v27 = vld [vmem:[#allocation32_spill] sm:$0xff] }
 0x733   : > { %v2834_v15 = vadd.f32 %v2825_v11, %v5486_v20  ;;  %v1433_v52 = vrot.slane %v1432_v34, 2  ;;  %v1494_v21 = vmax.f32 %v1492_v10, %v1493_v53  ;;  %v1615_v6 = vmax.f32 %v1608_v41, %v1610_v9  ;;  %v6345_v11 = vld [vmem:[#allocation135_spill] sm:$0xff]  ;;  %v6347_v10 = vld [vmem:[#allocation37_spill] sm:$0xff]  ;;  %v6348_v41 = vld [vmem:[#allocation28_spill] sm:$0xff] }
 0x734   : > { %v2847_v58 = vmax.f32 %v2840_v32, %v2842_v57  ;;  %v1670_v18 = vsel %vm1477_vm3, %v1661_v19, -inf  ;;  %v1672_v2 = vsel %vm1477_vm3, %v1662_v36, -inf  ;;  %v1555_v47 = vrot.slane %v1554_v22, 4 }
 0x735   : > { %v2845_v63 = vsel %vm1539_vm4, %v2834_v15, -inf  ;;  %v1669_v46 = vmax.f32 %v6345_v11, %v1668_v24  ;;  %v1673_v12 = vmax.f32 %v6346_v27, %v1672_v2  ;;  %v1617_v33 = vmax.f32 %v1615_v6, %v1616_v26  ;;  %v6350_v15 = vld [vmem:[#allocation134_spill] sm:$0xff] }
 0x736   : > { %v2846_v59 = vmax.f32 %v2838_v17, %v2845_v63  ;;  %v2928_v4 = vpop.permute.xlu1 %2927  ;;  %v1674_v32 = vsel %vm1477_vm3, %v1663_v62, -inf  ;;  %v1721_v53 = vadd.f32 %v6347_v10, %v5469_v14  ;;  %v1722_v57 = vadd.f32 %v6348_v41, %v5452_v23  ;;  %v6351_v17 = vld [vmem:[#allocation33_spill] sm:$0xff]  ;;  %v6352_v62 = vld [vmem:[#allocation40_spill] sm:$0xff]  ;;  %v6353_v2 = vld [vmem:[#allocation30_spill] sm:$0xff] }
 0x737   : > { %3529 = vmatpush3.msra.mxu1 %v2928_v4  ;;  %v6349_v19 = vmax.f32 %v5591_v28, %v5587_v30  ;;  %v1434_v9 = vmax.f32 %v1432_v34, %v1433_v52  ;;  %v1671_v24 = vmax.f32 %v6350_v15, %v1670_v18  ;;  %v1675_v63 = vmax.f32 %v6351_v17, %v1674_v32  ;;  %v2918_v28 = vpop.permute.xlu0 %2917 }
 0x738   : > { %3530 = vmatprep.subr.mxu1 %v6134_v5  ;;  %v1495_v26 = vrot.slane %v1494_v21, 2  ;;  %v1723_v6 = vadd.f32 %v6352_v62, %v5498_v44  ;;  %v1724_v4 = vadd.f32 %v6353_v2, %v5486_v20  ;;  %v1729_v11 = vsel %vm1539_vm4, %v1721_v53, -inf  ;;  %v6354_v53 = vld [vmem:[#allocation140_spill] sm:$0xff] }
 0x739   : > { %v2848_v36 = vmax.f32 %v6349_v19, %v2846_v59  ;;  %3531 = vmatpush3.msra.mxu1 %v2926_v3  ;;  %v1556_v52 = vmax.f32 %v1554_v22, %v1555_v47  ;;  %v1676_v34 = vmax.f32 %v1669_v46, %v1671_v24  ;;  %v1677_v18 = vmax.f32 %v1673_v12, %v1675_v63  ;;  %v6356_v12 = vld [vmem:[#allocation45_spill] sm:$0xff] }
 0x73a   : > { %v2924_v30 = vpop.permute.xlu1 %2923  ;;  %3532 = vmatprep.subr.mxu1 %v6134_v5  ;;  %v1618_v3 = vrot.slane %v1617_v33, 4  ;;  %v1731_v59 = vsel %vm1539_vm4, %v1722_v57, -inf  ;;  %v1733_v32 = vsel %vm1539_vm4, %v1723_v6, -inf  ;;  %v1735_v10 = vsel %vm1539_vm4, %v1724_v4, -inf  ;;  %v6357_v57 = vld [vmem:[#allocation35_spill] sm:$0xff]  ;;  %v6358_v63 = vld [vmem:[#allocation137_spill] sm:$0xff] }
 0x73b   : > { %v5676_v27 = vmax.f32 %v2847_v58, %v2848_v36  ;;  %3533 = vmatpush3.msra.mxu1 %v2924_v30  ;;  %v5683_v41 = vmax.f32 %v5570_v49, %v2789_v7  ;;  %v1678_v58 = vmax.f32 %v1676_v34, %v1677_v18  ;;  %v1730_v19 = vmax.f32 %v6354_v53, %v1729_v11  ;;  %v6355_v36 = vld [vmem:[#allocation38_spill] sm:$0xff]  ;;  %v6359_v6 = vld [vmem:[#allocation36_spill] sm:$0xff]  ;;  %v2914_v34 = vpop.permute.xlu0 %2913 }
 0x73c   : > { %3534 = vmatprep.subr.mxu1 %v6134_v5  ;;  %v1734_v22 = vmax.f32 %v6355_v36, %v1733_v32  ;;  %v1435_v47 = vrot.slane %v1434_v9, 1  ;;  %v1496_v46 = vmax.f32 %v1494_v21, %v1495_v26  ;;  %v1736_v15 = vmax.f32 %v6356_v12, %v1735_v10  ;;  %v6360_v21 = vld [vmem:[#allocation49_spill] sm:$0xff]  ;;  %v6361_v32 = vld [vmem:[#allocation47_spill] sm:$0xff] }
 0x73d   : > { %3535 = vmatpush3.msra.mxu1 %v2922_v31  ;;  %v1784_v24 = vadd.f32 %v6357_v57, %v5469_v14  ;;  %v1557_v49 = vrot.slane %v1556_v52, 2  ;;  %v1679_v7 = vrot.slane %v1678_v58, 4  ;;  %v1732_v62 = vmax.f32 %v6358_v63, %v1731_v59 }
 0x73e   : > { %v2920_v17 = vpop.permute.xlu1 %2919  ;;  %3536 = vmatprep.subr.mxu1 %v6134_v5  ;;  %v1786_v2 = vadd.f32 %v6359_v6, %v5498_v44  ;;  %v1619_v4 = vmax.f32 %v1617_v33, %v1618_v3  ;;  %v1738_v31 = vmax.f32 %v1734_v22, %v1736_v15  ;;  %v1787_v26 = vadd.f32 %v6360_v21, %v5486_v20  ;;  %v6362_v15 = vld [vmem:[#allocation41_spill] sm:$0xff] }
 0x73f   : > { %3537 = vmatpush3.msra.mxu1 %v2920_v17  ;;  %v5699_v11 = vsel %vm1539_vm4, %v5628_v8, -inf  ;;  %v5703_v30 = vsel %vm437_vm13, %v5622_v29, -inf  ;;  %v1680_v18 = vmax.f32 %v1678_v58, %v1679_v7  ;;  %v1737_v59 = vmax.f32 %v1730_v19, %v1732_v62  ;;  %v6363_v17 = vld [vmem:[#allocation53_spill] sm:$0xff]  ;;  %v6365_v7 = vld [vmem:[#allocation51_spill] sm:$0xff] }
 0x740   : > { %3538 = vmatprep.subr.mxu1 %v6134_v5  ;;  %v1785_v33 = vadd.f32 %v6361_v32, %v5452_v23  ;;  %v1436_v10 = vmax.f32 %v1434_v9, %v1435_v47  ;;  %v1792_v53 = vsel %vm437_vm13, %v1784_v24, -inf  ;;  %v1796_v8 = vsel %vm437_vm13, %v1786_v2, -inf  ;;  %v6364_v9 = vld [vmem:[#allocation43_spill] sm:$0xff]  ;;  %v6367_v6 = vld [vmem:[#allocation57_spill] sm:$0xff] }
 0x741   : > { %3539 = vmatpush3.msra.mxu1 %v2918_v28  ;;  %v1497_v29 = vrot.slane %v1496_v46, 1  ;;  %v1558_v22 = vmax.f32 %v1556_v52, %v1557_v49  ;;  %v1739_v12 = vmax.f32 %v1737_v59, %v1738_v31  ;;  %v1798_v58 = vsel %vm437_vm13, %v1787_v26, -inf  ;;  %v6366_v49 = vld [vmem:[#allocation55_spill] sm:$0xff]  ;;  %v6368_v31 = vld [vmem:[#allocation44_spill] sm:$0xff] }
 0x742   : > { %v2916_v36 = vpop.permute.xlu1 %2915  ;;  %3540 = vmatprep.subr.mxu1 %v6134_v5  ;;  %v1620_v19 = vrot.slane %v1619_v4, 2  ;;  %v1797_v57 = vmax.f32 %v6362_v15, %v1796_v8  ;;  %v1845_v28 = vadd.f32 %v6363_v17, %v5469_v14  ;;  %v1846_v47 = vadd.f32 %v6364_v9, %v5452_v23  ;;  %v2910_v8 = vpop.permute.xlu0 %2909  ;;  %v6369_v15 = vld [vmem:[#allocation46_spill] sm:$0xff] }
 0x743   : > { %3541 = vmatpush3.msra.mxu1 %v2916_v36  ;;  %v1681_v24 = vrot.slane %v1680_v18, 2  ;;  %v1793_v63 = vmax.f32 %v6365_v7, %v1792_v53  ;;  %v1794_v52 = vsel %vm437_vm13, %v1785_v33, -inf  ;;  %v1847_v62 = vadd.f32 %v6366_v49, %v5498_v44 }
 0x744   : > { %3542 = vmatprep.subr.mxu1 %v6134_v5  ;;  %v1799_v2 = vmax.f32 %v6367_v6, %v1798_v58  ;;  %v1848_v21 = vadd.f32 %v6368_v31, %v5486_v20  ;;  %v1853_v26 = vsel %vm1477_vm3, %v1845_v28, -inf  ;;  %v1855_v59 = vsel %vm1477_vm3, %v1846_v47, -inf  ;;  %v6371_v47 = vld [vmem:[#allocation48_spill] sm:$0xff] }
 0x745   : > { %3543 = vmatpush3.msra.mxu1 %v2914_v34  ;;  %v1498_v53 = vmax.f32 %v1496_v46, %v1497_v29  ;;  %v1559_v36 = vrot.slane %v1558_v22, 1  ;;  %v1740_v33 = vrot.slane %v1739_v12, 4  ;;  %v1854_v17 = vmax.f32 %v6369_v15, %v1853_v26  ;;  %v6370_v34 = vld [vmem:[#allocation39_spill] sm:$0xff] }
 0x746   : > { %v2912_v32 = vpop.permute.xlu1 %2911  ;;  %3544 = vmatprep.subr.mxu1 %v6134_v5  ;;  %v1795_v9 = vmax.f32 %v6370_v34, %v1794_v52  ;;  %v1801_v58 = vmax.f32 %v1797_v57, %v1799_v2  ;;  %v1857_v7 = vsel %vm1477_vm3, %v1847_v62, -inf  ;;  %v1859_v49 = vsel %vm1477_vm3, %v1848_v21, -inf  ;;  %v6372_v46 = vld [vmem:[#allocation59_spill] sm:$0xff]  ;;  %v6374_v57 = vld [vmem:[#allocation61_spill] sm:$0xff] }
 0x747   : > { %3545 = vmatpush3.msra.mxu1 %v2912_v32  ;;  %v1621_v28 = vmax.f32 %v1619_v4, %v1620_v19  ;;  %v1856_v6 = vmax.f32 %v6371_v47, %v1855_v59  ;;  %v1858_v31 = vmax.f32 %v5244_v42, %v1857_v7  ;;  %v1860_v29 = vmax.f32 %v6372_v46, %v1859_v49  ;;  %v6373_v32 = vld [vmem:[#allocation50_spill] sm:$0xff]  ;;  %v6375_v59 = vld [vmem:[#allocation52_spill] sm:$0xff]  ;;  %v6378_v49 = vld [vmem:[#allocation67_spill] sm:$0xff] }
 0x748   : > { %3546 = vmatprep.subr.mxu1 %v6134_v5  ;;  %v1682_v3 = vmax.f32 %v1680_v18, %v1681_v24  ;;  %v1800_v26 = vmax.f32 %v1793_v63, %v1795_v9  ;;  %v1906_v52 = vadd.f32 %v6373_v32, %v5469_v14  ;;  %v1907_v62 = vadd.f32 %v6374_v57, %v5452_v23  ;;  %v6376_v18 = vld [vmem:[#allocation63_spill] sm:$0xff]  ;;  %v6381_v32 = vld [vmem:[#allocation69_spill] sm:$0xff] }
 0x749   : > { %3547 = vmatpush3.msra.mxu1 %v2910_v8  ;;  %v1741_v21 = vmax.f32 %v1739_v12, %v1740_v33  ;;  %v1861_v4 = vmax.f32 %v1854_v17, %v1856_v6  ;;  %v1862_v19 = vmax.f32 %v1858_v31, %v1860_v29  ;;  %v1908_v42 = vadd.f32 %v6375_v59, %v5498_v44  ;;  %v6377_v12 = vld [vmem:[#allocation54_spill] sm:$0xff]  ;;  %v6380_v29 = vld [vmem:[#allocation60_spill] sm:$0xff] }
 0x74a   : > { %v2908_v2 = vpop.permute.xlu1 %2907  ;;  %3548 = vmatprep.subr.mxu1 %v6134_v5  ;;  %v1802_v15 = vmax.f32 %v1800_v26, %v1801_v58  ;;  %v1909_v24 = vadd.f32 %v6376_v18, %v5486_v20  ;;  %v1914_v63 = vsel %vm1539_vm4, %v1906_v52, -inf  ;;  %v1916_v8 = vsel %vm1539_vm4, %v1907_v62, -inf }
 0x74b   : > { %3549 = vmatpush3.msra.mxu1 %v2908_v2  ;;  %v5748_v34 = vmax.f32 %v1558_v22, %v1559_v36  ;;  %v5751_v9 = vsel %vm437_vm13, %v1436_v10, %v1498_v53  ;;  %v1863_v5 = vmax.f32 %v1861_v4, %v1862_v19  ;;  %v1915_v33 = vmax.f32 %v6377_v12, %v1914_v63  ;;  %v6379_v36 = vld [vmem:[#allocation65_spill] sm:$0xff]  ;;  %v6382_v4 = vld [vmem:[#allocation62_spill] sm:$0xff] }
 0x74c   : > { %v1622_v17 = vrot.slane %v1621_v28, 1  ;;  %v1918_v7 = vsel %vm1539_vm4, %v1908_v42, -inf  ;;  %v1920_v58 = vsel %vm1539_vm4, %v1909_v24, -inf  ;;  %v1969_v47 = vadd.f32 %v6378_v49, %v5469_v14  ;;  %v6383_v42 = vld [vmem:[#allocation68_spill] sm:$0xff]  ;;  %v6384_v12 = vld [vmem:[#allocation58_spill] sm:$0xff] }
 0x74d   : > { %v1683_v6 = vrot.slane %v1682_v3, 1  ;;  %v1917_v31 = vmax.f32 %v5263_v13, %v1916_v8  ;;  %v1919_v22 = vmax.f32 %v5266_v43, %v1918_v7  ;;  %v1921_v46 = vmax.f32 %v6379_v36, %v1920_v58  ;;  %v6385_v58 = vld [vmem:[#allocation66_spill] sm:$0xff] }
 0x74e   : > { %v1742_v10 = vrot.slane %v1741_v21, 2  ;;  %v1803_v53 = vrot.slane %v1802_v15, 4  ;;  %v1970_v26 = vadd.f32 %v6380_v29, %v5452_v23  ;;  %v1971_v52 = vadd.f32 %v6381_v32, %v5498_v44  ;;  %v6388_v32 = vld [vmem:[#allocation70_spill] sm:$0xff] }
 0x74f   : > { %v1864_v57 = vrot.slane %v1863_v5, 4  ;;  %v1922_v62 = vmax.f32 %v1915_v33, %v1917_v31  ;;  %v1923_v2 = vmax.f32 %v1919_v22, %v1921_v46  ;;  %v1972_v19 = vadd.f32 %v6382_v4, %v5486_v20  ;;  %v6387_v46 = vld [vmem:[#allocation64_spill] sm:$0xff] }
 0x750   : > { %v1977_v13 = vsel %vm437_vm13, %v1969_v47, -inf  ;;  %v1979_v43 = vsel %vm437_vm13, %v1970_v26, -inf  ;;  %v1981_v59 = vsel %vm437_vm13, %v1971_v52, -inf  ;;  %v2030_v18 = vadd.f32 %v6383_v42, %v5469_v14  ;;  %v6386_v47 = vld [vmem:[#allocation72_spill] sm:$0xff] }
 0x751   : > { %v2850_v24 = vrot.slane %v5676_v27, 4  ;;  %v1623_v63 = vmax.f32 %v1621_v28, %v1622_v17  ;;  %v1924_v8 = vmax.f32 %v1922_v62, %v1923_v2  ;;  %v1978_v7 = vmax.f32 %v6384_v12, %v1977_v13  ;;  %v6389_v62 = vld [vmem:[#allocation74_spill] sm:$0xff]  ;;  %v6392_v12 = vld [vmem:[#allocation71_spill] sm:$0xff] }
 0x752   : > { %v1743_v33 = vmax.f32 %v1741_v21, %v1742_v10  ;;  %v1982_v49 = vmax.f32 %v6385_v58, %v1981_v59  ;;  %v1983_v31 = vsel %vm437_vm13, %v1972_v19, -inf  ;;  %v2031_v22 = vadd.f32 %v6386_v47, %v5452_v23  ;;  %v6391_v59 = vld [vmem:[#allocation77_spill] sm:$0xff] }
 0x753   : > { %v1804_v36 = vmax.f32 %v1802_v15, %v1803_v53  ;;  %v1980_v29 = vmax.f32 %v6387_v46, %v1979_v43  ;;  %v1984_v26 = vmax.f32 %v5299_v55, %v1983_v31  ;;  %v2032_v52 = vadd.f32 %v6388_v32, %v5498_v44  ;;  %v6390_v15 = vld [vmem:[#allocation141_spill] sm:$0xff]  ;;  %v6394_v46 = vld [vmem:[#allocation75_spill] sm:$0xff] }
 0x754   : > { %v1684_v28 = vmax.f32 %v1682_v3, %v1683_v6  ;;  %v1865_v17 = vmax.f32 %v1863_v5, %v1864_v57  ;;  %v2033_v21 = vadd.f32 %v6389_v62, %v5486_v20  ;;  %v2038_v10 = vsel %vm1477_vm3, %v2030_v18, -inf }
 0x755   : > { %v1925_v2 = vrot.slane %v1924_v8, 4  ;;  %v1985_v4 = vmax.f32 %v1978_v7, %v1980_v29  ;;  %v1986_v19 = vmax.f32 %v1982_v49, %v1984_v26  ;;  %v2040_v13 = vsel %vm1477_vm3, %v2031_v22, -inf  ;;  %v6393_v49 = vld [vmem:[#allocation79_spill] sm:$0xff]  ;;  %v6395_v26 = vld [vmem:[#allocation76_spill] sm:$0xff] }
 0x756   : > { %v2039_v53 = vmax.f32 %v6390_v15, %v2038_v10  ;;  %v2042_v43 = vsel %vm1477_vm3, %v2032_v52, -inf  ;;  %v2044_v55 = vsel %vm1477_vm3, %v2033_v21, -inf  ;;  %v2091_v3 = vadd.f32 %v6391_v59, %v5469_v14 }
 0x757   : > { %v1744_v5 = vrot.slane %v1743_v33, 1  ;;  %v1805_v6 = vrot.slane %v1804_v36, 2  ;;  %v1987_v57 = vmax.f32 %v1985_v4, %v1986_v19  ;;  %v2043_v42 = vmax.f32 %v5319_v45, %v2042_v43  ;;  %v6396_v19 = vld [vmem:[#allocation85_spill] sm:$0xff] }
 0x758   : > { %v5793_v18 = vmax.f32 %v5676_v27, %v2850_v24  ;;  %v2041_v7 = vmax.f32 %v6392_v12, %v2040_v13  ;;  %v2045_v58 = vmax.f32 %v5328_v25, %v2044_v55  ;;  %v2093_v31 = vadd.f32 %v6393_v49, %v5498_v44 }
 0x759   : > { %v1866_v47 = vrot.slane %v1865_v17, 2  ;;  %v1926_v22 = vmax.f32 %v1924_v8, %v1925_v2  ;;  %v2092_v29 = vadd.f32 %v6394_v46, %v5452_v23  ;;  %v2094_v32 = vadd.f32 %v6395_v26, %v5486_v20 }
 0x75a   : > { %v2046_v52 = vmax.f32 %v2039_v53, %v2041_v7  ;;  %v2047_v45 = vmax.f32 %v2043_v42, %v2045_v58  ;;  %v2099_v27 = vsel %vm1539_vm4, %v2091_v3, -inf  ;;  %v2103_v24 = vsel %vm1539_vm4, %v2093_v31, -inf }
 0x75b   : > { %v5805_v62 = vmax.f32 %v1743_v33, %v1744_v5  ;;  %v5808_v25 = vsel %vm437_vm13, %v1623_v63, %v1684_v28  ;;  %v1806_v21 = vmax.f32 %v1804_v36, %v1805_v6  ;;  %v1988_v10 = vrot.slane %v1987_v57, 4  ;;  %v6397_v63 = vld [vmem:[#allocation83_spill] sm:$0xff]  ;;  %v6398_v28 = vld [vmem:[#allocation86_spill] sm:$0xff] }
 0x75c   : > { %v2048_v8 = vmax.f32 %v2046_v52, %v2047_v45  ;;  %v2104_v2 = vmax.f32 %v5339_v61, %v2103_v24  ;;  %v2105_v4 = vsel %vm1539_vm4, %v2094_v32, -inf  ;;  %v2154_v13 = vadd.f32 %v6396_v19, %v5469_v14  ;;  %v6399_v61 = vld [vmem:[#allocation84_spill] sm:$0xff]  ;;  %v6401_v32 = vld [vmem:[#allocation89_spill] sm:$0xff] }
 0x75d   : > { %v1867_v15 = vmax.f32 %v1865_v17, %v1866_v47  ;;  %v1927_v53 = vrot.slane %v1926_v22, 2  ;;  %v2100_v43 = vmax.f32 %v5331_v39, %v2099_v27  ;;  %v2101_v33 = vsel %vm1539_vm4, %v2092_v29, -inf }
 0x75e   : > { %v2106_v55 = vmax.f32 %v5348_v51, %v2105_v4  ;;  %v2155_v36 = vadd.f32 %v6397_v63, %v5452_v23  ;;  %v2156_v59 = vadd.f32 %v6398_v28, %v5498_v44  ;;  %v2157_v3 = vadd.f32 %v6399_v61, %v5486_v20 }
 0x75f   : > { %v1807_v5 = vrot.slane %v1806_v21, 1  ;;  %v1989_v6 = vmax.f32 %v1987_v57, %v1988_v10  ;;  %v2049_v42 = vrot.slane %v2048_v8, 4  ;;  %v2162_v17 = vsel %vm437_vm13, %v2154_v13, -inf  ;;  %v6400_v57 = vld [vmem:[#allocation87_spill] sm:$0xff] }
 0x760   : > { %v2102_v39 = vmax.f32 %v5334_v54, %v2101_v33  ;;  %v2108_v12 = vmax.f32 %v2104_v2, %v2106_v55  ;;  %v2164_v7 = vsel %vm437_vm13, %v2155_v36, -inf  ;;  %v2166_v51 = vsel %vm437_vm13, %v2156_v59, -inf }
 0x761   : > { %v1868_v58 = vrot.slane %v1867_v15, 1  ;;  %v1928_v49 = vmax.f32 %v1926_v22, %v1927_v53  ;;  %v2163_v31 = vmax.f32 %v5351_v35, %v2162_v17  ;;  %v2167_v47 = vmax.f32 %v5359_v48, %v2166_v51  ;;  %v6402_v35 = vld [vmem:[#allocation88_spill] sm:$0xff]  ;;  %v6403_v48 = vld [vmem:[#allocation91_spill] sm:$0xff] }
 0x762   : > { %v2107_v46 = vmax.f32 %v2100_v43, %v2102_v39  ;;  %v2168_v29 = vsel %vm437_vm13, %v2157_v3, -inf  ;;  %v2215_v26 = vadd.f32 %v6400_v57, %v5469_v14  ;;  %v2216_v54 = vadd.f32 %v6401_v32, %v5452_v23  ;;  %v6405_v39 = vld [vmem:[#allocation96_spill] sm:$0xff] }
 0x763   : > { %v1990_v52 = vrot.slane %v1989_v6, 2  ;;  %v2050_v45 = vmax.f32 %v2048_v8, %v2049_v42  ;;  %v2165_v27 = vmax.f32 %v5354_v0, %v2164_v7  ;;  %v2169_v24 = vmax.f32 %v5362_v40, %v2168_v29  ;;  %v6408_v51 = vld [vmem:[#allocation92_spill] sm:$0xff] }
 0x764   : > { %v2109_v22 = vmax.f32 %v2107_v46, %v2108_v12  ;;  %v2217_v10 = vadd.f32 %v6402_v35, %v5498_v44  ;;  %v2218_v2 = vadd.f32 %v6403_v48, %v5486_v20  ;;  %v2223_v4 = vsel %vm1477_vm3, %v2215_v26, -inf  ;;  %v6411_v35 = vld [vmem:[#allocation80_spill] sm:$0xff]  ;;  %v6412_v48 = vld [vmem:[#allocation142_spill] sm:$0xff] }
 0x765   : > { %v1808_v19 = vmax.f32 %v1806_v21, %v1807_v5  ;;  %v1869_v13 = vmax.f32 %v1867_v15, %v1868_v58  ;;  %v2170_v53 = vmax.f32 %v2163_v31, %v2165_v27  ;;  %v2171_v43 = vmax.f32 %v2167_v47, %v2169_v24  ;;  %v6404_v15 = vld [vmem:[#allocation94_spill] sm:$0xff] }
 0x766   : > { %v1929_v33 = vrot.slane %v1928_v49, 1  ;;  %v2225_v8 = vsel %vm1477_vm3, %v2216_v54, -inf  ;;  %v2227_v0 = vsel %vm1477_vm3, %v2217_v10, -inf  ;;  %v2229_v40 = vsel %vm1477_vm3, %v2218_v2, -inf }
 0x767   : > { %v2172_v55 = vmax.f32 %v2170_v53, %v2171_v43  ;;  %v2224_v63 = vmax.f32 %v5380_v16, %v2223_v4  ;;  %v2228_v36 = vmax.f32 %v5386_v38, %v2227_v0  ;;  %v2230_v28 = vmax.f32 %v5391_v37, %v2229_v40  ;;  %v6407_v37 = vld [vmem:[#allocation90_spill] sm:$0xff]  ;;  %v6413_v4 = vld [vmem:[#allocation99_spill] sm:$0xff] }
 0x768   : > { %v1991_v59 = vmax.f32 %v1989_v6, %v1990_v52  ;;  %v2051_v61 = vrot.slane %v2050_v45, 2  ;;  %v2110_v21 = vrot.slane %v2109_v22, 4  ;;  %v2276_v3 = vadd.f32 %v6404_v15, %v5469_v14  ;;  %v6415_v40 = vld [vmem:[#allocation82_spill] sm:$0xff]  ;;  %v6417_v15 = vld [vmem:[#allocation103_spill] sm:$0xff] }
 0x769   : > { %v2173_v5 = vrot.slane %v2172_v55, 4  ;;  %v2226_v42 = vmax.f32 %v5383_v56, %v2225_v8  ;;  %v2232_v17 = vmax.f32 %v2228_v36, %v2230_v28  ;;  %v2278_v12 = vadd.f32 %v6405_v39, %v5498_v44 }
 0x76a   : > { %v6406_v7 = vrot.slane %v5683_v41, 2  ;;  %v5860_v38 = vsel %vm1217_vm0, %v5751_v9, %v5748_v34  ;;  %v2277_v6 = vadd.f32 %v6407_v37, %v5452_v23  ;;  %v2279_v56 = vadd.f32 %v6408_v51, %v5486_v20 }
 0x76b   : > { %v2852_v58 = vrot.slane %v5793_v18, 2  ;;  %v5870_v31 = vsel %vm1217_vm0, %v5808_v25, %v5805_v62  ;;  %v2231_v47 = vmax.f32 %v2224_v63, %v2226_v42  ;;  %v1992_v46 = vrot.slane %v1991_v59, 1  ;;  %v6409_v62 = vld [vmem:[#allocation93_spill] sm:$0xff]  ;;  %v6416_v63 = vld [vmem:[#allocation143_spill] sm:$0xff] }
 0x76c   : > { %v5855_v16 = vmax.f32 %v5683_v41, %v6406_v7  ;;  %v1930_v41 = vmax.f32 %v1928_v49, %v1929_v33  ;;  %v2174_v29 = vmax.f32 %v2172_v55, %v2173_v5  ;;  %v2284_v34 = vsel %vm1539_vm4, %v2276_v3, -inf  ;;  %v6410_v49 = vld [vmem:[#allocation95_spill] sm:$0xff]  ;;  %v6419_v7 = vld [vmem:[#allocation97_spill] sm:$0xff] }
 0x76d   : > { %v2288_v9 = vsel %vm1539_vm4, %v2278_v12, -inf  ;;  %v1931_v57 = vsel %vm437_vm13, %v1808_v19, %v1869_v13  ;;  %v2052_v26 = vmax.f32 %v2050_v45, %v2051_v61  ;;  %v2111_v32 = vmax.f32 %v2109_v22, %v2110_v21  ;;  %v6414_v45 = vld [vmem:[#allocation100_spill] sm:$0xff] }
 0x76e   : > { %v2233_v54 = vmax.f32 %v2231_v47, %v2232_v17  ;;  %v2286_v52 = vsel %vm1539_vm4, %v2277_v6, -inf  ;;  %v2290_v27 = vsel %vm1539_vm4, %v2279_v56, -inf  ;;  %v2339_v25 = vadd.f32 %v6409_v62, %v5469_v14  ;;  %v6418_v17 = vld [vmem:[#allocation146_spill] sm:$0xff]  ;;  %v6420_v6 = vld [vmem:[#allocation105_spill] sm:$0xff] }
 0x76f   : > { %v2341_v24 = vadd.f32 %v6410_v49, %v5498_v44  ;;  %v2285_v10 = vmax.f32 %v6411_v35, %v2284_v34  ;;  %v2289_v2 = vmax.f32 %v6412_v48, %v2288_v9  ;;  %v2340_v19 = vadd.f32 %v6413_v4, %v5452_v23  ;;  %v6421_v56 = vld [vmem:[#allocation98_spill] sm:$0xff]  ;;  %v6423_v9 = vld [vmem:[#allocation147_spill] sm:$0xff]  ;;  %v6425_v49 = vld [vmem:[#allocation101_spill] sm:$0xff] }
 0x770   : > { %v2342_v22 = vadd.f32 %v6414_v45, %v5486_v20  ;;  %v5888_v13 = vsel %vm1217_vm0, %v1931_v57, %v1930_v41  ;;  %v5890_v53 = vmax.f32 %v1991_v59, %v1992_v46  ;;  %v2175_v43 = vrot.slane %v2174_v29, 2  ;;  %v6422_v46 = vld [vmem:[#allocation144_spill] sm:$0xff] }
 0x771   : > { %v2351_v33 = vsel %vm437_vm13, %v2341_v24, -inf  ;;  %v2053_v8 = vrot.slane %v2052_v26, 1  ;;  %v2234_v0 = vrot.slane %v2233_v54, 4  ;;  %v2287_v55 = vmax.f32 %v6415_v40, %v2286_v52  ;;  %v6426_v48 = vld [vmem:[#allocation148_spill] sm:$0xff] }
 0x772   : > { %v2291_v36 = vmax.f32 %v6416_v63, %v2290_v27  ;;  %v2112_v28 = vrot.slane %v2111_v32, 2  ;;  %v2347_v61 = vsel %vm437_vm13, %v2339_v25, -inf  ;;  %v2353_v21 = vsel %vm437_vm13, %v2342_v22, -inf  ;;  %v6424_v27 = vld [vmem:[#allocation145_spill] sm:$0xff]  ;;  %v6428_v22 = vld [vmem:[#allocation110_spill] sm:$0xff] }
 0x773   : > { %v2400_v3 = vadd.f32 %v6417_v15, %v5469_v14  ;;  %v2292_v5 = vmax.f32 %v2285_v10, %v2287_v55  ;;  %v2349_v42 = vsel %vm437_vm13, %v2340_v19, -inf  ;;  %v2352_v39 = vmax.f32 %v6418_v17, %v2351_v33  ;;  %v6429_v33 = vld [vmem:[#allocation102_spill] sm:$0xff]  ;;  %v6430_v63 = vld [vmem:[#allocation149_spill] sm:$0xff] }
 0x774   : > { %v2293_v59 = vmax.f32 %v2289_v2, %v2291_v36  ;;  %v2176_v12 = vmax.f32 %v2174_v29, %v2175_v43  ;;  %v2401_v37 = vadd.f32 %v6419_v7, %v5452_v23  ;;  %v2402_v51 = vadd.f32 %v6420_v6, %v5498_v44 }
 0x775   : > { %v2403_v41 = vadd.f32 %v6421_v56, %v5486_v20  ;;  %v2235_v47 = vmax.f32 %v2233_v54, %v2234_v0  ;;  %v2348_v34 = vmax.f32 %v6422_v46, %v2347_v61  ;;  %v2354_v57 = vmax.f32 %v6423_v9, %v2353_v21  ;;  %v6427_v54 = vld [vmem:[#allocation150_spill] sm:$0xff]  ;;  %v6431_v61 = vld [vmem:[#allocation152_spill] sm:$0xff]  ;;  %v6434_v56 = vld [vmem:[#allocation153_spill] sm:$0xff] }
 0x776   : > { %v2408_v52 = vsel %vm1477_vm3, %v2400_v3, -inf  ;;  %v2350_v62 = vmax.f32 %v6424_v27, %v2349_v42  ;;  %v2410_v29 = vsel %vm1477_vm3, %v2401_v37, -inf  ;;  %v2412_v25 = vsel %vm1477_vm3, %v2402_v51, -inf  ;;  %v6433_v37 = vld [vmem:[#allocation118_spill] sm:$0xff]  ;;  %v6435_v46 = vld [vmem:[#allocation104_spill] sm:$0xff]  ;;  %v6436_v9 = vld [vmem:[#allocation127_spill] sm:$0xff] }
 0x777   : > { %v2461_v24 = vadd.f32 %v6425_v49, %v5469_v14  ;;  %v2294_v35 = vmax.f32 %v2292_v5, %v2293_v59  ;;  %v2356_v10 = vmax.f32 %v2352_v39, %v2354_v57  ;;  %v2409_v2 = vmax.f32 %v6426_v48, %v2408_v52 }
 0x778   : > { %v2413_v4 = vmax.f32 %v6427_v54, %v2412_v25  ;;  %v5917_v19 = vmax.f32 %v2052_v26, %v2053_v8  ;;  %v2414_v45 = vsel %vm1477_vm3, %v2403_v41, -inf  ;;  %v2462_v43 = vadd.f32 %v6428_v22, %v5452_v23  ;;  %v6432_v26 = vld [vmem:[#allocation112_spill] sm:$0xff] }
 0x779   : > { %v2463_v0 = vadd.f32 %v6429_v33, %v5498_v44  ;;  %v5924_v40 = vmax.f32 %v2111_v32, %v2112_v28  ;;  %v2355_v55 = vmax.f32 %v2348_v34, %v2350_v62  ;;  %v2411_v36 = vmax.f32 %v6430_v63, %v2410_v29  ;;  %v6437_v62 = vld [vmem:[#allocation107_spill] sm:$0xff]  ;;  %v6438_v25 = vld [vmem:[#allocation120_spill] sm:$0xff]  ;;  %v6441_v63 = vld [vmem:[#allocation114_spill] sm:$0xff] }
 0x77a   : > { %v2415_v21 = vmax.f32 %v6431_v61, %v2414_v45  ;;  %v2177_v15 = vrot.slane %v2176_v12, 1  ;;  %v2236_v3 = vrot.slane %v2235_v47, 2  ;;  %v2464_v8 = vadd.f32 %v6432_v26, %v5486_v20  ;;  %v6440_v54 = vld [vmem:[#allocation108_spill] sm:$0xff] }
 0x77b   : > { %v2469_v5 = vsel %vm1539_vm4, %v2461_v24, -inf  ;;  %v2295_v59 = vrot.slane %v2294_v35, 4  ;;  %v2357_v42 = vmax.f32 %v2355_v55, %v2356_v10  ;;  %v2416_v17 = vmax.f32 %v2409_v2, %v2411_v36  ;;  %v6439_v10 = vld [vmem:[#allocation154_spill] sm:$0xff] }
 0x77c   : > { %v2417_v39 = vmax.f32 %v2413_v4, %v2415_v21  ;;  %v2471_v7 = vsel %vm1539_vm4, %v2462_v43, -inf  ;;  %v2473_v32 = vsel %vm1539_vm4, %v2463_v0, -inf  ;;  %v2475_v28 = vsel %vm1539_vm4, %v2464_v8, -inf  ;;  %v6442_v21 = vld [vmem:[#allocation106_spill] sm:$0xff] }
 0x77d   : > { %v2524_v6 = vadd.f32 %v6433_v37, %v5469_v14  ;;  %v2470_v41 = vmax.f32 %v6434_v56, %v2469_v5  ;;  %v2474_v34 = vmax.f32 %v6435_v46, %v2473_v32  ;;  %v2476_v57 = vmax.f32 %v6436_v9, %v2475_v28  ;;  %v6446_v28 = vld [vmem:[#allocation113_spill] sm:$0xff]  ;;  %v6448_v9 = vld [vmem:[#allocation130_spill] sm:$0xff] }
 0x77e   : > { %v2418_v51 = vmax.f32 %v2416_v17, %v2417_v39  ;;  %v2114_v52 = vrot.slane %v5924_v40, 1  ;;  %v5940_v27 = vmax.f32 %v2235_v47, %v2236_v3  ;;  %v2525_v29 = vadd.f32 %v6437_v62, %v5452_v23  ;;  %v6444_v17 = vld [vmem:[#allocation116_spill] sm:$0xff] }
 0x77f   : > { %v2526_v49 = vadd.f32 %v6438_v25, %v5498_v44  ;;  %v2358_v24 = vrot.slane %v2357_v42, 4  ;;  %v2472_v48 = vmax.f32 %v6439_v10, %v2471_v7  ;;  %v2478_v2 = vmax.f32 %v2474_v34, %v2476_v57  ;;  %v6445_v7 = vld [vmem:[#allocation125_spill] sm:$0xff] }
 0x780   : > { %v2527_v4 = vadd.f32 %v6440_v54, %v5486_v20  ;;  %v2296_v45 = vmax.f32 %v2294_v35, %v2295_v59  ;;  %v2532_v22 = vsel %vm437_vm13, %v2524_v6, -inf  ;;  %v2534_v43 = vsel %vm437_vm13, %v2525_v29, -inf  ;;  %v6443_v35 = vld [vmem:[#allocation111_spill] sm:$0xff]  ;;  %v6447_v6 = vld [vmem:[#allocation126_spill] sm:$0xff]  ;;  %v6450_v54 = vld [vmem:[#allocation136_spill] sm:$0xff] }
 0x781   : > { %v2536_v47 = vsel %vm437_vm13, %v2526_v49, -inf  ;;  %v5952_v33 = vmax.f32 %v2176_v12, %v2177_v15  ;;  %v2419_v0 = vrot.slane %v2418_v51, 4  ;;  %v2477_v55 = vmax.f32 %v2470_v41, %v2472_v48 }
 0x782   : > { %v2533_v36 = vmax.f32 %v6441_v63, %v2532_v22  ;;  %v2238_v61 = vrot.slane %v5940_v27, 1  ;;  %v2537_v3 = vmax.f32 %v6442_v21, %v2536_v47  ;;  %v2538_v26 = vsel %vm437_vm13, %v2527_v4, -inf  ;;  %v6451_v22 = vld [vmem:[#allocation119_spill] sm:$0xff] }
 0x783   : > { %v2585_v8 = vadd.f32 %v6443_v35, %v5469_v14  ;;  %v2359_v5 = vmax.f32 %v2357_v42, %v2358_v24  ;;  %v2479_v59 = vmax.f32 %v2477_v55, %v2478_v2  ;;  %v2535_v39 = vmax.f32 %v6444_v17, %v2534_v43  ;;  %v6452_v21 = vld [vmem:[#allocation27_spill] sm:$0xff] }
 0x784   : > { %v2539_v12 = vmax.f32 %v5608_v60, %v2538_v26  ;;  %v2297_v15 = vrot.slane %v2296_v45, 2  ;;  %v2586_v32 = vadd.f32 %v6445_v7, %v5452_v23  ;;  %v2587_v37 = vadd.f32 %v6446_v28, %v5498_v44 }
 0x785   : > { %v2588_v56 = vadd.f32 %v6447_v6, %v5486_v20  ;;  %v2420_v41 = vmax.f32 %v2418_v51, %v2419_v0  ;;  %v2540_v46 = vmax.f32 %v2533_v36, %v2535_v39  ;;  %v2593_v42 = vsel %vm1477_vm3, %v2585_v8, -inf  ;;  %v6449_v51 = vld [vmem:[#allocation42_spill] sm:$0xff]  ;;  %v6454_v39 = vld [vmem:[#allocation12_spill] sm:$0xff] }
 0x786   : > { %v2541_v34 = vmax.f32 %v2537_v3, %v2539_v12  ;;  %v2594_v57 = vmax.f32 %v6448_v9, %v2593_v42  ;;  %v2595_v62 = vsel %vm1477_vm3, %v2586_v32, -inf  ;;  %v2597_v60 = vsel %vm1477_vm3, %v2587_v37, -inf  ;;  %v6455_v6 = vld [vmem:[#allocation56_spill] sm:$0xff] }
 0x787   : > { %v2599_v29 = vsel %vm1477_vm3, %v2588_v56, -inf  ;;  %v2360_v25 = vrot.slane %v2359_v5, 2  ;;  %v2480_v49 = vrot.slane %v2479_v59, 4  ;;  %v2596_v10 = vmax.f32 %v5612_v1, %v2595_v62  ;;  %v6453_v1 = vld [vmem:[#allocation121_spill] sm:$0xff] }
 0x788   : > { %v2542_v24 = vmax.f32 %v2540_v46, %v2541_v34  ;;  %v2598_v48 = vmax.f32 %v5618_v50, %v2597_v60  ;;  %v2600_v2 = vmax.f32 %v6449_v51, %v2599_v29  ;;  %v2646_v4 = vadd.f32 %v6450_v54, %v5469_v14  ;;  %v6456_v46 = vld [vmem:[#allocation73_spill] sm:$0xff]  ;;  %v6461_v54 = vld [vmem:[#allocation151_spill] sm:$0xff] }
 0x789   : > { %v2647_v43 = vadd.f32 %v6451_v22, %v5452_v23  ;;  %v2298_v47 = vmax.f32 %v2296_v45, %v2297_v15  ;;  %v2421_v0 = vrot.slane %v2420_v41, 2  ;;  %v2601_v63 = vmax.f32 %v2594_v57, %v2596_v10  ;;  %v6458_v57 = vld [vmem:[#allocation81_spill] sm:$0xff] }
 0x78a   : > { %v2543_v55 = vrot.slane %v2542_v24, 4  ;;  %v2602_v36 = vmax.f32 %v2598_v48, %v2600_v2  ;;  %v2648_v3 = vadd.f32 %v6452_v21, %v5498_v44  ;;  %v2649_v26 = vadd.f32 %v6453_v1, %v5486_v20  ;;  %v6460_v48 = vld [vmem:[#allocation78_spill] sm:$0xff] }
 0x78b   : > { %v2654_v50 = vsel %vm1539_vm4, %v2646_v4, -inf  ;;  %v2361_v35 = vmax.f32 %v2359_v5, %v2360_v25  ;;  %v2481_v8 = vmax.f32 %v2479_v59, %v2480_v49  ;;  %v2656_v45 = vsel %vm1539_vm4, %v2647_v43, -inf  ;;  %v6457_v59 = vld [vmem:[#allocation123_spill] sm:$0xff]  ;;  %v6459_v49 = vld [vmem:[#allocation124_spill] sm:$0xff] }
 0x78c   : > { %v2544_v17 = vmax.f32 %v2542_v24, %v2543_v55  ;;  %v2655_v12 = vmax.f32 %v6454_v39, %v2654_v50  ;;  %v2603_v7 = vmax.f32 %v2601_v63, %v2602_v36  ;;  %v2658_v15 = vsel %vm1539_vm4, %v2648_v3, -inf  ;;  %v6463_v63 = vld [vmem:[#allocation7_spill] sm:$0xff] }
 0x78d   : > { %v2660_v32 = vsel %vm1539_vm4, %v2649_v26, -inf  ;;  %v2422_v28 = vmax.f32 %v2420_v41, %v2421_v0  ;;  %v2657_v56 = vmax.f32 %v6455_v6, %v2656_v45  ;;  %v2659_v34 = vmax.f32 %v6456_v46, %v2658_v15  ;;  %v6462_v0 = vld [vmem:[#allocation128_spill] sm:$0xff] }
 0x78e   : > { %v2545_v37 = vrot.slane %v2544_v17, 2  ;;  %v2604_v42 = vrot.slane %v2603_v7, 4  ;;  %v2661_v5 = vmax.f32 %v5699_v11, %v2660_v32  ;;  %v2709_v9 = vadd.f32 %v6457_v59, %v5469_v14 }
 0x78f   : > { %v2710_v62 = vadd.f32 %v6458_v57, %v5452_v23  ;;  %v2482_v60 = vrot.slane %v2481_v8, 2  ;;  %v2662_v25 = vmax.f32 %v2655_v12, %v2657_v56  ;;  %v2711_v41 = vadd.f32 %v6459_v49, %v5498_v44 }
 0x790   : > { %v2546_v29 = vmax.f32 %v2544_v17, %v2545_v37  ;;  %v2605_v24 = vmax.f32 %v2603_v7, %v2604_v42  ;;  %v2663_v10 = vmax.f32 %v2659_v34, %v2661_v5  ;;  %v2712_v51 = vadd.f32 %v6460_v48, %v5486_v20 }
 0x791   : > { %v2717_v2 = vsel %vm437_vm13, %v2709_v9, -inf  ;;  %v2719_v14 = vsel %vm437_vm13, %v2710_v62, -inf  ;;  %v2721_v23 = vsel %vm437_vm13, %v2711_v41, -inf  ;;  %v2239_v36 = vmax.f32 %v5940_v27, %v2238_v61 }
 0x792   : > { %v2547_v11 = vrot.slane %v2546_v29, 1  ;;  %v2718_v4 = vmax.f32 %v6461_v54, %v2717_v2  ;;  %v2606_v22 = vrot.slane %v2605_v24, 2  ;;  %v2664_v43 = vmax.f32 %v2662_v25, %v2663_v10 }
 0x793   : > { %v2720_v55 = vmax.f32 %v6462_v0, %v2719_v14  ;;  %v2722_v44 = vmax.f32 %v6463_v63, %v2721_v23  ;;  %v2299_v20 = vrot.slane %v2298_v47, 1  ;;  %v2362_v21 = vrot.slane %v2361_v35, 1 }
 0x794   : > { %v2723_v3 = vsel %vm437_vm13, %v2712_v51, -inf  ;;  %v2607_v1 = vmax.f32 %v2605_v24, %v2606_v22  ;;  %v2665_v26 = vrot.slane %v2664_v43, 4  ;;  %v2423_v39 = vrot.slane %v2422_v28, 1 }
 0x795   : > { %v2724_v50 = vmax.f32 %v5703_v30, %v2723_v3  ;;  %v2725_v17 = vmax.f32 %v2718_v4, %v2720_v55  ;;  %v2483_v12 = vmax.f32 %v2481_v8, %v2482_v60  ;;  %v2548_v7 = vmax.f32 %v2546_v29, %v2547_v11 }
 0x796   : > { %v2859_v45 = vrot.slane %v5870_v31, 7  ;;  %v2608_v15 = vrot.slane %v2607_v1, 1  ;;  %v2666_v32 = vmax.f32 %v2664_v43, %v2665_v26  ;;  %v2115_v27 = vmax.f32 %v5924_v40, %v2114_v52 }
 0x797   : > { %v2726_v37 = vmax.f32 %v2722_v44, %v2724_v50  ;;  %v2116_v61 = vsel %vm437_vm13, %v5890_v53, %v5917_v19  ;;  %v2300_v6 = vmax.f32 %v2298_v47, %v2299_v20  ;;  %v2301_v30 = vsel %vm437_vm13, %v5952_v33, %v2239_v36  ;;  %v3821_v44 = vld [vmem:[%s6081_s1 + $0xe8] sm:$0xff]  ;;  %v3822_v50 = vld [vmem:[%s3996_s5 + $0x60] sm:$0xff]  ;;  %s3195_s5 = sshll.u32 %s134_s17, 3 }
 0x798   : > { %v2363_v8 = vmax.f32 %v2361_v35, %v2362_v21  ;;  %v2609_v56 = vmax.f32 %v2607_v1, %v2608_v15  ;;  %v2667_v46 = vrot.slane %v2666_v32, 2  ;;  %v2424_v34 = vmax.f32 %v2422_v28, %v2423_v39  ;;  %s136_s22 = scalar_lea.vmem [#allocation2], %s3195_s5 }
 0x799   : > { %v2727_v31 = vmax.f32 %v2725_v17, %v2726_v37  ;;  %v2484_v42 = vrot.slane %v2483_v12, 1  ;;  %v2862_v5 = vrot.slane %v5888_v13, 6  ;;  %v2880_v59 = vsel %vm2879_vm5, %v5860_v38, %v2859_v45  ;;  %s3132_s23 = sshll.u32 %s136_s22, 4  ;;  %s3133_s23 = int_to_ptr.vmem [resolvable:$true] %s3132_s23 }
 0x79a   : > { %v2668_v9 = vmax.f32 %v2666_v32, %v2667_v46  ;;  %v2671_v40 = vsel %vm437_vm13, %v2548_v7, %v2609_v56  ;;  %v2853_v53 = vmax.f32 %v5793_v18, %v2852_v58  ;;  %v2117_v19 = vsel %vm1217_vm0, %v2116_v61, %v2115_v27  ;;  %s3823_s28 = scalar_lea.vmem %s3133_s23, 128  ;;  %p3830_p0 = scmp.lt.s32.totalorder %s3133_s23, %s3828_s30 }
 0x79b   : > { %v2728_v52 = vrot.slane %v2727_v31, 4  ;;  %v2793_v33 = vrot.slane %v5855_v16, 1  ;;  %v2302_v28 = vsel %vm1217_vm0, %v2301_v30, %v2300_v6  ;;  %v2485_v13 = vmax.f32 %v2483_v12, %v2484_v42  ;;  %p3824_p11 = scmp.ne.s32.totalorder %s3133_s23, %s3823_s28  ;;  %p3831_p1 = scmp.lt.s32.totalorder %s3829_s13, %s3823_s28 }
 0x79c   : > { %v2669_v47 = vrot.slane %v2668_v9, 1  ;;  %v2882_v57 = vsel %vm2881_vm6, %v2880_v59, %v2862_v5  ;;  %v2486_v38 = vsel %vm437_vm13, %v2363_v8, %v2424_v34  ;;  %v2865_v29 = vrot.slane %v2117_v19, 5  ;;  %v6465_v34 = vld [vmem:[#allocation6_spill] sm:$0xff] }
 0x79d   : > { %v2729_v35 = vmax.f32 %v2727_v31, %v2728_v52  ;;  %v2854_v25 = vrot.slane %v2853_v53, 1  ;;  %v2487_v41 = vsel %vm1217_vm0, %v2486_v38, %v2485_v13  ;;  %v2868_v24 = vrot.slane %v2302_v28, 4  ;;  %p3825_p12 = pnand %p3824_p11, %p3969_p5  ;;  %p3832_p2 = por %p3831_p1, %p3830_p0 }
 0x79e   : > { %v2670_v62 = vmax.f32 %v2668_v9, %v2669_v47  ;;  %v2884_v58 = vsel %vm2883_vm7, %v2882_v57, %v2865_v29  ;;  %v2794_v10 = vmax.f32 %v5855_v16, %v2793_v33  ;;  %v2871_v54 = vrot.slane %v2487_v41, 3  ;;  %v6464_v16 = vld [vmem:[#allocation5_spill] sm:$0xff] }
 0x79f   : > { %v2730_v60 = vrot.slane %v2729_v35, 2  ;;  %v2855_v51 = vmax.f32 %v2853_v53, %v2854_v25  ;;  %v2886_v2 = vsel %vm2885_vm8, %v2884_v58, %v2868_v24  ;;  %v2893_v63 = vsub.s32 2, %v6464_v16  ;;  %p3826_p13 = pneg %p3825_p12 }
 0x7a0   : > { %v2672_v49 = vsel %vm1217_vm0, %v2671_v40, %v2670_v62  ;;  %v2888_v14 = vsel %vm2887_vm9, %v2886_v2, %v2871_v54  ;;  %v3018_v26 = vrot.slane %v3821_v44, 3  ;;  %v3020_v17 = vrot.slane %v3822_v50, 1 }
 0x7a1   : > { %v2731_v18 = vmax.f32 %v2729_v35, %v2730_v60  ;;  %v2874_v22 = vrot.slane %v2672_v49, 2  ;;  %v2894_v36 = vrot.slane %v3821_v44, %v2893_v63  ;;  %p3833_p3 = pnand %p3832_p2, %p3826_p13 }
 0x7a3   : > { %v2732_v48 = vrot.slane %v2731_v18, 1  ;;  %v2889_v0 = vsel %vm1140_vm15, %v2888_v14, %v2874_v22 }
 0x7a5   : > { %v2733_v11 = vmax.f32 %v2731_v18, %v2732_v48 }
 0x7a7   : > { %v2856_v4 = vsel %vm437_vm13, %v2733_v11, %v2794_v10 }
 0x7a8   : > { %v2857_v23 = vsel %vm1217_vm0, %v2856_v4, %v2855_v51 }
 0x7a9   : > { %v2877_v43 = vrot.slane %v2857_v23, 1 }
 0x7ab   : > { %v2890_v55 = vsel %vm1121_vm14, %v2889_v0, %v2877_v43 }
 0x7ac   : > { %3551 = vmatmul.mubr.msk.f32.vlgmr.msra.gmra.mxu1 %vm1230_vm1, %v2890_v55 }
 0x86c   : > { %v3012_v20 = vpop.f32.mrf.mxu1 }
 0x86d   : > { %v3013_v21 = vadd.f32 %v3012_v20, %v2894_v36 }
 0x86e   : > { %v3552_v3 = vpop.f32.mrf.mxu1 }
 0x86f   : > { %3806 = vtanh.f32 %v3013_v21 }
 0x87c   : > { %v3807_v1 = vpop.eup %3806 }
 0x87d   : > { %3554 = vmatpush3.xpose.msk.msra.mxu0 %vm437_vm13, %v3807_v1 }
 0x880   : > { %3556 = vmatmul.mubr.msk.f32.vlgmr.msra.gmra.mxu0 %vm437_vm13, %v3018_v26 }
 0x940   : > { %v3093_v39 = vpop.f32.mrf.mxu0 }
 0x941   : > { %v3094_v12 = vadd.f32 %v3093_v39, %v3020_v17 }
 0x942   : > { %v3557_v7 = vpop.f32.mrf.mxu0 }
 0x943   : > { %v3098_v45 = vsel %vm3097_vm10, %v3094_v12, -inf }
 0x944   : > { %3099 = vmax.xlane.f32.xlu0 %v3098_v45 }
 0x9cd   : > { %v3100_v15 = vpop.xlane.xlu0 %3099 }
 0x9ce   : > { %v3101_v32 = vsub.f32 %v3094_v12, %v3100_v15 }
 0x9d0   : > { %v3102_v37 = vmul.f32 1.442695, %v3101_v32 }
 0x9d2   : > { %3808 = vpow2.f32 %v3102_v37 }
 0x9df   : > { %v3809_v27 = vpop.eup %3808 }
 0x9e0   : > { %v3104_v61 = vsel %vm3097_vm10, %v3809_v27, 0.0 }
 0x9e1   : > { %3105 = vadd.xlane.f32.xlu1 %v3104_v61 }
 0xa6a   : > { %v3106_v6 = vpop.xlane.xlu1 %3105 }
 0xa6b   : > { %3810 = vlog2.f32 %v3106_v6 }
 0xa78   : > { %v3811_v30 = vpop.eup %3810 }
 0xa79   : > { %v3108_v8 = vmul.f32 0.6931472, %v3811_v30 }
 0xa7b   : > { %v3109_v56 = vadd.f32 %v3108_v8, %v3100_v15 }
 0xa7d   : > { %v3110_v46 = vsub.f32 %v3094_v12, %v3109_v56 }
 0xa7f   : > { %v3112_v31 = vsel %vm3111_vm11, %v3110_v46, -1e+30 }
 0xa80   : > { %v3116_v42 = vrot.slane %v3112_v31, %v6465_v34 }
 0xa82   : > { %3117 = vst [vmem:[%s136_s22] sm:$0xff] %v3116_v42 }
 0xa83   : > { %3836 = shalt.err (!%p3833_p3)
}
 0xa84   : > { %s3837_s3 = scalar_lea.hbm %s3130_s26, 128  ;;  %s3841_s7 = scalar_lea.hbm %s6082_s2, 512 }
 0xa85   : > { %p3838_p4 = scmp.ne.s32.totalorder %s3130_s26, %s3837_s3  ;;  %p3842_p9 = scmp.lt.s32.totalorder %s3130_s26, %s6082_s2 }
 0xa86   : > { %p3843_p10 = scmp.lt.s32.totalorder %s3841_s7, %s3837_s3 }
 0xa87   : > { %p3839_p7 = pnand %p3838_p4, %p3969_p5 }
 0xa88   : > { %p3844_p11 = por %p3843_p10, %p3842_p9 }
 0xa89   : > { %p3840_p8 = pneg %p3839_p7 }
 0xa8b   : > { %p3845_p12 = pnand %p3844_p11, %p3840_p8 }
 0xa8d   : > { %3848 = shalt.err (!%p3845_p12)
}
 0xa8e   : > { %3583 = dma.vmem_to_hbm [thread:$0]  (%p3969_p5), %s3133_s23, 128, %s3130_s26, %s3119_s27  }
 0xa8f PF: > { %p3589_p13 = scmp.ge.s32.totalorder %s3883_s12, 2  ;;  %s3144_s16 = sand.u32 1, %s3871_s9  }
 0xa90   : > { %s3145_s17 = scalar_lea.sflag [#allocation3], %s3144_s16 }
 0xa91   : > { %p3586_p0 = pnand %p3589_p13, %p3973_p6 }
 0xa93   : > { %p3587_p1 = pneg %p3586_p0 }
 0xa95   : > { %3866 = dma.done.wait (%p3587_p1), %s3145_s17, 128  }
 0xa96   : > { %3868 = vsyncadd (%p3587_p1), %s3145_s17, 4294967168  ;;  %p12_p2 = scmp.ge.s32.totalorder %s3956_s15, 6   ;;  %s6466_s9 = smov %s3875_s10 }
 0xa97   : > { %s6467_s10 = smov %s3879_s11  ;;  %s6468_s11 = smov %s3967_s18 }
 0xa98   : > { %s6469_s12 = smov %s3956_s15  ;;  %14 = sbr.rel (!%p12_p2) target bundleno = 3 (0x3), region = 63 }
 0xa9d   :  { %3150 = vsyncpa [#allocation3], 1 }
 0xa9e   :  { %3152 = vsyncpa [#allocation3 + $0x1], 1 }

</bundles_post_ra>
